<compile_context>
chip_gen: v7x
topology: tpu7x:2x2x1
jax: 0.10.0
libtpu: 0.0.40
codegen_flags: <defaults>
</compile_context>

<pallas_src>
import functools

import jax
import jax.numpy as jnp
from jax import lax
from jax.experimental import pallas as pl
from jax.experimental.pallas import tpu as pltpu


# ----------------------------------------------------------------------------
# Fused kernel (one grid point = one batch tile x one fc1 column tile):
#   1) 3x3 conv (pad=1) + bias + ReLU for ALL c_feat output channels of the
#      batch tile, built from 9 shifted views of the flat edge-padded input.
#   2) feat laid out lane-dense in NCHW flatten order: (B_tile, c_feat*HW).
#   3) fc1 column tile on the MXU: (B_tile, c_feat*HW) bf16 @ (c_feat*HW,
#      tile_n) bf16 -> f32, + bias, ReLU, stored lane-dense.
# ----------------------------------------------------------------------------
def _fused_kernel(x_ref, wconv_ref, convb_ref, fc1w_ref, fc1b_ref, out_ref,
                  *, H, W, C, C_FEAT):
    HW = H * W
    B = x_ref.shape[0]

    # Boundary masks hoisted out of the tap loop (computed once per body).
    col = lax.broadcasted_iota(jnp.int32, (1, 1, HW), 2) % W
    mask_l = col != 0          # invalid taps when ow == -1
    mask_r = col != W - 1      # invalid taps when ow == +1

    # 9 shifted tap views of the flat padded input, computed ONCE
    # (independent of the output channel).  x_ref holds each (H*W)-flattened
    # sample padded with (W+1) zeros on both sides, so every tap is a static
    # lane slice; only the in-row left/right wrap-around needs masking.
    taps = []
    for oh in (-1, 0, 1):
        for ow in (-1, 0, 1):
            start = (W + 1) + oh * W + ow           # static offset, >= 0
            t = x_ref[:, :, start:start + HW]       # (B, C, HW) f32
            if ow == -1:
                t = jnp.where(mask_l, t, 0.0)
            elif ow == 1:
                t = jnp.where(mask_r, t, 0.0)
            taps.append(t)

    # Conv per output channel: weights addressed by leading indices (no
    # sublane slicing); accumulate the (B, C, HW) products over the 9 taps
    # and do a single cross-sublane reduce over C per channel.
    feats = []
    for co in range(C_FEAT):
        acc = jnp.zeros((B, C, HW), jnp.float32)
        for ti in range(9):
            w_vec = wconv_ref[co, ti]               # (C, 1) f32, leading idx
            acc = acc + w_vec * taps[ti]
        feat = jnp.sum(acc, axis=1) + convb_ref[co]  # (B, HW); SMEM scalar add
        feats.append(jnp.maximum(feat, 0.0))

    # NCHW .view(N, -1) flatten order: channel blocks concatenated along lanes.
    flat = jnp.concatenate(feats, axis=-1)          # (B, C_FEAT*HW) f32

    # fc1 column tile on the MXU: bf16 inputs, f32 accumulate.
    h1 = jnp.dot(flat.astype(jnp.bfloat16), fc1w_ref[...],
                 preferred_element_type=jnp.float32)
    out_ref[...] = jnp.maximum(h1 + fc1b_ref[...], 0.0)


# ----------------------------------------------------------------------------
# Wrapper: layout-only prep, one pallas_call (conv + fc1), fc2 as one XLA
# matmul over the whole batch at HIGHEST precision.
# ----------------------------------------------------------------------------
def gaze_forward(params, face_img_nchw, *, b_tile=8):
    N, C, H, W = face_img_nchw.shape
    HW = H * W
    conv_w = params["conv_w"]                       # (c_feat, C, 3, 3)
    c_feat = conv_w.shape[0]
    in_features = c_feat * HW
    hidden = params["fc1_w"].shape[1]               # 512
    Lp = HW + 2 * (W + 1)

    B_tile = min(N, b_tile)
    n_batch_tiles = pl.cdiv(N, B_tile)
    Np = n_batch_tiles * B_tile
    # If there is only one batch tile, split the fc1 output into two 256-wide
    # column tiles so both v7x TensorCores have work; otherwise the batch
    # axis already provides the parallelism and one column tile keeps the
    # grid-step count minimal on single-TC chips.
    col_tiles = 2 if (n_batch_tiles == 1 and hidden % 256 == 0) else 1
    tile_n = hidden // col_tiles

    # Flat, edge-padded input (no im2col tensor, no transposes in HBM).
    x_flat = face_img_nchw.reshape(N, C, HW)
    if Np != N:
        x_flat = jnp.pad(x_flat, ((0, Np - N), (0, 0), (0, 0)))
    x_flat = jnp.pad(x_flat, ((0, 0), (0, 0), (W + 1, W + 1)))

    # Conv weights tap-major with leading (co, tap) indices -> (c_feat,9,C,1).
    w_conv = conv_w.transpose(0, 2, 3, 1).reshape(c_feat, 9, C, 1)
    conv_b = params["conv_b"]                       # (c_feat,) -> SMEM
    fc1_w = params["fc1_w"].astype(jnp.bfloat16)    # (in_features, 512)
    fc1_b = params["fc1_b"].reshape(1, hidden)

    kernel = functools.partial(_fused_kernel, H=H, W=W, C=C, C_FEAT=c_feat)
    h1 = pl.pallas_call(
        kernel,
        out_shape=jax.ShapeDtypeStruct((Np, hidden), jnp.float32),
        grid_spec=pltpu.PrefetchScalarGridSpec(
            num_scalar_prefetch=0,
            grid=(n_batch_tiles, col_tiles),
            in_specs=[
                pl.BlockSpec((B_tile, C, Lp), lambda i, j: (i, 0, 0)),
                pl.BlockSpec((c_feat, 9, C, 1), lambda i, j: (0, 0, 0, 0)),
                pl.BlockSpec(memory_space=pltpu.MemorySpace.SMEM),
                pl.BlockSpec((in_features, tile_n), lambda i, j: (0, j)),
                pl.BlockSpec((1, tile_n), lambda i, j: (0, j)),
            ],
            out_specs=pl.BlockSpec((B_tile, tile_n), lambda i, j: (i, j)),
        ),
        compiler_params=pltpu.CompilerParams(
            dimension_semantics=("parallel", "parallel"),
            vmem_limit_bytes=32 * 1024 * 1024,
        ),
    )(x_flat, w_conv, conv_b, fc1_w, fc1_b)

    h1 = h1[:N]
    # fc2: tiny (N,512)@(512,out) GEMM, done once over the whole batch in XLA
    # (per perf review) at HIGHEST precision -> matches the reference exactly.
    return jnp.dot(h1, params["fc2_w"], preferred_element_type=jnp.float32,
                   precision=lax.Precision.HIGHEST) + params["fc2_b"]


# ----------------------------------------------------------------------------
# Parameter init.  Linear layers mirror _init_weights (kaiming_uniform fan_in,
# relu gain -> bound sqrt(6/fan_in)).  PyTorch zeroes the Linear biases; we
# use small random biases here purely so the bias-add paths are exercised by
# the correctness check (intentional spec deviation, flagged).
# ----------------------------------------------------------------------------
def kaiming_uniform(key, shape, fan_in):
    bound = (6.0 / fan_in) ** 0.5
    return jax.random.uniform(key, shape, jnp.float32, -bound, bound)


def init_params(key, c_in, c_feat, h, w, out_features):
    ks = jax.random.split(key, 6)
    in_features = c_feat * h * w
    return {
        "conv_w": kaiming_uniform(ks[0], (c_feat, c_in, 3, 3), c_in * 9),
        "conv_b": 0.1 * jax.random.normal(ks[1], (c_feat,), jnp.float32),
        "fc1_w": kaiming_uniform(ks[2], (in_features, 512), in_features),
        "fc1_b": 0.1 * jax.random.normal(ks[3], (512,), jnp.float32),
        "fc2_w": kaiming_uniform(ks[4], (512, out_features), 512),
        "fc2_b": 0.1 * jax.random.normal(ks[5], (out_features,), jnp.float32),
    }


# ----------------------------------------------------------------------------
# Pure-JAX reference (same math, fc1 inputs cast to bf16 like the kernel).
# ----------------------------------------------------------------------------
def reference_forward(params, x):
    feat = lax.conv_general_dilated(
        x, params["conv_w"], window_strides=(1, 1), padding=((1, 1), (1, 1)),
        dimension_numbers=("NCHW", "OIHW", "NCHW"),
        precision=lax.Precision.HIGHEST)
    feat = jnp.maximum(feat + params["conv_b"][None, :, None, None], 0.0)
    flat = feat.reshape(x.shape[0], -1)             # NCHW .view(N, -1) order
    h1 = jnp.dot(flat.astype(jnp.bfloat16),
                 params["fc1_w"].astype(jnp.bfloat16),
                 preferred_element_type=jnp.float32) + params["fc1_b"]
    h1 = jnp.maximum(h1, 0.0)
    return jnp.dot(h1, params["fc2_w"], preferred_element_type=jnp.float32,
                   precision=lax.Precision.HIGHEST) + params["fc2_b"]


if __name__ == "__main__":
    key = jax.random.PRNGKey(0)
    k_params, k_input = jax.random.split(key)

    batch, c_in, spatial = 2, 4, 16
    c_feat, out_features = 8, 2                     # gaze output (pitch, yaw)

    params = init_params(k_params, c_in, c_feat, spatial, spatial,
                         out_features)
    face_img = jax.random.normal(k_input, (batch, c_in, spatial, spatial),
                                 jnp.float32)

    out = jax.jit(gaze_forward)(params, face_img)
    jax.block_until_ready(out)
    assert out.shape == (batch, out_features)

    ref = reference_forward(params, face_img)
    assert jnp.allclose(out, ref, rtol=1e-2, atol=1e-2), (out, ref)
    print("KERNEL_OK")
</pallas_src>

<mosaic_0001>
module attributes {stable_mosaic.version = 11 : i64} {
  func.func @_fused_kernel(%arg0: i32, %arg1: i32, %arg2: memref<2x4x290xf32, #tpu.memory_space<vmem>>, %arg3: memref<8x9x4x1xf32, #tpu.memory_space<vmem>>, %arg4: memref<8xf32, #tpu.memory_space<smem>>, %arg5: memref<2048x256xbf16, #tpu.memory_space<vmem>>, %arg6: memref<1x256xf32, #tpu.memory_space<vmem>>, %arg7: memref<2x256xf32, #tpu.memory_space<vmem>>) attributes {dimension_semantics = [#tpu.dimension_semantics<parallel>, #tpu.dimension_semantics<parallel>], iteration_bounds = array<i64: 1, 2>, scalar_prefetch = 0 : i64, scratch_operands = 0 : i64, tpu.core_type = #tpu.core_type<tc>, window_params = [{transform_indices = @transform_0, window_bounds = array<i64: 2, 4, 290>}, {pipeline_mode = #tpu.pipeline_mode<synchronous>, transform_indices = @transform_1, window_bounds = array<i64: 8, 9, 4, 1>}, {transform_indices = @transform_2, window_bounds = array<i64: 8>}, {transform_indices = @transform_3, window_bounds = array<i64: 2048, 256>}, {transform_indices = @transform_4, window_bounds = array<i64: 1, 256>}, {transform_indices = @transform_5, window_bounds = array<i64: 2, 256>}]} {
    %0 = tpu.iota {dimensions = array<i32: 2>} : vector<1x1x256xi32>
    %c16_i32 = arith.constant 16 : i32
    %c0_i32 = arith.constant 0 : i32
    %1 = arith.cmpi eq, %c16_i32, %c0_i32 : i32
    %c1_i32 = arith.constant 1 : i32
    %2 = arith.select %1, %c1_i32, %c16_i32 : i32
    %3 = vector.broadcast %2 : i32 to vector<1x1x256xi32>
    %4 = arith.remsi %0, %3 : vector<1x1x256xi32>
    %c0_i32_0 = arith.constant 0 : i32
    %5 = vector.broadcast %c0_i32_0 : i32 to vector<1x1x256xi32>
    %6 = arith.cmpi ne, %4, %5 : vector<1x1x256xi32>
    %c0_i32_1 = arith.constant 0 : i32
    %7 = vector.broadcast %c0_i32_1 : i32 to vector<1x1x256xi32>
    %8 = arith.cmpi slt, %4, %7 : vector<1x1x256xi32>
    %c0_i32_2 = arith.constant 0 : i32
    %9 = arith.cmpi slt, %2, %c0_i32_2 : i32
    %10 = vector.broadcast %9 : i1 to vector<1x1x256xi1>
    %11 = vector.broadcast %10 : vector<1x1x256xi1> to vector<1x1x256xi1>
    %12 = arith.xori %8, %11 : vector<1x1x256xi1>
    %13 = arith.andi %12, %6 : vector<1x1x256xi1>
    %14 = vector.broadcast %2 : i32 to vector<1x1x256xi32>
    %15 = arith.addi %4, %14 : vector<1x1x256xi32>
    %16 = arith.select %13, %15, %4 : vector<1x1x256xi1>, vector<1x1x256xi32>
    %c0_i32_3 = arith.constant 0 : i32
    %17 = vector.broadcast %c0_i32_3 : i32 to vector<1x1x256xi32>
    %18 = arith.cmpi ne, %16, %17 : vector<1x1x256xi32>
    %c15_i32 = arith.constant 15 : i32
    %19 = vector.broadcast %c15_i32 : i32 to vector<1x1x256xi32>
    %20 = arith.cmpi ne, %16, %19 : vector<1x1x256xi32>
    %c0 = arith.constant 0 : index
    %c0_4 = arith.constant 0 : index
    %c0_5 = arith.constant 0 : index
    %21 = vector.load %arg2[%c0, %c0_4, %c0_5] : memref<2x4x290xf32, #tpu.memory_space<vmem>>, vector<2x4x256xf32>
    %cst = arith.constant 0.000000e+00 : f32
    %22 = vector.shape_cast %18 : vector<1x1x256xi1> to vector<1x1x256xi1>
    %23 = vector.broadcast %22 : vector<1x1x256xi1> to vector<2x4x256xi1>
    %24 = vector.broadcast %cst : f32 to vector<2x4x256xf32>
    %25 = arith.select %23, %21, %24 : vector<2x4x256xi1>, vector<2x4x256xf32>
    %c0_6 = arith.constant 0 : index
    %c0_7 = arith.constant 0 : index
    %c1 = arith.constant 1 : index
    %26 = vector.load %arg2[%c0_6, %c0_7, %c1] : memref<2x4x290xf32, #tpu.memory_space<vmem>>, vector<2x4x256xf32>
    %c0_8 = arith.constant 0 : index
    %c0_9 = arith.constant 0 : index
    %c2 = arith.constant 2 : index
    %27 = vector.load %arg2[%c0_8, %c0_9, %c2] : memref<2x4x290xf32, #tpu.memory_space<vmem>>, vector<2x4x256xf32>
    %cst_10 = arith.constant 0.000000e+00 : f32
    %28 = vector.shape_cast %20 : vector<1x1x256xi1> to vector<1x1x256xi1>
    %29 = vector.broadcast %28 : vector<1x1x256xi1> to vector<2x4x256xi1>
    %30 = vector.broadcast %cst_10 : f32 to vector<2x4x256xf32>
    %31 = arith.select %29, %27, %30 : vector<2x4x256xi1>, vector<2x4x256xf32>
    %c0_11 = arith.constant 0 : index
    %c0_12 = arith.constant 0 : index
    %c16 = arith.constant 16 : index
    %32 = vector.load %arg2[%c0_11, %c0_12, %c16] : memref<2x4x290xf32, #tpu.memory_space<vmem>>, vector<2x4x256xf32>
    %cst_13 = arith.constant 0.000000e+00 : f32
    %33 = vector.shape_cast %18 : vector<1x1x256xi1> to vector<1x1x256xi1>
    %34 = vector.broadcast %33 : vector<1x1x256xi1> to vector<2x4x256xi1>
    %35 = vector.broadcast %cst_13 : f32 to vector<2x4x256xf32>
    %36 = arith.select %34, %32, %35 : vector<2x4x256xi1>, vector<2x4x256xf32>
    %c0_14 = arith.constant 0 : index
    %c0_15 = arith.constant 0 : index
    %c17 = arith.constant 17 : index
    %37 = vector.load %arg2[%c0_14, %c0_15, %c17] : memref<2x4x290xf32, #tpu.memory_space<vmem>>, vector<2x4x256xf32>
    %c0_16 = arith.constant 0 : index
    %c0_17 = arith.constant 0 : index
    %c18 = arith.constant 18 : index
    %38 = vector.load %arg2[%c0_16, %c0_17, %c18] : memref<2x4x290xf32, #tpu.memory_space<vmem>>, vector<2x4x256xf32>
    %cst_18 = arith.constant 0.000000e+00 : f32
    %39 = vector.shape_cast %20 : vector<1x1x256xi1> to vector<1x1x256xi1>
    %40 = vector.broadcast %39 : vector<1x1x256xi1> to vector<2x4x256xi1>
    %41 = vector.broadcast %cst_18 : f32 to vector<2x4x256xf32>
    %42 = arith.select %40, %38, %41 : vector<2x4x256xi1>, vector<2x4x256xf32>
    %c0_19 = arith.constant 0 : index
    %c0_20 = arith.constant 0 : index
    %c32 = arith.constant 32 : index
    %43 = vector.load %arg2[%c0_19, %c0_20, %c32] : memref<2x4x290xf32, #tpu.memory_space<vmem>>, vector<2x4x256xf32>
    %cst_21 = arith.constant 0.000000e+00 : f32
    %44 = vector.shape_cast %18 : vector<1x1x256xi1> to vector<1x1x256xi1>
    %45 = vector.broadcast %44 : vector<1x1x256xi1> to vector<2x4x256xi1>
    %46 = vector.broadcast %cst_21 : f32 to vector<2x4x256xf32>
    %47 = arith.select %45, %43, %46 : vector<2x4x256xi1>, vector<2x4x256xf32>
    %c0_22 = arith.constant 0 : index
    %c0_23 = arith.constant 0 : index
    %c33 = arith.constant 33 : index
    %48 = vector.load %arg2[%c0_22, %c0_23, %c33] : memref<2x4x290xf32, #tpu.memory_space<vmem>>, vector<2x4x256xf32>
    %c0_24 = arith.constant 0 : index
    %c0_25 = arith.constant 0 : index
    %c34 = arith.constant 34 : index
    %49 = vector.load %arg2[%c0_24, %c0_25, %c34] : memref<2x4x290xf32, #tpu.memory_space<vmem>>, vector<2x4x256xf32>
    %cst_26 = arith.constant 0.000000e+00 : f32
    %50 = vector.shape_cast %20 : vector<1x1x256xi1> to vector<1x1x256xi1>
    %51 = vector.broadcast %50 : vector<1x1x256xi1> to vector<2x4x256xi1>
    %52 = vector.broadcast %cst_26 : f32 to vector<2x4x256xf32>
    %53 = arith.select %51, %49, %52 : vector<2x4x256xi1>, vector<2x4x256xf32>
    %cst_27 = arith.constant 0.000000e+00 : f32
    %54 = vector.broadcast %cst_27 : f32 to vector<2x4x256xf32>
    %c0_28 = arith.constant 0 : index
    %c0_29 = arith.constant 0 : index
    %c0_30 = arith.constant 0 : index
    %c0_31 = arith.constant 0 : index
    %55 = vector.load %arg3[%c0_28, %c0_29, %c0_30, %c0_31] : memref<8x9x4x1xf32, #tpu.memory_space<vmem>>, vector<1x1x4x1xf32>
    %56 = vector.shape_cast %55 : vector<1x1x4x1xf32> to vector<4x1xf32>
    %57 = vector.shape_cast %56 : vector<4x1xf32> to vector<1x4x1xf32>
    %58 = vector.broadcast %57 : vector<1x4x1xf32> to vector<2x4x256xf32>
    %59 = arith.mulf %58, %25 : vector<2x4x256xf32>
    %60 = arith.addf %54, %59 : vector<2x4x256xf32>
    %c0_32 = arith.constant 0 : index
    %c1_33 = arith.constant 1 : index
    %c0_34 = arith.constant 0 : index
    %c0_35 = arith.constant 0 : index
    %61 = vector.load %arg3[%c0_32, %c1_33, %c0_34, %c0_35] : memref<8x9x4x1xf32, #tpu.memory_space<vmem>>, vector<1x1x4x1xf32>
    %62 = vector.shape_cast %61 : vector<1x1x4x1xf32> to vector<4x1xf32>
    %63 = vector.shape_cast %62 : vector<4x1xf32> to vector<1x4x1xf32>
    %64 = vector.broadcast %63 : vector<1x4x1xf32> to vector<2x4x256xf32>
    %65 = arith.mulf %64, %26 : vector<2x4x256xf32>
    %66 = arith.addf %60, %65 : vector<2x4x256xf32>
    %c0_36 = arith.constant 0 : index
    %c2_37 = arith.constant 2 : index
    %c0_38 = arith.constant 0 : index
    %c0_39 = arith.constant 0 : index
    %67 = vector.load %arg3[%c0_36, %c2_37, %c0_38, %c0_39] : memref<8x9x4x1xf32, #tpu.memory_space<vmem>>, vector<1x1x4x1xf32>
    %68 = vector.shape_cast %67 : vector<1x1x4x1xf32> to vector<4x1xf32>
    %69 = vector.shape_cast %68 : vector<4x1xf32> to vector<1x4x1xf32>
    %70 = vector.broadcast %69 : vector<1x4x1xf32> to vector<2x4x256xf32>
    %71 = arith.mulf %70, %31 : vector<2x4x256xf32>
    %72 = arith.addf %66, %71 : vector<2x4x256xf32>
    %c0_40 = arith.constant 0 : index
    %c3 = arith.constant 3 : index
    %c0_41 = arith.constant 0 : index
    %c0_42 = arith.constant 0 : index
    %73 = vector.load %arg3[%c0_40, %c3, %c0_41, %c0_42] : memref<8x9x4x1xf32, #tpu.memory_space<vmem>>, vector<1x1x4x1xf32>
    %74 = vector.shape_cast %73 : vector<1x1x4x1xf32> to vector<4x1xf32>
    %75 = vector.shape_cast %74 : vector<4x1xf32> to vector<1x4x1xf32>
    %76 = vector.broadcast %75 : vector<1x4x1xf32> to vector<2x4x256xf32>
    %77 = arith.mulf %76, %36 : vector<2x4x256xf32>
    %78 = arith.addf %72, %77 : vector<2x4x256xf32>
    %c0_43 = arith.constant 0 : index
    %c4 = arith.constant 4 : index
    %c0_44 = arith.constant 0 : index
    %c0_45 = arith.constant 0 : index
    %79 = vector.load %arg3[%c0_43, %c4, %c0_44, %c0_45] : memref<8x9x4x1xf32, #tpu.memory_space<vmem>>, vector<1x1x4x1xf32>
    %80 = vector.shape_cast %79 : vector<1x1x4x1xf32> to vector<4x1xf32>
    %81 = vector.shape_cast %80 : vector<4x1xf32> to vector<1x4x1xf32>
    %82 = vector.broadcast %81 : vector<1x4x1xf32> to vector<2x4x256xf32>
    %83 = arith.mulf %82, %37 : vector<2x4x256xf32>
    %84 = arith.addf %78, %83 : vector<2x4x256xf32>
    %c0_46 = arith.constant 0 : index
    %c5 = arith.constant 5 : index
    %c0_47 = arith.constant 0 : index
    %c0_48 = arith.constant 0 : index
    %85 = vector.load %arg3[%c0_46, %c5, %c0_47, %c0_48] : memref<8x9x4x1xf32, #tpu.memory_space<vmem>>, vector<1x1x4x1xf32>
    %86 = vector.shape_cast %85 : vector<1x1x4x1xf32> to vector<4x1xf32>
    %87 = vector.shape_cast %86 : vector<4x1xf32> to vector<1x4x1xf32>
    %88 = vector.broadcast %87 : vector<1x4x1xf32> to vector<2x4x256xf32>
    %89 = arith.mulf %88, %42 : vector<2x4x256xf32>
    %90 = arith.addf %84, %89 : vector<2x4x256xf32>
    %c0_49 = arith.constant 0 : index
    %c6 = arith.constant 6 : index
    %c0_50 = arith.constant 0 : index
    %c0_51 = arith.constant 0 : index
    %91 = vector.load %arg3[%c0_49, %c6, %c0_50, %c0_51] : memref<8x9x4x1xf32, #tpu.memory_space<vmem>>, vector<1x1x4x1xf32>
    %92 = vector.shape_cast %91 : vector<1x1x4x1xf32> to vector<4x1xf32>
    %93 = vector.shape_cast %92 : vector<4x1xf32> to vector<1x4x1xf32>
    %94 = vector.broadcast %93 : vector<1x4x1xf32> to vector<2x4x256xf32>
    %95 = arith.mulf %94, %47 : vector<2x4x256xf32>
    %96 = arith.addf %90, %95 : vector<2x4x256xf32>
    %c0_52 = arith.constant 0 : index
    %c7 = arith.constant 7 : index
    %c0_53 = arith.constant 0 : index
    %c0_54 = arith.constant 0 : index
    %97 = vector.load %arg3[%c0_52, %c7, %c0_53, %c0_54] : memref<8x9x4x1xf32, #tpu.memory_space<vmem>>, vector<1x1x4x1xf32>
    %98 = vector.shape_cast %97 : vector<1x1x4x1xf32> to vector<4x1xf32>
    %99 = vector.shape_cast %98 : vector<4x1xf32> to vector<1x4x1xf32>
    %100 = vector.broadcast %99 : vector<1x4x1xf32> to vector<2x4x256xf32>
    %101 = arith.mulf %100, %48 : vector<2x4x256xf32>
    %102 = arith.addf %96, %101 : vector<2x4x256xf32>
    %c0_55 = arith.constant 0 : index
    %c8 = arith.constant 8 : index
    %c0_56 = arith.constant 0 : index
    %c0_57 = arith.constant 0 : index
    %103 = vector.load %arg3[%c0_55, %c8, %c0_56, %c0_57] : memref<8x9x4x1xf32, #tpu.memory_space<vmem>>, vector<1x1x4x1xf32>
    %104 = vector.shape_cast %103 : vector<1x1x4x1xf32> to vector<4x1xf32>
    %105 = vector.shape_cast %104 : vector<4x1xf32> to vector<1x4x1xf32>
    %106 = vector.broadcast %105 : vector<1x4x1xf32> to vector<2x4x256xf32>
    %107 = arith.mulf %106, %53 : vector<2x4x256xf32>
    %108 = arith.addf %102, %107 : vector<2x4x256xf32>
    %cst_58 = arith.constant dense<0.000000e+00> : vector<2x256xf32>
    %109 = vector.multi_reduction <add>, %108, %cst_58 [1] : vector<2x4x256xf32> to vector<2x256xf32>
    %c0_59 = arith.constant 0 : index
    %110 = memref.load %arg4[%c0_59] : memref<8xf32, #tpu.memory_space<smem>>
    %111 = vector.broadcast %110 : f32 to vector<2x256xf32>
    %112 = arith.addf %109, %111 : vector<2x256xf32>
    %cst_60 = arith.constant 0.000000e+00 : f32
    %113 = vector.broadcast %cst_60 : f32 to vector<2x256xf32>
    %114 = arith.maximumf %112, %113 : vector<2x256xf32>
    %cst_61 = arith.constant 0.000000e+00 : f32
    %115 = vector.broadcast %cst_61 : f32 to vector<2x4x256xf32>
    %c1_62 = arith.constant 1 : index
    %c0_63 = arith.constant 0 : index
    %c0_64 = arith.constant 0 : index
    %c0_65 = arith.constant 0 : index
    %116 = vector.load %arg3[%c1_62, %c0_63, %c0_64, %c0_65] : memref<8x9x4x1xf32, #tpu.memory_space<vmem>>, vector<1x1x4x1xf32>
    %117 = vector.shape_cast %116 : vector<1x1x4x1xf32> to vector<4x1xf32>
    %118 = vector.shape_cast %117 : vector<4x1xf32> to vector<1x4x1xf32>
    %119 = vector.broadcast %118 : vector<1x4x1xf32> to vector<2x4x256xf32>
    %120 = arith.mulf %119, %25 : vector<2x4x256xf32>
    %121 = arith.addf %115, %120 : vector<2x4x256xf32>
    %c1_66 = arith.constant 1 : index
    %c1_67 = arith.constant 1 : index
    %c0_68 = arith.constant 0 : index
    %c0_69 = arith.constant 0 : index
    %122 = vector.load %arg3[%c1_66, %c1_67, %c0_68, %c0_69] : memref<8x9x4x1xf32, #tpu.memory_space<vmem>>, vector<1x1x4x1xf32>
    %123 = vector.shape_cast %122 : vector<1x1x4x1xf32> to vector<4x1xf32>
    %124 = vector.shape_cast %123 : vector<4x1xf32> to vector<1x4x1xf32>
    %125 = vector.broadcast %124 : vector<1x4x1xf32> to vector<2x4x256xf32>
    %126 = arith.mulf %125, %26 : vector<2x4x256xf32>
    %127 = arith.addf %121, %126 : vector<2x4x256xf32>
    %c1_70 = arith.constant 1 : index
    %c2_71 = arith.constant 2 : index
    %c0_72 = arith.constant 0 : index
    %c0_73 = arith.constant 0 : index
    %128 = vector.load %arg3[%c1_70, %c2_71, %c0_72, %c0_73] : memref<8x9x4x1xf32, #tpu.memory_space<vmem>>, vector<1x1x4x1xf32>
    %129 = vector.shape_cast %128 : vector<1x1x4x1xf32> to vector<4x1xf32>
    %130 = vector.shape_cast %129 : vector<4x1xf32> to vector<1x4x1xf32>
    %131 = vector.broadcast %130 : vector<1x4x1xf32> to vector<2x4x256xf32>
    %132 = arith.mulf %131, %31 : vector<2x4x256xf32>
    %133 = arith.addf %127, %132 : vector<2x4x256xf32>
    %c1_74 = arith.constant 1 : index
    %c3_75 = arith.constant 3 : index
    %c0_76 = arith.constant 0 : index
    %c0_77 = arith.constant 0 : index
    %134 = vector.load %arg3[%c1_74, %c3_75, %c0_76, %c0_77] : memref<8x9x4x1xf32, #tpu.memory_space<vmem>>, vector<1x1x4x1xf32>
    %135 = vector.shape_cast %134 : vector<1x1x4x1xf32> to vector<4x1xf32>
    %136 = vector.shape_cast %135 : vector<4x1xf32> to vector<1x4x1xf32>
    %137 = vector.broadcast %136 : vector<1x4x1xf32> to vector<2x4x256xf32>
    %138 = arith.mulf %137, %36 : vector<2x4x256xf32>
    %139 = arith.addf %133, %138 : vector<2x4x256xf32>
    %c1_78 = arith.constant 1 : index
    %c4_79 = arith.constant 4 : index
    %c0_80 = arith.constant 0 : index
    %c0_81 = arith.constant 0 : index
    %140 = vector.load %arg3[%c1_78, %c4_79, %c0_80, %c0_81] : memref<8x9x4x1xf32, #tpu.memory_space<vmem>>, vector<1x1x4x1xf32>
    %141 = vector.shape_cast %140 : vector<1x1x4x1xf32> to vector<4x1xf32>
    %142 = vector.shape_cast %141 : vector<4x1xf32> to vector<1x4x1xf32>
    %143 = vector.broadcast %142 : vector<1x4x1xf32> to vector<2x4x256xf32>
    %144 = arith.mulf %143, %37 : vector<2x4x256xf32>
    %145 = arith.addf %139, %144 : vector<2x4x256xf32>
    %c1_82 = arith.constant 1 : index
    %c5_83 = arith.constant 5 : index
    %c0_84 = arith.constant 0 : index
    %c0_85 = arith.constant 0 : index
    %146 = vector.load %arg3[%c1_82, %c5_83, %c0_84, %c0_85] : memref<8x9x4x1xf32, #tpu.memory_space<vmem>>, vector<1x1x4x1xf32>
    %147 = vector.shape_cast %146 : vector<1x1x4x1xf32> to vector<4x1xf32>
    %148 = vector.shape_cast %147 : vector<4x1xf32> to vector<1x4x1xf32>
    %149 = vector.broadcast %148 : vector<1x4x1xf32> to vector<2x4x256xf32>
    %150 = arith.mulf %149, %42 : vector<2x4x256xf32>
    %151 = arith.addf %145, %150 : vector<2x4x256xf32>
    %c1_86 = arith.constant 1 : index
    %c6_87 = arith.constant 6 : index
    %c0_88 = arith.constant 0 : index
    %c0_89 = arith.constant 0 : index
    %152 = vector.load %arg3[%c1_86, %c6_87, %c0_88, %c0_89] : memref<8x9x4x1xf32, #tpu.memory_space<vmem>>, vector<1x1x4x1xf32>
    %153 = vector.shape_cast %152 : vector<1x1x4x1xf32> to vector<4x1xf32>
    %154 = vector.shape_cast %153 : vector<4x1xf32> to vector<1x4x1xf32>
    %155 = vector.broadcast %154 : vector<1x4x1xf32> to vector<2x4x256xf32>
    %156 = arith.mulf %155, %47 : vector<2x4x256xf32>
    %157 = arith.addf %151, %156 : vector<2x4x256xf32>
    %c1_90 = arith.constant 1 : index
    %c7_91 = arith.constant 7 : index
    %c0_92 = arith.constant 0 : index
    %c0_93 = arith.constant 0 : index
    %158 = vector.load %arg3[%c1_90, %c7_91, %c0_92, %c0_93] : memref<8x9x4x1xf32, #tpu.memory_space<vmem>>, vector<1x1x4x1xf32>
    %159 = vector.shape_cast %158 : vector<1x1x4x1xf32> to vector<4x1xf32>
    %160 = vector.shape_cast %159 : vector<4x1xf32> to vector<1x4x1xf32>
    %161 = vector.broadcast %160 : vector<1x4x1xf32> to vector<2x4x256xf32>
    %162 = arith.mulf %161, %48 : vector<2x4x256xf32>
    %163 = arith.addf %157, %162 : vector<2x4x256xf32>
    %c1_94 = arith.constant 1 : index
    %c8_95 = arith.constant 8 : index
    %c0_96 = arith.constant 0 : index
    %c0_97 = arith.constant 0 : index
    %164 = vector.load %arg3[%c1_94, %c8_95, %c0_96, %c0_97] : memref<8x9x4x1xf32, #tpu.memory_space<vmem>>, vector<1x1x4x1xf32>
    %165 = vector.shape_cast %164 : vector<1x1x4x1xf32> to vector<4x1xf32>
    %166 = vector.shape_cast %165 : vector<4x1xf32> to vector<1x4x1xf32>
    %167 = vector.broadcast %166 : vector<1x4x1xf32> to vector<2x4x256xf32>
    %168 = arith.mulf %167, %53 : vector<2x4x256xf32>
    %169 = arith.addf %163, %168 : vector<2x4x256xf32>
    %cst_98 = arith.constant dense<0.000000e+00> : vector<2x256xf32>
    %170 = vector.multi_reduction <add>, %169, %cst_98 [1] : vector<2x4x256xf32> to vector<2x256xf32>
    %c1_99 = arith.constant 1 : index
    %171 = memref.load %arg4[%c1_99] : memref<8xf32, #tpu.memory_space<smem>>
    %172 = vector.broadcast %171 : f32 to vector<2x256xf32>
    %173 = arith.addf %170, %172 : vector<2x256xf32>
    %cst_100 = arith.constant 0.000000e+00 : f32
    %174 = vector.broadcast %cst_100 : f32 to vector<2x256xf32>
    %175 = arith.maximumf %173, %174 : vector<2x256xf32>
    %cst_101 = arith.constant 0.000000e+00 : f32
    %176 = vector.broadcast %cst_101 : f32 to vector<2x4x256xf32>
    %c2_102 = arith.constant 2 : index
    %c0_103 = arith.constant 0 : index
    %c0_104 = arith.constant 0 : index
    %c0_105 = arith.constant 0 : index
    %177 = vector.load %arg3[%c2_102, %c0_103, %c0_104, %c0_105] : memref<8x9x4x1xf32, #tpu.memory_space<vmem>>, vector<1x1x4x1xf32>
    %178 = vector.shape_cast %177 : vector<1x1x4x1xf32> to vector<4x1xf32>
    %179 = vector.shape_cast %178 : vector<4x1xf32> to vector<1x4x1xf32>
    %180 = vector.broadcast %179 : vector<1x4x1xf32> to vector<2x4x256xf32>
    %181 = arith.mulf %180, %25 : vector<2x4x256xf32>
    %182 = arith.addf %176, %181 : vector<2x4x256xf32>
    %c2_106 = arith.constant 2 : index
    %c1_107 = arith.constant 1 : index
    %c0_108 = arith.constant 0 : index
    %c0_109 = arith.constant 0 : index
    %183 = vector.load %arg3[%c2_106, %c1_107, %c0_108, %c0_109] : memref<8x9x4x1xf32, #tpu.memory_space<vmem>>, vector<1x1x4x1xf32>
    %184 = vector.shape_cast %183 : vector<1x1x4x1xf32> to vector<4x1xf32>
    %185 = vector.shape_cast %184 : vector<4x1xf32> to vector<1x4x1xf32>
    %186 = vector.broadcast %185 : vector<1x4x1xf32> to vector<2x4x256xf32>
    %187 = arith.mulf %186, %26 : vector<2x4x256xf32>
    %188 = arith.addf %182, %187 : vector<2x4x256xf32>
    %c2_110 = arith.constant 2 : index
    %c2_111 = arith.constant 2 : index
    %c0_112 = arith.constant 0 : index
    %c0_113 = arith.constant 0 : index
    %189 = vector.load %arg3[%c2_110, %c2_111, %c0_112, %c0_113] : memref<8x9x4x1xf32, #tpu.memory_space<vmem>>, vector<1x1x4x1xf32>
    %190 = vector.shape_cast %189 : vector<1x1x4x1xf32> to vector<4x1xf32>
    %191 = vector.shape_cast %190 : vector<4x1xf32> to vector<1x4x1xf32>
    %192 = vector.broadcast %191 : vector<1x4x1xf32> to vector<2x4x256xf32>
    %193 = arith.mulf %192, %31 : vector<2x4x256xf32>
    %194 = arith.addf %188, %193 : vector<2x4x256xf32>
    %c2_114 = arith.constant 2 : index
    %c3_115 = arith.constant 3 : index
    %c0_116 = arith.constant 0 : index
    %c0_117 = arith.constant 0 : index
    %195 = vector.load %arg3[%c2_114, %c3_115, %c0_116, %c0_117] : memref<8x9x4x1xf32, #tpu.memory_space<vmem>>, vector<1x1x4x1xf32>
    %196 = vector.shape_cast %195 : vector<1x1x4x1xf32> to vector<4x1xf32>
    %197 = vector.shape_cast %196 : vector<4x1xf32> to vector<1x4x1xf32>
    %198 = vector.broadcast %197 : vector<1x4x1xf32> to vector<2x4x256xf32>
    %199 = arith.mulf %198, %36 : vector<2x4x256xf32>
    %200 = arith.addf %194, %199 : vector<2x4x256xf32>
    %c2_118 = arith.constant 2 : index
    %c4_119 = arith.constant 4 : index
    %c0_120 = arith.constant 0 : index
    %c0_121 = arith.constant 0 : index
    %201 = vector.load %arg3[%c2_118, %c4_119, %c0_120, %c0_121] : memref<8x9x4x1xf32, #tpu.memory_space<vmem>>, vector<1x1x4x1xf32>
    %202 = vector.shape_cast %201 : vector<1x1x4x1xf32> to vector<4x1xf32>
    %203 = vector.shape_cast %202 : vector<4x1xf32> to vector<1x4x1xf32>
    %204 = vector.broadcast %203 : vector<1x4x1xf32> to vector<2x4x256xf32>
    %205 = arith.mulf %204, %37 : vector<2x4x256xf32>
    %206 = arith.addf %200, %205 : vector<2x4x256xf32>
    %c2_122 = arith.constant 2 : index
    %c5_123 = arith.constant 5 : index
    %c0_124 = arith.constant 0 : index
    %c0_125 = arith.constant 0 : index
    %207 = vector.load %arg3[%c2_122, %c5_123, %c0_124, %c0_125] : memref<8x9x4x1xf32, #tpu.memory_space<vmem>>, vector<1x1x4x1xf32>
    %208 = vector.shape_cast %207 : vector<1x1x4x1xf32> to vector<4x1xf32>
    %209 = vector.shape_cast %208 : vector<4x1xf32> to vector<1x4x1xf32>
    %210 = vector.broadcast %209 : vector<1x4x1xf32> to vector<2x4x256xf32>
    %211 = arith.mulf %210, %42 : vector<2x4x256xf32>
    %212 = arith.addf %206, %211 : vector<2x4x256xf32>
    %c2_126 = arith.constant 2 : index
    %c6_127 = arith.constant 6 : index
    %c0_128 = arith.constant 0 : index
    %c0_129 = arith.constant 0 : index
    %213 = vector.load %arg3[%c2_126, %c6_127, %c0_128, %c0_129] : memref<8x9x4x1xf32, #tpu.memory_space<vmem>>, vector<1x1x4x1xf32>
    %214 = vector.shape_cast %213 : vector<1x1x4x1xf32> to vector<4x1xf32>
    %215 = vector.shape_cast %214 : vector<4x1xf32> to vector<1x4x1xf32>
    %216 = vector.broadcast %215 : vector<1x4x1xf32> to vector<2x4x256xf32>
    %217 = arith.mulf %216, %47 : vector<2x4x256xf32>
    %218 = arith.addf %212, %217 : vector<2x4x256xf32>
    %c2_130 = arith.constant 2 : index
    %c7_131 = arith.constant 7 : index
    %c0_132 = arith.constant 0 : index
    %c0_133 = arith.constant 0 : index
    %219 = vector.load %arg3[%c2_130, %c7_131, %c0_132, %c0_133] : memref<8x9x4x1xf32, #tpu.memory_space<vmem>>, vector<1x1x4x1xf32>
    %220 = vector.shape_cast %219 : vector<1x1x4x1xf32> to vector<4x1xf32>
    %221 = vector.shape_cast %220 : vector<4x1xf32> to vector<1x4x1xf32>
    %222 = vector.broadcast %221 : vector<1x4x1xf32> to vector<2x4x256xf32>
    %223 = arith.mulf %222, %48 : vector<2x4x256xf32>
    %224 = arith.addf %218, %223 : vector<2x4x256xf32>
    %c2_134 = arith.constant 2 : index
    %c8_135 = arith.constant 8 : index
    %c0_136 = arith.constant 0 : index
    %c0_137 = arith.constant 0 : index
    %225 = vector.load %arg3[%c2_134, %c8_135, %c0_136, %c0_137] : memref<8x9x4x1xf32, #tpu.memory_space<vmem>>, vector<1x1x4x1xf32>
    %226 = vector.shape_cast %225 : vector<1x1x4x1xf32> to vector<4x1xf32>
    %227 = vector.shape_cast %226 : vector<4x1xf32> to vector<1x4x1xf32>
    %228 = vector.broadcast %227 : vector<1x4x1xf32> to vector<2x4x256xf32>
    %229 = arith.mulf %228, %53 : vector<2x4x256xf32>
    %230 = arith.addf %224, %229 : vector<2x4x256xf32>
    %cst_138 = arith.constant dense<0.000000e+00> : vector<2x256xf32>
    %231 = vector.multi_reduction <add>, %230, %cst_138 [1] : vector<2x4x256xf32> to vector<2x256xf32>
    %c2_139 = arith.constant 2 : index
    %232 = memref.load %arg4[%c2_139] : memref<8xf32, #tpu.memory_space<smem>>
    %233 = vector.broadcast %232 : f32 to vector<2x256xf32>
    %234 = arith.addf %231, %233 : vector<2x256xf32>
    %cst_140 = arith.constant 0.000000e+00 : f32
    %235 = vector.broadcast %cst_140 : f32 to vector<2x256xf32>
    %236 = arith.maximumf %234, %235 : vector<2x256xf32>
    %cst_141 = arith.constant 0.000000e+00 : f32
    %237 = vector.broadcast %cst_141 : f32 to vector<2x4x256xf32>
    %c3_142 = arith.constant 3 : index
    %c0_143 = arith.constant 0 : index
    %c0_144 = arith.constant 0 : index
    %c0_145 = arith.constant 0 : index
    %238 = vector.load %arg3[%c3_142, %c0_143, %c0_144, %c0_145] : memref<8x9x4x1xf32, #tpu.memory_space<vmem>>, vector<1x1x4x1xf32>
    %239 = vector.shape_cast %238 : vector<1x1x4x1xf32> to vector<4x1xf32>
    %240 = vector.shape_cast %239 : vector<4x1xf32> to vector<1x4x1xf32>
    %241 = vector.broadcast %240 : vector<1x4x1xf32> to vector<2x4x256xf32>
    %242 = arith.mulf %241, %25 : vector<2x4x256xf32>
    %243 = arith.addf %237, %242 : vector<2x4x256xf32>
    %c3_146 = arith.constant 3 : index
    %c1_147 = arith.constant 1 : index
    %c0_148 = arith.constant 0 : index
    %c0_149 = arith.constant 0 : index
    %244 = vector.load %arg3[%c3_146, %c1_147, %c0_148, %c0_149] : memref<8x9x4x1xf32, #tpu.memory_space<vmem>>, vector<1x1x4x1xf32>
    %245 = vector.shape_cast %244 : vector<1x1x4x1xf32> to vector<4x1xf32>
    %246 = vector.shape_cast %245 : vector<4x1xf32> to vector<1x4x1xf32>
    %247 = vector.broadcast %246 : vector<1x4x1xf32> to vector<2x4x256xf32>
    %248 = arith.mulf %247, %26 : vector<2x4x256xf32>
    %249 = arith.addf %243, %248 : vector<2x4x256xf32>
    %c3_150 = arith.constant 3 : index
    %c2_151 = arith.constant 2 : index
    %c0_152 = arith.constant 0 : index
    %c0_153 = arith.constant 0 : index
    %250 = vector.load %arg3[%c3_150, %c2_151, %c0_152, %c0_153] : memref<8x9x4x1xf32, #tpu.memory_space<vmem>>, vector<1x1x4x1xf32>
    %251 = vector.shape_cast %250 : vector<1x1x4x1xf32> to vector<4x1xf32>
    %252 = vector.shape_cast %251 : vector<4x1xf32> to vector<1x4x1xf32>
    %253 = vector.broadcast %252 : vector<1x4x1xf32> to vector<2x4x256xf32>
    %254 = arith.mulf %253, %31 : vector<2x4x256xf32>
    %255 = arith.addf %249, %254 : vector<2x4x256xf32>
    %c3_154 = arith.constant 3 : index
    %c3_155 = arith.constant 3 : index
    %c0_156 = arith.constant 0 : index
    %c0_157 = arith.constant 0 : index
    %256 = vector.load %arg3[%c3_154, %c3_155, %c0_156, %c0_157] : memref<8x9x4x1xf32, #tpu.memory_space<vmem>>, vector<1x1x4x1xf32>
    %257 = vector.shape_cast %256 : vector<1x1x4x1xf32> to vector<4x1xf32>
    %258 = vector.shape_cast %257 : vector<4x1xf32> to vector<1x4x1xf32>
    %259 = vector.broadcast %258 : vector<1x4x1xf32> to vector<2x4x256xf32>
    %260 = arith.mulf %259, %36 : vector<2x4x256xf32>
    %261 = arith.addf %255, %260 : vector<2x4x256xf32>
    %c3_158 = arith.constant 3 : index
    %c4_159 = arith.constant 4 : index
    %c0_160 = arith.constant 0 : index
    %c0_161 = arith.constant 0 : index
    %262 = vector.load %arg3[%c3_158, %c4_159, %c0_160, %c0_161] : memref<8x9x4x1xf32, #tpu.memory_space<vmem>>, vector<1x1x4x1xf32>
    %263 = vector.shape_cast %262 : vector<1x1x4x1xf32> to vector<4x1xf32>
    %264 = vector.shape_cast %263 : vector<4x1xf32> to vector<1x4x1xf32>
    %265 = vector.broadcast %264 : vector<1x4x1xf32> to vector<2x4x256xf32>
    %266 = arith.mulf %265, %37 : vector<2x4x256xf32>
    %267 = arith.addf %261, %266 : vector<2x4x256xf32>
    %c3_162 = arith.constant 3 : index
    %c5_163 = arith.constant 5 : index
    %c0_164 = arith.constant 0 : index
    %c0_165 = arith.constant 0 : index
    %268 = vector.load %arg3[%c3_162, %c5_163, %c0_164, %c0_165] : memref<8x9x4x1xf32, #tpu.memory_space<vmem>>, vector<1x1x4x1xf32>
    %269 = vector.shape_cast %268 : vector<1x1x4x1xf32> to vector<4x1xf32>
    %270 = vector.shape_cast %269 : vector<4x1xf32> to vector<1x4x1xf32>
    %271 = vector.broadcast %270 : vector<1x4x1xf32> to vector<2x4x256xf32>
    %272 = arith.mulf %271, %42 : vector<2x4x256xf32>
    %273 = arith.addf %267, %272 : vector<2x4x256xf32>
    %c3_166 = arith.constant 3 : index
    %c6_167 = arith.constant 6 : index
    %c0_168 = arith.constant 0 : index
    %c0_169 = arith.constant 0 : index
    %274 = vector.load %arg3[%c3_166, %c6_167, %c0_168, %c0_169] : memref<8x9x4x1xf32, #tpu.memory_space<vmem>>, vector<1x1x4x1xf32>
    %275 = vector.shape_cast %274 : vector<1x1x4x1xf32> to vector<4x1xf32>
    %276 = vector.shape_cast %275 : vector<4x1xf32> to vector<1x4x1xf32>
    %277 = vector.broadcast %276 : vector<1x4x1xf32> to vector<2x4x256xf32>
    %278 = arith.mulf %277, %47 : vector<2x4x256xf32>
    %279 = arith.addf %273, %278 : vector<2x4x256xf32>
    %c3_170 = arith.constant 3 : index
    %c7_171 = arith.constant 7 : index
    %c0_172 = arith.constant 0 : index
    %c0_173 = arith.constant 0 : index
    %280 = vector.load %arg3[%c3_170, %c7_171, %c0_172, %c0_173] : memref<8x9x4x1xf32, #tpu.memory_space<vmem>>, vector<1x1x4x1xf32>
    %281 = vector.shape_cast %280 : vector<1x1x4x1xf32> to vector<4x1xf32>
    %282 = vector.shape_cast %281 : vector<4x1xf32> to vector<1x4x1xf32>
    %283 = vector.broadcast %282 : vector<1x4x1xf32> to vector<2x4x256xf32>
    %284 = arith.mulf %283, %48 : vector<2x4x256xf32>
    %285 = arith.addf %279, %284 : vector<2x4x256xf32>
    %c3_174 = arith.constant 3 : index
    %c8_175 = arith.constant 8 : index
    %c0_176 = arith.constant 0 : index
    %c0_177 = arith.constant 0 : index
    %286 = vector.load %arg3[%c3_174, %c8_175, %c0_176, %c0_177] : memref<8x9x4x1xf32, #tpu.memory_space<vmem>>, vector<1x1x4x1xf32>
    %287 = vector.shape_cast %286 : vector<1x1x4x1xf32> to vector<4x1xf32>
    %288 = vector.shape_cast %287 : vector<4x1xf32> to vector<1x4x1xf32>
    %289 = vector.broadcast %288 : vector<1x4x1xf32> to vector<2x4x256xf32>
    %290 = arith.mulf %289, %53 : vector<2x4x256xf32>
    %291 = arith.addf %285, %290 : vector<2x4x256xf32>
    %cst_178 = arith.constant dense<0.000000e+00> : vector<2x256xf32>
    %292 = vector.multi_reduction <add>, %291, %cst_178 [1] : vector<2x4x256xf32> to vector<2x256xf32>
    %c3_179 = arith.constant 3 : index
    %293 = memref.load %arg4[%c3_179] : memref<8xf32, #tpu.memory_space<smem>>
    %294 = vector.broadcast %293 : f32 to vector<2x256xf32>
    %295 = arith.addf %292, %294 : vector<2x256xf32>
    %cst_180 = arith.constant 0.000000e+00 : f32
    %296 = vector.broadcast %cst_180 : f32 to vector<2x256xf32>
    %297 = arith.maximumf %295, %296 : vector<2x256xf32>
    %cst_181 = arith.constant 0.000000e+00 : f32
    %298 = vector.broadcast %cst_181 : f32 to vector<2x4x256xf32>
    %c4_182 = arith.constant 4 : index
    %c0_183 = arith.constant 0 : index
    %c0_184 = arith.constant 0 : index
    %c0_185 = arith.constant 0 : index
    %299 = vector.load %arg3[%c4_182, %c0_183, %c0_184, %c0_185] : memref<8x9x4x1xf32, #tpu.memory_space<vmem>>, vector<1x1x4x1xf32>
    %300 = vector.shape_cast %299 : vector<1x1x4x1xf32> to vector<4x1xf32>
    %301 = vector.shape_cast %300 : vector<4x1xf32> to vector<1x4x1xf32>
    %302 = vector.broadcast %301 : vector<1x4x1xf32> to vector<2x4x256xf32>
    %303 = arith.mulf %302, %25 : vector<2x4x256xf32>
    %304 = arith.addf %298, %303 : vector<2x4x256xf32>
    %c4_186 = arith.constant 4 : index
    %c1_187 = arith.constant 1 : index
    %c0_188 = arith.constant 0 : index
    %c0_189 = arith.constant 0 : index
    %305 = vector.load %arg3[%c4_186, %c1_187, %c0_188, %c0_189] : memref<8x9x4x1xf32, #tpu.memory_space<vmem>>, vector<1x1x4x1xf32>
    %306 = vector.shape_cast %305 : vector<1x1x4x1xf32> to vector<4x1xf32>
    %307 = vector.shape_cast %306 : vector<4x1xf32> to vector<1x4x1xf32>
    %308 = vector.broadcast %307 : vector<1x4x1xf32> to vector<2x4x256xf32>
    %309 = arith.mulf %308, %26 : vector<2x4x256xf32>
    %310 = arith.addf %304, %309 : vector<2x4x256xf32>
    %c4_190 = arith.constant 4 : index
    %c2_191 = arith.constant 2 : index
    %c0_192 = arith.constant 0 : index
    %c0_193 = arith.constant 0 : index
    %311 = vector.load %arg3[%c4_190, %c2_191, %c0_192, %c0_193] : memref<8x9x4x1xf32, #tpu.memory_space<vmem>>, vector<1x1x4x1xf32>
    %312 = vector.shape_cast %311 : vector<1x1x4x1xf32> to vector<4x1xf32>
    %313 = vector.shape_cast %312 : vector<4x1xf32> to vector<1x4x1xf32>
    %314 = vector.broadcast %313 : vector<1x4x1xf32> to vector<2x4x256xf32>
    %315 = arith.mulf %314, %31 : vector<2x4x256xf32>
    %316 = arith.addf %310, %315 : vector<2x4x256xf32>
    %c4_194 = arith.constant 4 : index
    %c3_195 = arith.constant 3 : index
    %c0_196 = arith.constant 0 : index
    %c0_197 = arith.constant 0 : index
    %317 = vector.load %arg3[%c4_194, %c3_195, %c0_196, %c0_197] : memref<8x9x4x1xf32, #tpu.memory_space<vmem>>, vector<1x1x4x1xf32>
    %318 = vector.shape_cast %317 : vector<1x1x4x1xf32> to vector<4x1xf32>
    %319 = vector.shape_cast %318 : vector<4x1xf32> to vector<1x4x1xf32>
    %320 = vector.broadcast %319 : vector<1x4x1xf32> to vector<2x4x256xf32>
    %321 = arith.mulf %320, %36 : vector<2x4x256xf32>
    %322 = arith.addf %316, %321 : vector<2x4x256xf32>
    %c4_198 = arith.constant 4 : index
    %c4_199 = arith.constant 4 : index
    %c0_200 = arith.constant 0 : index
    %c0_201 = arith.constant 0 : index
    %323 = vector.load %arg3[%c4_198, %c4_199, %c0_200, %c0_201] : memref<8x9x4x1xf32, #tpu.memory_space<vmem>>, vector<1x1x4x1xf32>
    %324 = vector.shape_cast %323 : vector<1x1x4x1xf32> to vector<4x1xf32>
    %325 = vector.shape_cast %324 : vector<4x1xf32> to vector<1x4x1xf32>
    %326 = vector.broadcast %325 : vector<1x4x1xf32> to vector<2x4x256xf32>
    %327 = arith.mulf %326, %37 : vector<2x4x256xf32>
    %328 = arith.addf %322, %327 : vector<2x4x256xf32>
    %c4_202 = arith.constant 4 : index
    %c5_203 = arith.constant 5 : index
    %c0_204 = arith.constant 0 : index
    %c0_205 = arith.constant 0 : index
    %329 = vector.load %arg3[%c4_202, %c5_203, %c0_204, %c0_205] : memref<8x9x4x1xf32, #tpu.memory_space<vmem>>, vector<1x1x4x1xf32>
    %330 = vector.shape_cast %329 : vector<1x1x4x1xf32> to vector<4x1xf32>
    %331 = vector.shape_cast %330 : vector<4x1xf32> to vector<1x4x1xf32>
    %332 = vector.broadcast %331 : vector<1x4x1xf32> to vector<2x4x256xf32>
    %333 = arith.mulf %332, %42 : vector<2x4x256xf32>
    %334 = arith.addf %328, %333 : vector<2x4x256xf32>
    %c4_206 = arith.constant 4 : index
    %c6_207 = arith.constant 6 : index
    %c0_208 = arith.constant 0 : index
    %c0_209 = arith.constant 0 : index
    %335 = vector.load %arg3[%c4_206, %c6_207, %c0_208, %c0_209] : memref<8x9x4x1xf32, #tpu.memory_space<vmem>>, vector<1x1x4x1xf32>
    %336 = vector.shape_cast %335 : vector<1x1x4x1xf32> to vector<4x1xf32>
    %337 = vector.shape_cast %336 : vector<4x1xf32> to vector<1x4x1xf32>
    %338 = vector.broadcast %337 : vector<1x4x1xf32> to vector<2x4x256xf32>
    %339 = arith.mulf %338, %47 : vector<2x4x256xf32>
    %340 = arith.addf %334, %339 : vector<2x4x256xf32>
    %c4_210 = arith.constant 4 : index
    %c7_211 = arith.constant 7 : index
    %c0_212 = arith.constant 0 : index
    %c0_213 = arith.constant 0 : index
    %341 = vector.load %arg3[%c4_210, %c7_211, %c0_212, %c0_213] : memref<8x9x4x1xf32, #tpu.memory_space<vmem>>, vector<1x1x4x1xf32>
    %342 = vector.shape_cast %341 : vector<1x1x4x1xf32> to vector<4x1xf32>
    %343 = vector.shape_cast %342 : vector<4x1xf32> to vector<1x4x1xf32>
    %344 = vector.broadcast %343 : vector<1x4x1xf32> to vector<2x4x256xf32>
    %345 = arith.mulf %344, %48 : vector<2x4x256xf32>
    %346 = arith.addf %340, %345 : vector<2x4x256xf32>
    %c4_214 = arith.constant 4 : index
    %c8_215 = arith.constant 8 : index
    %c0_216 = arith.constant 0 : index
    %c0_217 = arith.constant 0 : index
    %347 = vector.load %arg3[%c4_214, %c8_215, %c0_216, %c0_217] : memref<8x9x4x1xf32, #tpu.memory_space<vmem>>, vector<1x1x4x1xf32>
    %348 = vector.shape_cast %347 : vector<1x1x4x1xf32> to vector<4x1xf32>
    %349 = vector.shape_cast %348 : vector<4x1xf32> to vector<1x4x1xf32>
    %350 = vector.broadcast %349 : vector<1x4x1xf32> to vector<2x4x256xf32>
    %351 = arith.mulf %350, %53 : vector<2x4x256xf32>
    %352 = arith.addf %346, %351 : vector<2x4x256xf32>
    %cst_218 = arith.constant dense<0.000000e+00> : vector<2x256xf32>
    %353 = vector.multi_reduction <add>, %352, %cst_218 [1] : vector<2x4x256xf32> to vector<2x256xf32>
    %c4_219 = arith.constant 4 : index
    %354 = memref.load %arg4[%c4_219] : memref<8xf32, #tpu.memory_space<smem>>
    %355 = vector.broadcast %354 : f32 to vector<2x256xf32>
    %356 = arith.addf %353, %355 : vector<2x256xf32>
    %cst_220 = arith.constant 0.000000e+00 : f32
    %357 = vector.broadcast %cst_220 : f32 to vector<2x256xf32>
    %358 = arith.maximumf %356, %357 : vector<2x256xf32>
    %cst_221 = arith.constant 0.000000e+00 : f32
    %359 = vector.broadcast %cst_221 : f32 to vector<2x4x256xf32>
    %c5_222 = arith.constant 5 : index
    %c0_223 = arith.constant 0 : index
    %c0_224 = arith.constant 0 : index
    %c0_225 = arith.constant 0 : index
    %360 = vector.load %arg3[%c5_222, %c0_223, %c0_224, %c0_225] : memref<8x9x4x1xf32, #tpu.memory_space<vmem>>, vector<1x1x4x1xf32>
    %361 = vector.shape_cast %360 : vector<1x1x4x1xf32> to vector<4x1xf32>
    %362 = vector.shape_cast %361 : vector<4x1xf32> to vector<1x4x1xf32>
    %363 = vector.broadcast %362 : vector<1x4x1xf32> to vector<2x4x256xf32>
    %364 = arith.mulf %363, %25 : vector<2x4x256xf32>
    %365 = arith.addf %359, %364 : vector<2x4x256xf32>
    %c5_226 = arith.constant 5 : index
    %c1_227 = arith.constant 1 : index
    %c0_228 = arith.constant 0 : index
    %c0_229 = arith.constant 0 : index
    %366 = vector.load %arg3[%c5_226, %c1_227, %c0_228, %c0_229] : memref<8x9x4x1xf32, #tpu.memory_space<vmem>>, vector<1x1x4x1xf32>
    %367 = vector.shape_cast %366 : vector<1x1x4x1xf32> to vector<4x1xf32>
    %368 = vector.shape_cast %367 : vector<4x1xf32> to vector<1x4x1xf32>
    %369 = vector.broadcast %368 : vector<1x4x1xf32> to vector<2x4x256xf32>
    %370 = arith.mulf %369, %26 : vector<2x4x256xf32>
    %371 = arith.addf %365, %370 : vector<2x4x256xf32>
    %c5_230 = arith.constant 5 : index
    %c2_231 = arith.constant 2 : index
    %c0_232 = arith.constant 0 : index
    %c0_233 = arith.constant 0 : index
    %372 = vector.load %arg3[%c5_230, %c2_231, %c0_232, %c0_233] : memref<8x9x4x1xf32, #tpu.memory_space<vmem>>, vector<1x1x4x1xf32>
    %373 = vector.shape_cast %372 : vector<1x1x4x1xf32> to vector<4x1xf32>
    %374 = vector.shape_cast %373 : vector<4x1xf32> to vector<1x4x1xf32>
    %375 = vector.broadcast %374 : vector<1x4x1xf32> to vector<2x4x256xf32>
    %376 = arith.mulf %375, %31 : vector<2x4x256xf32>
    %377 = arith.addf %371, %376 : vector<2x4x256xf32>
    %c5_234 = arith.constant 5 : index
    %c3_235 = arith.constant 3 : index
    %c0_236 = arith.constant 0 : index
    %c0_237 = arith.constant 0 : index
    %378 = vector.load %arg3[%c5_234, %c3_235, %c0_236, %c0_237] : memref<8x9x4x1xf32, #tpu.memory_space<vmem>>, vector<1x1x4x1xf32>
    %379 = vector.shape_cast %378 : vector<1x1x4x1xf32> to vector<4x1xf32>
    %380 = vector.shape_cast %379 : vector<4x1xf32> to vector<1x4x1xf32>
    %381 = vector.broadcast %380 : vector<1x4x1xf32> to vector<2x4x256xf32>
    %382 = arith.mulf %381, %36 : vector<2x4x256xf32>
    %383 = arith.addf %377, %382 : vector<2x4x256xf32>
    %c5_238 = arith.constant 5 : index
    %c4_239 = arith.constant 4 : index
    %c0_240 = arith.constant 0 : index
    %c0_241 = arith.constant 0 : index
    %384 = vector.load %arg3[%c5_238, %c4_239, %c0_240, %c0_241] : memref<8x9x4x1xf32, #tpu.memory_space<vmem>>, vector<1x1x4x1xf32>
    %385 = vector.shape_cast %384 : vector<1x1x4x1xf32> to vector<4x1xf32>
    %386 = vector.shape_cast %385 : vector<4x1xf32> to vector<1x4x1xf32>
    %387 = vector.broadcast %386 : vector<1x4x1xf32> to vector<2x4x256xf32>
    %388 = arith.mulf %387, %37 : vector<2x4x256xf32>
    %389 = arith.addf %383, %388 : vector<2x4x256xf32>
    %c5_242 = arith.constant 5 : index
    %c5_243 = arith.constant 5 : index
    %c0_244 = arith.constant 0 : index
    %c0_245 = arith.constant 0 : index
    %390 = vector.load %arg3[%c5_242, %c5_243, %c0_244, %c0_245] : memref<8x9x4x1xf32, #tpu.memory_space<vmem>>, vector<1x1x4x1xf32>
    %391 = vector.shape_cast %390 : vector<1x1x4x1xf32> to vector<4x1xf32>
    %392 = vector.shape_cast %391 : vector<4x1xf32> to vector<1x4x1xf32>
    %393 = vector.broadcast %392 : vector<1x4x1xf32> to vector<2x4x256xf32>
    %394 = arith.mulf %393, %42 : vector<2x4x256xf32>
    %395 = arith.addf %389, %394 : vector<2x4x256xf32>
    %c5_246 = arith.constant 5 : index
    %c6_247 = arith.constant 6 : index
    %c0_248 = arith.constant 0 : index
    %c0_249 = arith.constant 0 : index
    %396 = vector.load %arg3[%c5_246, %c6_247, %c0_248, %c0_249] : memref<8x9x4x1xf32, #tpu.memory_space<vmem>>, vector<1x1x4x1xf32>
    %397 = vector.shape_cast %396 : vector<1x1x4x1xf32> to vector<4x1xf32>
    %398 = vector.shape_cast %397 : vector<4x1xf32> to vector<1x4x1xf32>
    %399 = vector.broadcast %398 : vector<1x4x1xf32> to vector<2x4x256xf32>
    %400 = arith.mulf %399, %47 : vector<2x4x256xf32>
    %401 = arith.addf %395, %400 : vector<2x4x256xf32>
    %c5_250 = arith.constant 5 : index
    %c7_251 = arith.constant 7 : index
    %c0_252 = arith.constant 0 : index
    %c0_253 = arith.constant 0 : index
    %402 = vector.load %arg3[%c5_250, %c7_251, %c0_252, %c0_253] : memref<8x9x4x1xf32, #tpu.memory_space<vmem>>, vector<1x1x4x1xf32>
    %403 = vector.shape_cast %402 : vector<1x1x4x1xf32> to vector<4x1xf32>
    %404 = vector.shape_cast %403 : vector<4x1xf32> to vector<1x4x1xf32>
    %405 = vector.broadcast %404 : vector<1x4x1xf32> to vector<2x4x256xf32>
    %406 = arith.mulf %405, %48 : vector<2x4x256xf32>
    %407 = arith.addf %401, %406 : vector<2x4x256xf32>
    %c5_254 = arith.constant 5 : index
    %c8_255 = arith.constant 8 : index
    %c0_256 = arith.constant 0 : index
    %c0_257 = arith.constant 0 : index
    %408 = vector.load %arg3[%c5_254, %c8_255, %c0_256, %c0_257] : memref<8x9x4x1xf32, #tpu.memory_space<vmem>>, vector<1x1x4x1xf32>
    %409 = vector.shape_cast %408 : vector<1x1x4x1xf32> to vector<4x1xf32>
    %410 = vector.shape_cast %409 : vector<4x1xf32> to vector<1x4x1xf32>
    %411 = vector.broadcast %410 : vector<1x4x1xf32> to vector<2x4x256xf32>
    %412 = arith.mulf %411, %53 : vector<2x4x256xf32>
    %413 = arith.addf %407, %412 : vector<2x4x256xf32>
    %cst_258 = arith.constant dense<0.000000e+00> : vector<2x256xf32>
    %414 = vector.multi_reduction <add>, %413, %cst_258 [1] : vector<2x4x256xf32> to vector<2x256xf32>
    %c5_259 = arith.constant 5 : index
    %415 = memref.load %arg4[%c5_259] : memref<8xf32, #tpu.memory_space<smem>>
    %416 = vector.broadcast %415 : f32 to vector<2x256xf32>
    %417 = arith.addf %414, %416 : vector<2x256xf32>
    %cst_260 = arith.constant 0.000000e+00 : f32
    %418 = vector.broadcast %cst_260 : f32 to vector<2x256xf32>
    %419 = arith.maximumf %417, %418 : vector<2x256xf32>
    %cst_261 = arith.constant 0.000000e+00 : f32
    %420 = vector.broadcast %cst_261 : f32 to vector<2x4x256xf32>
    %c6_262 = arith.constant 6 : index
    %c0_263 = arith.constant 0 : index
    %c0_264 = arith.constant 0 : index
    %c0_265 = arith.constant 0 : index
    %421 = vector.load %arg3[%c6_262, %c0_263, %c0_264, %c0_265] : memref<8x9x4x1xf32, #tpu.memory_space<vmem>>, vector<1x1x4x1xf32>
    %422 = vector.shape_cast %421 : vector<1x1x4x1xf32> to vector<4x1xf32>
    %423 = vector.shape_cast %422 : vector<4x1xf32> to vector<1x4x1xf32>
    %424 = vector.broadcast %423 : vector<1x4x1xf32> to vector<2x4x256xf32>
    %425 = arith.mulf %424, %25 : vector<2x4x256xf32>
    %426 = arith.addf %420, %425 : vector<2x4x256xf32>
    %c6_266 = arith.constant 6 : index
    %c1_267 = arith.constant 1 : index
    %c0_268 = arith.constant 0 : index
    %c0_269 = arith.constant 0 : index
    %427 = vector.load %arg3[%c6_266, %c1_267, %c0_268, %c0_269] : memref<8x9x4x1xf32, #tpu.memory_space<vmem>>, vector<1x1x4x1xf32>
    %428 = vector.shape_cast %427 : vector<1x1x4x1xf32> to vector<4x1xf32>
    %429 = vector.shape_cast %428 : vector<4x1xf32> to vector<1x4x1xf32>
    %430 = vector.broadcast %429 : vector<1x4x1xf32> to vector<2x4x256xf32>
    %431 = arith.mulf %430, %26 : vector<2x4x256xf32>
    %432 = arith.addf %426, %431 : vector<2x4x256xf32>
    %c6_270 = arith.constant 6 : index
    %c2_271 = arith.constant 2 : index
    %c0_272 = arith.constant 0 : index
    %c0_273 = arith.constant 0 : index
    %433 = vector.load %arg3[%c6_270, %c2_271, %c0_272, %c0_273] : memref<8x9x4x1xf32, #tpu.memory_space<vmem>>, vector<1x1x4x1xf32>
    %434 = vector.shape_cast %433 : vector<1x1x4x1xf32> to vector<4x1xf32>
    %435 = vector.shape_cast %434 : vector<4x1xf32> to vector<1x4x1xf32>
    %436 = vector.broadcast %435 : vector<1x4x1xf32> to vector<2x4x256xf32>
    %437 = arith.mulf %436, %31 : vector<2x4x256xf32>
    %438 = arith.addf %432, %437 : vector<2x4x256xf32>
    %c6_274 = arith.constant 6 : index
    %c3_275 = arith.constant 3 : index
    %c0_276 = arith.constant 0 : index
    %c0_277 = arith.constant 0 : index
    %439 = vector.load %arg3[%c6_274, %c3_275, %c0_276, %c0_277] : memref<8x9x4x1xf32, #tpu.memory_space<vmem>>, vector<1x1x4x1xf32>
    %440 = vector.shape_cast %439 : vector<1x1x4x1xf32> to vector<4x1xf32>
    %441 = vector.shape_cast %440 : vector<4x1xf32> to vector<1x4x1xf32>
    %442 = vector.broadcast %441 : vector<1x4x1xf32> to vector<2x4x256xf32>
    %443 = arith.mulf %442, %36 : vector<2x4x256xf32>
    %444 = arith.addf %438, %443 : vector<2x4x256xf32>
    %c6_278 = arith.constant 6 : index
    %c4_279 = arith.constant 4 : index
    %c0_280 = arith.constant 0 : index
    %c0_281 = arith.constant 0 : index
    %445 = vector.load %arg3[%c6_278, %c4_279, %c0_280, %c0_281] : memref<8x9x4x1xf32, #tpu.memory_space<vmem>>, vector<1x1x4x1xf32>
    %446 = vector.shape_cast %445 : vector<1x1x4x1xf32> to vector<4x1xf32>
    %447 = vector.shape_cast %446 : vector<4x1xf32> to vector<1x4x1xf32>
    %448 = vector.broadcast %447 : vector<1x4x1xf32> to vector<2x4x256xf32>
    %449 = arith.mulf %448, %37 : vector<2x4x256xf32>
    %450 = arith.addf %444, %449 : vector<2x4x256xf32>
    %c6_282 = arith.constant 6 : index
    %c5_283 = arith.constant 5 : index
    %c0_284 = arith.constant 0 : index
    %c0_285 = arith.constant 0 : index
    %451 = vector.load %arg3[%c6_282, %c5_283, %c0_284, %c0_285] : memref<8x9x4x1xf32, #tpu.memory_space<vmem>>, vector<1x1x4x1xf32>
    %452 = vector.shape_cast %451 : vector<1x1x4x1xf32> to vector<4x1xf32>
    %453 = vector.shape_cast %452 : vector<4x1xf32> to vector<1x4x1xf32>
    %454 = vector.broadcast %453 : vector<1x4x1xf32> to vector<2x4x256xf32>
    %455 = arith.mulf %454, %42 : vector<2x4x256xf32>
    %456 = arith.addf %450, %455 : vector<2x4x256xf32>
    %c6_286 = arith.constant 6 : index
    %c6_287 = arith.constant 6 : index
    %c0_288 = arith.constant 0 : index
    %c0_289 = arith.constant 0 : index
    %457 = vector.load %arg3[%c6_286, %c6_287, %c0_288, %c0_289] : memref<8x9x4x1xf32, #tpu.memory_space<vmem>>, vector<1x1x4x1xf32>
    %458 = vector.shape_cast %457 : vector<1x1x4x1xf32> to vector<4x1xf32>
    %459 = vector.shape_cast %458 : vector<4x1xf32> to vector<1x4x1xf32>
    %460 = vector.broadcast %459 : vector<1x4x1xf32> to vector<2x4x256xf32>
    %461 = arith.mulf %460, %47 : vector<2x4x256xf32>
    %462 = arith.addf %456, %461 : vector<2x4x256xf32>
    %c6_290 = arith.constant 6 : index
    %c7_291 = arith.constant 7 : index
    %c0_292 = arith.constant 0 : index
    %c0_293 = arith.constant 0 : index
    %463 = vector.load %arg3[%c6_290, %c7_291, %c0_292, %c0_293] : memref<8x9x4x1xf32, #tpu.memory_space<vmem>>, vector<1x1x4x1xf32>
    %464 = vector.shape_cast %463 : vector<1x1x4x1xf32> to vector<4x1xf32>
    %465 = vector.shape_cast %464 : vector<4x1xf32> to vector<1x4x1xf32>
    %466 = vector.broadcast %465 : vector<1x4x1xf32> to vector<2x4x256xf32>
    %467 = arith.mulf %466, %48 : vector<2x4x256xf32>
    %468 = arith.addf %462, %467 : vector<2x4x256xf32>
    %c6_294 = arith.constant 6 : index
    %c8_295 = arith.constant 8 : index
    %c0_296 = arith.constant 0 : index
    %c0_297 = arith.constant 0 : index
    %469 = vector.load %arg3[%c6_294, %c8_295, %c0_296, %c0_297] : memref<8x9x4x1xf32, #tpu.memory_space<vmem>>, vector<1x1x4x1xf32>
    %470 = vector.shape_cast %469 : vector<1x1x4x1xf32> to vector<4x1xf32>
    %471 = vector.shape_cast %470 : vector<4x1xf32> to vector<1x4x1xf32>
    %472 = vector.broadcast %471 : vector<1x4x1xf32> to vector<2x4x256xf32>
    %473 = arith.mulf %472, %53 : vector<2x4x256xf32>
    %474 = arith.addf %468, %473 : vector<2x4x256xf32>
    %cst_298 = arith.constant dense<0.000000e+00> : vector<2x256xf32>
    %475 = vector.multi_reduction <add>, %474, %cst_298 [1] : vector<2x4x256xf32> to vector<2x256xf32>
    %c6_299 = arith.constant 6 : index
    %476 = memref.load %arg4[%c6_299] : memref<8xf32, #tpu.memory_space<smem>>
    %477 = vector.broadcast %476 : f32 to vector<2x256xf32>
    %478 = arith.addf %475, %477 : vector<2x256xf32>
    %cst_300 = arith.constant 0.000000e+00 : f32
    %479 = vector.broadcast %cst_300 : f32 to vector<2x256xf32>
    %480 = arith.maximumf %478, %479 : vector<2x256xf32>
    %cst_301 = arith.constant 0.000000e+00 : f32
    %481 = vector.broadcast %cst_301 : f32 to vector<2x4x256xf32>
    %c7_302 = arith.constant 7 : index
    %c0_303 = arith.constant 0 : index
    %c0_304 = arith.constant 0 : index
    %c0_305 = arith.constant 0 : index
    %482 = vector.load %arg3[%c7_302, %c0_303, %c0_304, %c0_305] : memref<8x9x4x1xf32, #tpu.memory_space<vmem>>, vector<1x1x4x1xf32>
    %483 = vector.shape_cast %482 : vector<1x1x4x1xf32> to vector<4x1xf32>
    %484 = vector.shape_cast %483 : vector<4x1xf32> to vector<1x4x1xf32>
    %485 = vector.broadcast %484 : vector<1x4x1xf32> to vector<2x4x256xf32>
    %486 = arith.mulf %485, %25 : vector<2x4x256xf32>
    %487 = arith.addf %481, %486 : vector<2x4x256xf32>
    %c7_306 = arith.constant 7 : index
    %c1_307 = arith.constant 1 : index
    %c0_308 = arith.constant 0 : index
    %c0_309 = arith.constant 0 : index
    %488 = vector.load %arg3[%c7_306, %c1_307, %c0_308, %c0_309] : memref<8x9x4x1xf32, #tpu.memory_space<vmem>>, vector<1x1x4x1xf32>
    %489 = vector.shape_cast %488 : vector<1x1x4x1xf32> to vector<4x1xf32>
    %490 = vector.shape_cast %489 : vector<4x1xf32> to vector<1x4x1xf32>
    %491 = vector.broadcast %490 : vector<1x4x1xf32> to vector<2x4x256xf32>
    %492 = arith.mulf %491, %26 : vector<2x4x256xf32>
    %493 = arith.addf %487, %492 : vector<2x4x256xf32>
    %c7_310 = arith.constant 7 : index
    %c2_311 = arith.constant 2 : index
    %c0_312 = arith.constant 0 : index
    %c0_313 = arith.constant 0 : index
    %494 = vector.load %arg3[%c7_310, %c2_311, %c0_312, %c0_313] : memref<8x9x4x1xf32, #tpu.memory_space<vmem>>, vector<1x1x4x1xf32>
    %495 = vector.shape_cast %494 : vector<1x1x4x1xf32> to vector<4x1xf32>
    %496 = vector.shape_cast %495 : vector<4x1xf32> to vector<1x4x1xf32>
    %497 = vector.broadcast %496 : vector<1x4x1xf32> to vector<2x4x256xf32>
    %498 = arith.mulf %497, %31 : vector<2x4x256xf32>
    %499 = arith.addf %493, %498 : vector<2x4x256xf32>
    %c7_314 = arith.constant 7 : index
    %c3_315 = arith.constant 3 : index
    %c0_316 = arith.constant 0 : index
    %c0_317 = arith.constant 0 : index
    %500 = vector.load %arg3[%c7_314, %c3_315, %c0_316, %c0_317] : memref<8x9x4x1xf32, #tpu.memory_space<vmem>>, vector<1x1x4x1xf32>
    %501 = vector.shape_cast %500 : vector<1x1x4x1xf32> to vector<4x1xf32>
    %502 = vector.shape_cast %501 : vector<4x1xf32> to vector<1x4x1xf32>
    %503 = vector.broadcast %502 : vector<1x4x1xf32> to vector<2x4x256xf32>
    %504 = arith.mulf %503, %36 : vector<2x4x256xf32>
    %505 = arith.addf %499, %504 : vector<2x4x256xf32>
    %c7_318 = arith.constant 7 : index
    %c4_319 = arith.constant 4 : index
    %c0_320 = arith.constant 0 : index
    %c0_321 = arith.constant 0 : index
    %506 = vector.load %arg3[%c7_318, %c4_319, %c0_320, %c0_321] : memref<8x9x4x1xf32, #tpu.memory_space<vmem>>, vector<1x1x4x1xf32>
    %507 = vector.shape_cast %506 : vector<1x1x4x1xf32> to vector<4x1xf32>
    %508 = vector.shape_cast %507 : vector<4x1xf32> to vector<1x4x1xf32>
    %509 = vector.broadcast %508 : vector<1x4x1xf32> to vector<2x4x256xf32>
    %510 = arith.mulf %509, %37 : vector<2x4x256xf32>
    %511 = arith.addf %505, %510 : vector<2x4x256xf32>
    %c7_322 = arith.constant 7 : index
    %c5_323 = arith.constant 5 : index
    %c0_324 = arith.constant 0 : index
    %c0_325 = arith.constant 0 : index
    %512 = vector.load %arg3[%c7_322, %c5_323, %c0_324, %c0_325] : memref<8x9x4x1xf32, #tpu.memory_space<vmem>>, vector<1x1x4x1xf32>
    %513 = vector.shape_cast %512 : vector<1x1x4x1xf32> to vector<4x1xf32>
    %514 = vector.shape_cast %513 : vector<4x1xf32> to vector<1x4x1xf32>
    %515 = vector.broadcast %514 : vector<1x4x1xf32> to vector<2x4x256xf32>
    %516 = arith.mulf %515, %42 : vector<2x4x256xf32>
    %517 = arith.addf %511, %516 : vector<2x4x256xf32>
    %c7_326 = arith.constant 7 : index
    %c6_327 = arith.constant 6 : index
    %c0_328 = arith.constant 0 : index
    %c0_329 = arith.constant 0 : index
    %518 = vector.load %arg3[%c7_326, %c6_327, %c0_328, %c0_329] : memref<8x9x4x1xf32, #tpu.memory_space<vmem>>, vector<1x1x4x1xf32>
    %519 = vector.shape_cast %518 : vector<1x1x4x1xf32> to vector<4x1xf32>
    %520 = vector.shape_cast %519 : vector<4x1xf32> to vector<1x4x1xf32>
    %521 = vector.broadcast %520 : vector<1x4x1xf32> to vector<2x4x256xf32>
    %522 = arith.mulf %521, %47 : vector<2x4x256xf32>
    %523 = arith.addf %517, %522 : vector<2x4x256xf32>
    %c7_330 = arith.constant 7 : index
    %c7_331 = arith.constant 7 : index
    %c0_332 = arith.constant 0 : index
    %c0_333 = arith.constant 0 : index
    %524 = vector.load %arg3[%c7_330, %c7_331, %c0_332, %c0_333] : memref<8x9x4x1xf32, #tpu.memory_space<vmem>>, vector<1x1x4x1xf32>
    %525 = vector.shape_cast %524 : vector<1x1x4x1xf32> to vector<4x1xf32>
    %526 = vector.shape_cast %525 : vector<4x1xf32> to vector<1x4x1xf32>
    %527 = vector.broadcast %526 : vector<1x4x1xf32> to vector<2x4x256xf32>
    %528 = arith.mulf %527, %48 : vector<2x4x256xf32>
    %529 = arith.addf %523, %528 : vector<2x4x256xf32>
    %c7_334 = arith.constant 7 : index
    %c8_335 = arith.constant 8 : index
    %c0_336 = arith.constant 0 : index
    %c0_337 = arith.constant 0 : index
    %530 = vector.load %arg3[%c7_334, %c8_335, %c0_336, %c0_337] : memref<8x9x4x1xf32, #tpu.memory_space<vmem>>, vector<1x1x4x1xf32>
    %531 = vector.shape_cast %530 : vector<1x1x4x1xf32> to vector<4x1xf32>
    %532 = vector.shape_cast %531 : vector<4x1xf32> to vector<1x4x1xf32>
    %533 = vector.broadcast %532 : vector<1x4x1xf32> to vector<2x4x256xf32>
    %534 = arith.mulf %533, %53 : vector<2x4x256xf32>
    %535 = arith.addf %529, %534 : vector<2x4x256xf32>
    %cst_338 = arith.constant dense<0.000000e+00> : vector<2x256xf32>
    %536 = vector.multi_reduction <add>, %535, %cst_338 [1] : vector<2x4x256xf32> to vector<2x256xf32>
    %c7_339 = arith.constant 7 : index
    %537 = memref.load %arg4[%c7_339] : memref<8xf32, #tpu.memory_space<smem>>
    %538 = vector.broadcast %537 : f32 to vector<2x256xf32>
    %539 = arith.addf %536, %538 : vector<2x256xf32>
    %cst_340 = arith.constant 0.000000e+00 : f32
    %540 = vector.broadcast %cst_340 : f32 to vector<2x256xf32>
    %541 = arith.maximumf %539, %540 : vector<2x256xf32>
    %542 = tpu.concatenate %114, %175, %236, %297, %358, %419, %480, %541 in 1 : vector<2x256xf32>, vector<2x256xf32>, vector<2x256xf32>, vector<2x256xf32>, vector<2x256xf32>, vector<2x256xf32>, vector<2x256xf32>, vector<2x256xf32> -> vector<2x2048xf32>
    %543 = arith.truncf %542 : vector<2x2048xf32> to vector<2x2048xbf16>
    %c0_341 = arith.constant 0 : index
    %c0_342 = arith.constant 0 : index
    %544 = vector.load %arg5[%c0_341, %c0_342] : memref<2048x256xbf16, #tpu.memory_space<vmem>>, vector<2048x256xbf16>
    %cst_343 = arith.constant dense<0.000000e+00> : vector<2x256xf32>
    %545 = tpu.matmul %543, %544, %cst_343 {dimension_numbers = #tpu.dot_dimension_numbers<[1], [0], [0], [1], [0, 0, 1, 1], [], []>} : vector<2x2048xbf16>, vector<2048x256xbf16>, vector<2x256xf32> -> vector<2x256xf32>
    %c0_344 = arith.constant 0 : index
    %c0_345 = arith.constant 0 : index
    %546 = vector.load %arg6[%c0_344, %c0_345] : memref<1x256xf32, #tpu.memory_space<vmem>>, vector<1x256xf32>
    %547 = vector.broadcast %546 : vector<1x256xf32> to vector<2x256xf32>
    %548 = arith.addf %545, %547 : vector<2x256xf32>
    %cst_346 = arith.constant 0.000000e+00 : f32
    %549 = vector.broadcast %cst_346 : f32 to vector<2x256xf32>
    %550 = arith.maximumf %548, %549 : vector<2x256xf32>
    %c0_347 = arith.constant 0 : index
    %c0_348 = arith.constant 0 : index
    %551 = vector.load %arg7[%c0_347, %c0_348] : memref<2x256xf32, #tpu.memory_space<vmem>>, vector<2x256xf32>
    tpu.vector_store %arg7[%c0_347, %c0_348], %550 {strides = array<i32>} : memref<2x256xf32, #tpu.memory_space<vmem>>, vector<2x256xf32>,
    return
  }
  func.func @transform_0(%arg0: i32, %arg1: i32) -> (i32, i32, i32) {
    %c0_i32 = arith.constant 0 : i32
    %c0_i32_0 = arith.constant 0 : i32
    %c0_i32_1 = arith.constant 0 : i32
    return %arg0, %c0_i32, %c0_i32_0 : i32, i32, i32
  }
  func.func @transform_1(%arg0: i32, %arg1: i32) -> (i32, i32, i32, i32) {
    %c0_i32 = arith.constant 0 : i32
    %c0_i32_0 = arith.constant 0 : i32
    %c0_i32_1 = arith.constant 0 : i32
    %c0_i32_2 = arith.constant 0 : i32
    %c0_i32_3 = arith.constant 0 : i32
    return %c0_i32, %c0_i32_0, %c0_i32_1, %c0_i32_2 : i32, i32, i32, i32
  }
  func.func @transform_2(%arg0: i32, %arg1: i32) -> i32 {
    %c0_i32 = arith.constant 0 : i32
    %c0_i32_0 = arith.constant 0 : i32
    return %c0_i32 : i32
  }
  func.func @transform_3(%arg0: i32, %arg1: i32) -> (i32, i32) {
    %c0_i32 = arith.constant 0 : i32
    %c0_i32_0 = arith.constant 0 : i32
    return %c0_i32, %arg1 : i32, i32
  }
  func.func @transform_4(%arg0: i32, %arg1: i32) -> (i32, i32) {
    %c0_i32 = arith.constant 0 : i32
    %c0_i32_0 = arith.constant 0 : i32
    return %c0_i32, %arg1 : i32, i32
  }
  func.func @transform_5(%arg0: i32, %arg1: i32) -> (i32, i32) {
    %c0_i32 = arith.constant 0 : i32
    return %arg0, %arg1 : i32, i32
  }
}

</mosaic_0001>

<bundles_post_ra>
// kernel: gaze_forward.1
= control target key start
LH: loop header
LB: loop body
LE: loop exit
PB: predicated region body
PF: predicated region fallthrough
CT: control target
= control target key end

     0   :  { %10 = vsyncpa [#allocation3], 0  ;;  %s6013_s18 = smov 0   ;;  %s6015_s19 = smov 0   ;;  %s8228_s0 = inlined_call_operand.vmem [shape: f32[2,4,290], index: 0, kind: input, shape index: {}]   ;;  %s8229_s1 = inlined_call_operand.vmem [shape: f32[8,9,4,1], index: 1, kind: input, shape index: {}]   ;;  %s8230_s2 = inlined_call_operand.vmem [shape: f32[8], index: 2, kind: input, shape index: {}]   ;;  %s8231_s3 = inlined_call_operand.vmem [shape: bf16[2048,512], index: 3, kind: input, shape index: {}]   ;;  %s8232_s4 = inlined_call_operand.vmem [shape: f32[1,512], index: 4, kind: input, shape index: {}]   ;;  %s8233_s5 = inlined_call_operand.vmem [shape: f32[2,512], index: 5, kind: output, shape index: {}]  }
   0x1   :  { %s6017_s20 = smov 0   ;;  %s6019_s21 = smov 0  }
   0x2   :  { %s6021_s22 = smov 0  }
   0x3 LB: > { %s5083_s23 = sadd.s32 4294967295, %s5971_s22   ;;  %s25_s24 = sadd.s32 1, %s5967_s21  ;;  %s5971_s22 = sphi %s6021_s22, %s16_s22   ;;  %s5967_s21 = sphi %s6019_s21, %s8473_s21   ;;  %s5963_s20 = sphi %s6017_s20, %s8472_s20   ;;  %s5959_s19 = sphi %s6015_s19, %s8471_s19   ;;  %s5955_s18 = sphi %s6013_s18, %s8470_s18  }
   0x4   : > { %p26_p0 = scmp.ge.s32.totalorder %s25_s24, 2  ;;  %s103_s25 = sadd.s32 1, %s5959_s19 }
   0x5   : > { %p110_p1 = scmp.ne.s32.totalorder %s5959_s19, %s5955_s18  ;;  %p111_p2 = scmp.eq.s32.totalorder %s5971_s22, 0 }
   0x6   : > { %s8475_s24 = smov (%p26_p0, %s25_s24), 0  ;;  %p5085_p4 = scmp.ge.s32.totalorder %s5971_s22, 1 }
   0x7   : > { %p6046_p3 = por %p111_p2, %p110_p1  ;;  %s100_s27 = ssub.s32 %s5967_s21, %s8475_s24 }
   0x8   : > { %p181_p5 = scmp.lt.s32.totalorder %s5971_s22, 3  ;;  %p101_p6 = scmp.eq.s32.totalorder %s100_s27, 0 }
   0x9   : > { %p6058_p8 = scmp.eq.s32.totalorder %s5083_s23, 0  ;;  %s207_s8 = sshll.u32 %s8230_s2, 4  ;;  %s208_s8 = int_to_ptr.vmem [resolvable:$true] %s207_s8 }
   0xa   : > { %p6054_p7 = pnand %p5085_p4, %p181_p5  ;;  %s5914_s9 = scalar_lea.vmem %s208_s8, 16 }
   0xb   : > { %s6063_s30 = scalar_select %p101_p6, %s5959_s19, %s103_s25  }
   0xc   : > { %p5468_p9 = pneg %p6054_p7  ;;  %p5915_p11 = scmp.ne.s32.totalorder %s208_s8, %s5914_s9 }
   0xd   : > { %p5922_p1 = scmp.lt.s32.totalorder %s208_s8, %s208_s8  ;;  %p5923_p2 = scmp.lt.s32.totalorder %s5914_s9, %s5914_s9 }
   0xe   : > { %p5469_p10 = pnand %p6058_p8, %p5468_p9 }
   0xf   : > { %p5924_p4 = por %p5923_p2, %p5922_p1 }
  0x10   : > { %p5916_p12 = pneg %p5469_p10 }
  0x12   : > { %p5917_p13 = pnand %p5916_p12, %p5915_p11 }
  0x14   : > { %p5918_p0 = pneg %p5917_p13 }
  0x16   : > { %p5925_p5 = pnand %p5924_p4, %p5918_p0 }
  0x18   : > { %5928 = shalt.err (!%p5925_p5)
}
  0x19   : > { %s5973_s10 = smov [#allocation2]   ;;  %p5088_p6 = scmp.ge.s32.totalorder %s5971_s22, 2 }
  0x1a   : > { %5471 = dma.vmem_to_smem (!%p5469_p10), %s208_s8, 16, %s5973_s10, [#allocation3]  }
  0x1b   : > { %214 = sbr.rel (%p5088_p6) target bundleno = 166 (0xa6), region = 28 }
  0x22   : > { %217 = sbr.rel (!%p6046_p3) target bundleno = 166 (0xa6), region = 32  ;;  %s219_s11 = sand.u32 (%p6046_p3), 1, %s5959_s19  }
  0x23   : > { %s5435_s12 = sshll.u32 (%p6046_p3), %s5967_s21, 3  ;;  %s5089_s13 = sshll.u32 (%p6046_p3), %s219_s11, 11 }
  0x24   : > { %s6080_s16 = scalar_lea.vmem (%p6046_p3), %s8231_s3, %s5435_s12  ;;  %s6085_s17 = scalar_lea.vmem (%p6046_p3), [#allocation4], %s5089_s13 }
  0x25   : > { %v762_v0 = vld [vmem:[%s6080_s16] sm:$0xff] (%p6046_p3)  ;;  %v764_v1 = vld [vmem:[%s6080_s16 + $0x10] sm:$0xff] (%p6046_p3) }
  0x26   : > { %v766_v2 = vld [vmem:[%s6080_s16 + $0x20] sm:$0xff] (%p6046_p3)  ;;  %763 = vst [vmem:[%s6085_s17] sm:$0xff] (%p6046_p3), %v762_v0  ;;  %765 = vst [vmem:[%s6085_s17 + $0x8] sm:$0xff] (%p6046_p3), %v764_v1  ;;  %v768_v3 = vld [vmem:[%s6080_s16 + $0x30] sm:$0xff] (%p6046_p3) }
  0x27   : > { %767 = vst [vmem:[%s6085_s17 + $0x10] sm:$0xff] (%p6046_p3), %v766_v2  ;;  %v770_v4 = vld [vmem:[%s6080_s16 + $0x40] sm:$0xff] (%p6046_p3)  ;;  %v772_v5 = vld [vmem:[%s6080_s16 + $0x50] sm:$0xff] (%p6046_p3)  ;;  %769 = vst [vmem:[%s6085_s17 + $0x18] sm:$0xff] (%p6046_p3), %v768_v3 }
  0x28   : > { %771 = vst [vmem:[%s6085_s17 + $0x20] sm:$0xff] (%p6046_p3), %v770_v4  ;;  %773 = vst [vmem:[%s6085_s17 + $0x28] sm:$0xff] (%p6046_p3), %v772_v5  ;;  %v774_v6 = vld [vmem:[%s6080_s16 + $0x60] sm:$0xff] (%p6046_p3)  ;;  %v776_v7 = vld [vmem:[%s6080_s16 + $0x70] sm:$0xff] (%p6046_p3) }
  0x29   : > { %v778_v8 = vld [vmem:[%s6080_s16 + $0x80] sm:$0xff]  ;;  %775 = vst [vmem:[%s6085_s17 + $0x30] sm:$0xff] %v774_v6  ;;  %777 = vst [vmem:[%s6085_s17 + $0x38] sm:$0xff] %v776_v7  ;;  %v780_v9 = vld [vmem:[%s6080_s16 + $0x90] sm:$0xff] }
  0x2a   : > { %779 = vst [vmem:[%s6085_s17 + $0x40] sm:$0xff] %v778_v8  ;;  %v782_v10 = vld [vmem:[%s6080_s16 + $0xa0] sm:$0xff]  ;;  %v784_v11 = vld [vmem:[%s6080_s16 + $0xb0] sm:$0xff]  ;;  %781 = vst [vmem:[%s6085_s17 + $0x48] sm:$0xff] %v780_v9 }
  0x2b   : > { %783 = vst [vmem:[%s6085_s17 + $0x50] sm:$0xff] %v782_v10  ;;  %785 = vst [vmem:[%s6085_s17 + $0x58] sm:$0xff] %v784_v11  ;;  %v786_v12 = vld [vmem:[%s6080_s16 + $0xc0] sm:$0xff]  ;;  %v788_v13 = vld [vmem:[%s6080_s16 + $0xd0] sm:$0xff] }
  0x2c   : > { %v790_v14 = vld [vmem:[%s6080_s16 + $0xe0] sm:$0xff]  ;;  %787 = vst [vmem:[%s6085_s17 + $0x60] sm:$0xff] %v786_v12  ;;  %789 = vst [vmem:[%s6085_s17 + $0x68] sm:$0xff] %v788_v13  ;;  %v792_v15 = vld [vmem:[%s6080_s16 + $0xf0] sm:$0xff] }
  0x2d   : > { %791 = vst [vmem:[%s6085_s17 + $0x70] sm:$0xff] %v790_v14  ;;  %v794_v16 = vld [vmem:[%s6080_s16 + $0x100] sm:$0xff]  ;;  %v796_v17 = vld [vmem:[%s6080_s16 + $0x110] sm:$0xff]  ;;  %793 = vst [vmem:[%s6085_s17 + $0x78] sm:$0xff] %v792_v15 }
  0x2e   : > { %795 = vst [vmem:[%s6085_s17 + $0x80] sm:$0xff] %v794_v16  ;;  %797 = vst [vmem:[%s6085_s17 + $0x88] sm:$0xff] %v796_v17  ;;  %v798_v18 = vld [vmem:[%s6080_s16 + $0x120] sm:$0xff]  ;;  %v800_v19 = vld [vmem:[%s6080_s16 + $0x130] sm:$0xff] }
  0x2f   : > { %v802_v20 = vld [vmem:[%s6080_s16 + $0x140] sm:$0xff]  ;;  %799 = vst [vmem:[%s6085_s17 + $0x90] sm:$0xff] %v798_v18  ;;  %801 = vst [vmem:[%s6085_s17 + $0x98] sm:$0xff] %v800_v19  ;;  %v804_v21 = vld [vmem:[%s6080_s16 + $0x150] sm:$0xff] }
  0x30   : > { %803 = vst [vmem:[%s6085_s17 + $0xa0] sm:$0xff] %v802_v20  ;;  %v806_v22 = vld [vmem:[%s6080_s16 + $0x160] sm:$0xff]  ;;  %v808_v23 = vld [vmem:[%s6080_s16 + $0x170] sm:$0xff]  ;;  %805 = vst [vmem:[%s6085_s17 + $0xa8] sm:$0xff] %v804_v21 }
  0x31   : > { %807 = vst [vmem:[%s6085_s17 + $0xb0] sm:$0xff] %v806_v22  ;;  %809 = vst [vmem:[%s6085_s17 + $0xb8] sm:$0xff] %v808_v23  ;;  %v810_v24 = vld [vmem:[%s6080_s16 + $0x180] sm:$0xff]  ;;  %v812_v25 = vld [vmem:[%s6080_s16 + $0x190] sm:$0xff] }
  0x32   : > { %v814_v26 = vld [vmem:[%s6080_s16 + $0x1a0] sm:$0xff]  ;;  %811 = vst [vmem:[%s6085_s17 + $0xc0] sm:$0xff] %v810_v24  ;;  %813 = vst [vmem:[%s6085_s17 + $0xc8] sm:$0xff] %v812_v25  ;;  %v816_v27 = vld [vmem:[%s6080_s16 + $0x1b0] sm:$0xff] }
  0x33   : > { %815 = vst [vmem:[%s6085_s17 + $0xd0] sm:$0xff] %v814_v26  ;;  %v818_v28 = vld [vmem:[%s6080_s16 + $0x1c0] sm:$0xff]  ;;  %v820_v29 = vld [vmem:[%s6080_s16 + $0x1d0] sm:$0xff]  ;;  %817 = vst [vmem:[%s6085_s17 + $0xd8] sm:$0xff] %v816_v27 }
  0x34   : > { %819 = vst [vmem:[%s6085_s17 + $0xe0] sm:$0xff] %v818_v28  ;;  %821 = vst [vmem:[%s6085_s17 + $0xe8] sm:$0xff] %v820_v29  ;;  %v822_v30 = vld [vmem:[%s6080_s16 + $0x1e0] sm:$0xff]  ;;  %v824_v31 = vld [vmem:[%s6080_s16 + $0x1f0] sm:$0xff] }
  0x35   : > { %v826_v32 = vld [vmem:[%s6080_s16 + $0x200] sm:$0xff]  ;;  %823 = vst [vmem:[%s6085_s17 + $0xf0] sm:$0xff] %v822_v30  ;;  %825 = vst [vmem:[%s6085_s17 + $0xf8] sm:$0xff] %v824_v31  ;;  %v828_v33 = vld [vmem:[%s6080_s16 + $0x210] sm:$0xff] }
  0x36   : > { %827 = vst [vmem:[%s6085_s17 + $0x100] sm:$0xff] %v826_v32  ;;  %v830_v34 = vld [vmem:[%s6080_s16 + $0x220] sm:$0xff]  ;;  %v832_v35 = vld [vmem:[%s6080_s16 + $0x230] sm:$0xff]  ;;  %829 = vst [vmem:[%s6085_s17 + $0x108] sm:$0xff] %v828_v33 }
  0x37   : > { %831 = vst [vmem:[%s6085_s17 + $0x110] sm:$0xff] %v830_v34  ;;  %833 = vst [vmem:[%s6085_s17 + $0x118] sm:$0xff] %v832_v35  ;;  %v834_v36 = vld [vmem:[%s6080_s16 + $0x240] sm:$0xff]  ;;  %v836_v37 = vld [vmem:[%s6080_s16 + $0x250] sm:$0xff] }
  0x38   : > { %v838_v38 = vld [vmem:[%s6080_s16 + $0x260] sm:$0xff]  ;;  %835 = vst [vmem:[%s6085_s17 + $0x120] sm:$0xff] %v834_v36  ;;  %837 = vst [vmem:[%s6085_s17 + $0x128] sm:$0xff] %v836_v37  ;;  %v840_v39 = vld [vmem:[%s6080_s16 + $0x270] sm:$0xff] }
  0x39   : > { %839 = vst [vmem:[%s6085_s17 + $0x130] sm:$0xff] %v838_v38  ;;  %v842_v40 = vld [vmem:[%s6080_s16 + $0x280] sm:$0xff]  ;;  %v844_v41 = vld [vmem:[%s6080_s16 + $0x290] sm:$0xff]  ;;  %841 = vst [vmem:[%s6085_s17 + $0x138] sm:$0xff] %v840_v39 }
  0x3a   : > { %843 = vst [vmem:[%s6085_s17 + $0x140] sm:$0xff] %v842_v40  ;;  %845 = vst [vmem:[%s6085_s17 + $0x148] sm:$0xff] %v844_v41  ;;  %v846_v42 = vld [vmem:[%s6080_s16 + $0x2a0] sm:$0xff]  ;;  %v848_v43 = vld [vmem:[%s6080_s16 + $0x2b0] sm:$0xff] }
  0x3b   : > { %v850_v44 = vld [vmem:[%s6080_s16 + $0x2c0] sm:$0xff]  ;;  %847 = vst [vmem:[%s6085_s17 + $0x150] sm:$0xff] %v846_v42  ;;  %849 = vst [vmem:[%s6085_s17 + $0x158] sm:$0xff] %v848_v43  ;;  %v852_v45 = vld [vmem:[%s6080_s16 + $0x2d0] sm:$0xff] }
  0x3c   : > { %851 = vst [vmem:[%s6085_s17 + $0x160] sm:$0xff] %v850_v44  ;;  %v854_v46 = vld [vmem:[%s6080_s16 + $0x2e0] sm:$0xff]  ;;  %v856_v47 = vld [vmem:[%s6080_s16 + $0x2f0] sm:$0xff]  ;;  %853 = vst [vmem:[%s6085_s17 + $0x168] sm:$0xff] %v852_v45 }
  0x3d   : > { %855 = vst [vmem:[%s6085_s17 + $0x170] sm:$0xff] %v854_v46  ;;  %857 = vst [vmem:[%s6085_s17 + $0x178] sm:$0xff] %v856_v47  ;;  %v858_v48 = vld [vmem:[%s6080_s16 + $0x300] sm:$0xff]  ;;  %v860_v49 = vld [vmem:[%s6080_s16 + $0x310] sm:$0xff] }
  0x3e   : > { %v862_v50 = vld [vmem:[%s6080_s16 + $0x320] sm:$0xff]  ;;  %859 = vst [vmem:[%s6085_s17 + $0x180] sm:$0xff] %v858_v48  ;;  %861 = vst [vmem:[%s6085_s17 + $0x188] sm:$0xff] %v860_v49  ;;  %v864_v51 = vld [vmem:[%s6080_s16 + $0x330] sm:$0xff] }
  0x3f   : > { %863 = vst [vmem:[%s6085_s17 + $0x190] sm:$0xff] %v862_v50  ;;  %v866_v52 = vld [vmem:[%s6080_s16 + $0x340] sm:$0xff]  ;;  %v868_v53 = vld [vmem:[%s6080_s16 + $0x350] sm:$0xff]  ;;  %865 = vst [vmem:[%s6085_s17 + $0x198] sm:$0xff] %v864_v51 }
  0x40   : > { %867 = vst [vmem:[%s6085_s17 + $0x1a0] sm:$0xff] %v866_v52  ;;  %869 = vst [vmem:[%s6085_s17 + $0x1a8] sm:$0xff] %v868_v53  ;;  %v870_v54 = vld [vmem:[%s6080_s16 + $0x360] sm:$0xff]  ;;  %v872_v55 = vld [vmem:[%s6080_s16 + $0x370] sm:$0xff] }
  0x41   : > { %v874_v56 = vld [vmem:[%s6080_s16 + $0x380] sm:$0xff]  ;;  %871 = vst [vmem:[%s6085_s17 + $0x1b0] sm:$0xff] %v870_v54  ;;  %873 = vst [vmem:[%s6085_s17 + $0x1b8] sm:$0xff] %v872_v55  ;;  %v876_v57 = vld [vmem:[%s6080_s16 + $0x390] sm:$0xff] }
  0x42   : > { %875 = vst [vmem:[%s6085_s17 + $0x1c0] sm:$0xff] %v874_v56  ;;  %v878_v58 = vld [vmem:[%s6080_s16 + $0x3a0] sm:$0xff]  ;;  %v880_v59 = vld [vmem:[%s6080_s16 + $0x3b0] sm:$0xff]  ;;  %877 = vst [vmem:[%s6085_s17 + $0x1c8] sm:$0xff] %v876_v57 }
  0x43   : > { %879 = vst [vmem:[%s6085_s17 + $0x1d0] sm:$0xff] %v878_v58  ;;  %881 = vst [vmem:[%s6085_s17 + $0x1d8] sm:$0xff] %v880_v59  ;;  %v882_v60 = vld [vmem:[%s6080_s16 + $0x3c0] sm:$0xff]  ;;  %v884_v61 = vld [vmem:[%s6080_s16 + $0x3d0] sm:$0xff] }
  0x44   : > { %v886_v62 = vld [vmem:[%s6080_s16 + $0x3e0] sm:$0xff]  ;;  %883 = vst [vmem:[%s6085_s17 + $0x1e0] sm:$0xff] %v882_v60  ;;  %885 = vst [vmem:[%s6085_s17 + $0x1e8] sm:$0xff] %v884_v61  ;;  %v888_v63 = vld [vmem:[%s6080_s16 + $0x3f0] sm:$0xff] }
  0x45   : > { %887 = vst [vmem:[%s6085_s17 + $0x1f0] sm:$0xff] %v886_v62  ;;  %v890_v0 = vld [vmem:[%s6080_s16 + $0x400] sm:$0xff]  ;;  %v892_v1 = vld [vmem:[%s6080_s16 + $0x410] sm:$0xff]  ;;  %889 = vst [vmem:[%s6085_s17 + $0x1f8] sm:$0xff] %v888_v63 }
  0x46   : > { %891 = vst [vmem:[%s6085_s17 + $0x200] sm:$0xff] %v890_v0  ;;  %893 = vst [vmem:[%s6085_s17 + $0x208] sm:$0xff] %v892_v1  ;;  %v894_v2 = vld [vmem:[%s6080_s16 + $0x420] sm:$0xff]  ;;  %v896_v3 = vld [vmem:[%s6080_s16 + $0x430] sm:$0xff] }
  0x47   : > { %v898_v4 = vld [vmem:[%s6080_s16 + $0x440] sm:$0xff]  ;;  %895 = vst [vmem:[%s6085_s17 + $0x210] sm:$0xff] %v894_v2  ;;  %897 = vst [vmem:[%s6085_s17 + $0x218] sm:$0xff] %v896_v3  ;;  %v900_v5 = vld [vmem:[%s6080_s16 + $0x450] sm:$0xff] }
  0x48   : > { %899 = vst [vmem:[%s6085_s17 + $0x220] sm:$0xff] %v898_v4  ;;  %v902_v6 = vld [vmem:[%s6080_s16 + $0x460] sm:$0xff]  ;;  %v904_v7 = vld [vmem:[%s6080_s16 + $0x470] sm:$0xff]  ;;  %901 = vst [vmem:[%s6085_s17 + $0x228] sm:$0xff] %v900_v5 }
  0x49   : > { %903 = vst [vmem:[%s6085_s17 + $0x230] sm:$0xff] %v902_v6  ;;  %905 = vst [vmem:[%s6085_s17 + $0x238] sm:$0xff] %v904_v7  ;;  %v906_v8 = vld [vmem:[%s6080_s16 + $0x480] sm:$0xff]  ;;  %v908_v9 = vld [vmem:[%s6080_s16 + $0x490] sm:$0xff] }
  0x4a   : > { %v910_v10 = vld [vmem:[%s6080_s16 + $0x4a0] sm:$0xff]  ;;  %907 = vst [vmem:[%s6085_s17 + $0x240] sm:$0xff] %v906_v8  ;;  %909 = vst [vmem:[%s6085_s17 + $0x248] sm:$0xff] %v908_v9  ;;  %v912_v11 = vld [vmem:[%s6080_s16 + $0x4b0] sm:$0xff] }
  0x4b   : > { %911 = vst [vmem:[%s6085_s17 + $0x250] sm:$0xff] %v910_v10  ;;  %v914_v12 = vld [vmem:[%s6080_s16 + $0x4c0] sm:$0xff]  ;;  %v916_v13 = vld [vmem:[%s6080_s16 + $0x4d0] sm:$0xff]  ;;  %913 = vst [vmem:[%s6085_s17 + $0x258] sm:$0xff] %v912_v11 }
  0x4c   : > { %915 = vst [vmem:[%s6085_s17 + $0x260] sm:$0xff] %v914_v12  ;;  %917 = vst [vmem:[%s6085_s17 + $0x268] sm:$0xff] %v916_v13  ;;  %v918_v14 = vld [vmem:[%s6080_s16 + $0x4e0] sm:$0xff]  ;;  %v920_v15 = vld [vmem:[%s6080_s16 + $0x4f0] sm:$0xff] }
  0x4d   : > { %v922_v16 = vld [vmem:[%s6080_s16 + $0x500] sm:$0xff]  ;;  %919 = vst [vmem:[%s6085_s17 + $0x270] sm:$0xff] %v918_v14  ;;  %921 = vst [vmem:[%s6085_s17 + $0x278] sm:$0xff] %v920_v15  ;;  %v924_v17 = vld [vmem:[%s6080_s16 + $0x510] sm:$0xff] }
  0x4e   : > { %923 = vst [vmem:[%s6085_s17 + $0x280] sm:$0xff] %v922_v16  ;;  %v926_v18 = vld [vmem:[%s6080_s16 + $0x520] sm:$0xff]  ;;  %v928_v19 = vld [vmem:[%s6080_s16 + $0x530] sm:$0xff]  ;;  %925 = vst [vmem:[%s6085_s17 + $0x288] sm:$0xff] %v924_v17 }
  0x4f   : > { %927 = vst [vmem:[%s6085_s17 + $0x290] sm:$0xff] %v926_v18  ;;  %929 = vst [vmem:[%s6085_s17 + $0x298] sm:$0xff] %v928_v19  ;;  %v930_v20 = vld [vmem:[%s6080_s16 + $0x540] sm:$0xff]  ;;  %v932_v21 = vld [vmem:[%s6080_s16 + $0x550] sm:$0xff] }
  0x50   : > { %v934_v22 = vld [vmem:[%s6080_s16 + $0x560] sm:$0xff]  ;;  %931 = vst [vmem:[%s6085_s17 + $0x2a0] sm:$0xff] %v930_v20  ;;  %933 = vst [vmem:[%s6085_s17 + $0x2a8] sm:$0xff] %v932_v21  ;;  %v936_v23 = vld [vmem:[%s6080_s16 + $0x570] sm:$0xff] }
  0x51   : > { %935 = vst [vmem:[%s6085_s17 + $0x2b0] sm:$0xff] %v934_v22  ;;  %v938_v24 = vld [vmem:[%s6080_s16 + $0x580] sm:$0xff]  ;;  %v940_v25 = vld [vmem:[%s6080_s16 + $0x590] sm:$0xff]  ;;  %937 = vst [vmem:[%s6085_s17 + $0x2b8] sm:$0xff] %v936_v23 }
  0x52   : > { %939 = vst [vmem:[%s6085_s17 + $0x2c0] sm:$0xff] %v938_v24  ;;  %941 = vst [vmem:[%s6085_s17 + $0x2c8] sm:$0xff] %v940_v25  ;;  %v942_v26 = vld [vmem:[%s6080_s16 + $0x5a0] sm:$0xff]  ;;  %v944_v27 = vld [vmem:[%s6080_s16 + $0x5b0] sm:$0xff] }
  0x53   : > { %v946_v28 = vld [vmem:[%s6080_s16 + $0x5c0] sm:$0xff]  ;;  %943 = vst [vmem:[%s6085_s17 + $0x2d0] sm:$0xff] %v942_v26  ;;  %945 = vst [vmem:[%s6085_s17 + $0x2d8] sm:$0xff] %v944_v27  ;;  %v948_v29 = vld [vmem:[%s6080_s16 + $0x5d0] sm:$0xff] }
  0x54   : > { %947 = vst [vmem:[%s6085_s17 + $0x2e0] sm:$0xff] %v946_v28  ;;  %v950_v30 = vld [vmem:[%s6080_s16 + $0x5e0] sm:$0xff]  ;;  %v952_v31 = vld [vmem:[%s6080_s16 + $0x5f0] sm:$0xff]  ;;  %949 = vst [vmem:[%s6085_s17 + $0x2e8] sm:$0xff] %v948_v29 }
  0x55   : > { %951 = vst [vmem:[%s6085_s17 + $0x2f0] sm:$0xff] %v950_v30  ;;  %953 = vst [vmem:[%s6085_s17 + $0x2f8] sm:$0xff] %v952_v31  ;;  %v954_v32 = vld [vmem:[%s6080_s16 + $0x600] sm:$0xff]  ;;  %v956_v33 = vld [vmem:[%s6080_s16 + $0x610] sm:$0xff] }
  0x56   : > { %v958_v34 = vld [vmem:[%s6080_s16 + $0x620] sm:$0xff]  ;;  %955 = vst [vmem:[%s6085_s17 + $0x300] sm:$0xff] %v954_v32  ;;  %957 = vst [vmem:[%s6085_s17 + $0x308] sm:$0xff] %v956_v33  ;;  %v960_v35 = vld [vmem:[%s6080_s16 + $0x630] sm:$0xff] }
  0x57   : > { %959 = vst [vmem:[%s6085_s17 + $0x310] sm:$0xff] %v958_v34  ;;  %v962_v36 = vld [vmem:[%s6080_s16 + $0x640] sm:$0xff]  ;;  %v964_v37 = vld [vmem:[%s6080_s16 + $0x650] sm:$0xff]  ;;  %961 = vst [vmem:[%s6085_s17 + $0x318] sm:$0xff] %v960_v35 }
  0x58   : > { %963 = vst [vmem:[%s6085_s17 + $0x320] sm:$0xff] %v962_v36  ;;  %965 = vst [vmem:[%s6085_s17 + $0x328] sm:$0xff] %v964_v37  ;;  %v966_v38 = vld [vmem:[%s6080_s16 + $0x660] sm:$0xff]  ;;  %v968_v39 = vld [vmem:[%s6080_s16 + $0x670] sm:$0xff] }
  0x59   : > { %v970_v40 = vld [vmem:[%s6080_s16 + $0x680] sm:$0xff]  ;;  %967 = vst [vmem:[%s6085_s17 + $0x330] sm:$0xff] %v966_v38  ;;  %969 = vst [vmem:[%s6085_s17 + $0x338] sm:$0xff] %v968_v39  ;;  %v972_v41 = vld [vmem:[%s6080_s16 + $0x690] sm:$0xff] }
  0x5a   : > { %971 = vst [vmem:[%s6085_s17 + $0x340] sm:$0xff] %v970_v40  ;;  %v974_v42 = vld [vmem:[%s6080_s16 + $0x6a0] sm:$0xff]  ;;  %v976_v43 = vld [vmem:[%s6080_s16 + $0x6b0] sm:$0xff]  ;;  %973 = vst [vmem:[%s6085_s17 + $0x348] sm:$0xff] %v972_v41 }
  0x5b   : > { %975 = vst [vmem:[%s6085_s17 + $0x350] sm:$0xff] %v974_v42  ;;  %977 = vst [vmem:[%s6085_s17 + $0x358] sm:$0xff] %v976_v43  ;;  %v978_v44 = vld [vmem:[%s6080_s16 + $0x6c0] sm:$0xff]  ;;  %v980_v45 = vld [vmem:[%s6080_s16 + $0x6d0] sm:$0xff] }
  0x5c   : > { %v982_v46 = vld [vmem:[%s6080_s16 + $0x6e0] sm:$0xff]  ;;  %979 = vst [vmem:[%s6085_s17 + $0x360] sm:$0xff] %v978_v44  ;;  %981 = vst [vmem:[%s6085_s17 + $0x368] sm:$0xff] %v980_v45  ;;  %v984_v47 = vld [vmem:[%s6080_s16 + $0x6f0] sm:$0xff] }
  0x5d   : > { %983 = vst [vmem:[%s6085_s17 + $0x370] sm:$0xff] %v982_v46  ;;  %v986_v48 = vld [vmem:[%s6080_s16 + $0x700] sm:$0xff]  ;;  %v988_v49 = vld [vmem:[%s6080_s16 + $0x710] sm:$0xff]  ;;  %985 = vst [vmem:[%s6085_s17 + $0x378] sm:$0xff] %v984_v47 }
  0x5e   : > { %987 = vst [vmem:[%s6085_s17 + $0x380] sm:$0xff] %v986_v48  ;;  %989 = vst [vmem:[%s6085_s17 + $0x388] sm:$0xff] %v988_v49  ;;  %v990_v50 = vld [vmem:[%s6080_s16 + $0x720] sm:$0xff]  ;;  %v992_v51 = vld [vmem:[%s6080_s16 + $0x730] sm:$0xff] }
  0x5f   : > { %v994_v52 = vld [vmem:[%s6080_s16 + $0x740] sm:$0xff]  ;;  %991 = vst [vmem:[%s6085_s17 + $0x390] sm:$0xff] %v990_v50  ;;  %993 = vst [vmem:[%s6085_s17 + $0x398] sm:$0xff] %v992_v51  ;;  %v996_v53 = vld [vmem:[%s6080_s16 + $0x750] sm:$0xff] }
  0x60   : > { %995 = vst [vmem:[%s6085_s17 + $0x3a0] sm:$0xff] %v994_v52  ;;  %v998_v54 = vld [vmem:[%s6080_s16 + $0x760] sm:$0xff]  ;;  %v1000_v55 = vld [vmem:[%s6080_s16 + $0x770] sm:$0xff]  ;;  %997 = vst [vmem:[%s6085_s17 + $0x3a8] sm:$0xff] %v996_v53 }
  0x61   : > { %999 = vst [vmem:[%s6085_s17 + $0x3b0] sm:$0xff] %v998_v54  ;;  %1001 = vst [vmem:[%s6085_s17 + $0x3b8] sm:$0xff] %v1000_v55  ;;  %v1002_v56 = vld [vmem:[%s6080_s16 + $0x780] sm:$0xff]  ;;  %v1004_v57 = vld [vmem:[%s6080_s16 + $0x790] sm:$0xff] }
  0x62   : > { %v1006_v58 = vld [vmem:[%s6080_s16 + $0x7a0] sm:$0xff]  ;;  %1003 = vst [vmem:[%s6085_s17 + $0x3c0] sm:$0xff] %v1002_v56  ;;  %1005 = vst [vmem:[%s6085_s17 + $0x3c8] sm:$0xff] %v1004_v57  ;;  %v1008_v59 = vld [vmem:[%s6080_s16 + $0x7b0] sm:$0xff] }
  0x63   : > { %1007 = vst [vmem:[%s6085_s17 + $0x3d0] sm:$0xff] %v1006_v58  ;;  %v1010_v60 = vld [vmem:[%s6080_s16 + $0x7c0] sm:$0xff]  ;;  %v1012_v61 = vld [vmem:[%s6080_s16 + $0x7d0] sm:$0xff]  ;;  %1009 = vst [vmem:[%s6085_s17 + $0x3d8] sm:$0xff] %v1008_v59 }
  0x64   : > { %1011 = vst [vmem:[%s6085_s17 + $0x3e0] sm:$0xff] %v1010_v60  ;;  %1013 = vst [vmem:[%s6085_s17 + $0x3e8] sm:$0xff] %v1012_v61  ;;  %v1014_v62 = vld [vmem:[%s6080_s16 + $0x7e0] sm:$0xff]  ;;  %v1016_v63 = vld [vmem:[%s6080_s16 + $0x7f0] sm:$0xff] }
  0x65   : > { %v1018_v0 = vld [vmem:[%s6080_s16 + $0x800] sm:$0xff]  ;;  %1015 = vst [vmem:[%s6085_s17 + $0x3f0] sm:$0xff] %v1014_v62  ;;  %1017 = vst [vmem:[%s6085_s17 + $0x3f8] sm:$0xff] %v1016_v63  ;;  %v1020_v1 = vld [vmem:[%s6080_s16 + $0x810] sm:$0xff] }
  0x66   : > { %1019 = vst [vmem:[%s6085_s17 + $0x400] sm:$0xff] %v1018_v0  ;;  %v1022_v2 = vld [vmem:[%s6080_s16 + $0x820] sm:$0xff]  ;;  %v1024_v3 = vld [vmem:[%s6080_s16 + $0x830] sm:$0xff]  ;;  %1021 = vst [vmem:[%s6085_s17 + $0x408] sm:$0xff] %v1020_v1 }
  0x67   : > { %1023 = vst [vmem:[%s6085_s17 + $0x410] sm:$0xff] %v1022_v2  ;;  %1025 = vst [vmem:[%s6085_s17 + $0x418] sm:$0xff] %v1024_v3  ;;  %v1026_v4 = vld [vmem:[%s6080_s16 + $0x840] sm:$0xff]  ;;  %v1028_v5 = vld [vmem:[%s6080_s16 + $0x850] sm:$0xff] }
  0x68   : > { %v1030_v6 = vld [vmem:[%s6080_s16 + $0x860] sm:$0xff]  ;;  %1027 = vst [vmem:[%s6085_s17 + $0x420] sm:$0xff] %v1026_v4  ;;  %1029 = vst [vmem:[%s6085_s17 + $0x428] sm:$0xff] %v1028_v5  ;;  %v1032_v7 = vld [vmem:[%s6080_s16 + $0x870] sm:$0xff] }
  0x69   : > { %1031 = vst [vmem:[%s6085_s17 + $0x430] sm:$0xff] %v1030_v6  ;;  %v1034_v8 = vld [vmem:[%s6080_s16 + $0x880] sm:$0xff]  ;;  %v1036_v9 = vld [vmem:[%s6080_s16 + $0x890] sm:$0xff]  ;;  %1033 = vst [vmem:[%s6085_s17 + $0x438] sm:$0xff] %v1032_v7 }
  0x6a   : > { %1035 = vst [vmem:[%s6085_s17 + $0x440] sm:$0xff] %v1034_v8  ;;  %1037 = vst [vmem:[%s6085_s17 + $0x448] sm:$0xff] %v1036_v9  ;;  %v1038_v10 = vld [vmem:[%s6080_s16 + $0x8a0] sm:$0xff]  ;;  %v1040_v11 = vld [vmem:[%s6080_s16 + $0x8b0] sm:$0xff] }
  0x6b   : > { %v1042_v12 = vld [vmem:[%s6080_s16 + $0x8c0] sm:$0xff]  ;;  %1039 = vst [vmem:[%s6085_s17 + $0x450] sm:$0xff] %v1038_v10  ;;  %1041 = vst [vmem:[%s6085_s17 + $0x458] sm:$0xff] %v1040_v11  ;;  %v1044_v13 = vld [vmem:[%s6080_s16 + $0x8d0] sm:$0xff] }
  0x6c   : > { %1043 = vst [vmem:[%s6085_s17 + $0x460] sm:$0xff] %v1042_v12  ;;  %v1046_v14 = vld [vmem:[%s6080_s16 + $0x8e0] sm:$0xff]  ;;  %v1048_v15 = vld [vmem:[%s6080_s16 + $0x8f0] sm:$0xff]  ;;  %1045 = vst [vmem:[%s6085_s17 + $0x468] sm:$0xff] %v1044_v13 }
  0x6d   : > { %1047 = vst [vmem:[%s6085_s17 + $0x470] sm:$0xff] %v1046_v14  ;;  %1049 = vst [vmem:[%s6085_s17 + $0x478] sm:$0xff] %v1048_v15  ;;  %v1050_v16 = vld [vmem:[%s6080_s16 + $0x900] sm:$0xff]  ;;  %v1052_v17 = vld [vmem:[%s6080_s16 + $0x910] sm:$0xff] }
  0x6e   : > { %v1054_v18 = vld [vmem:[%s6080_s16 + $0x920] sm:$0xff]  ;;  %1051 = vst [vmem:[%s6085_s17 + $0x480] sm:$0xff] %v1050_v16  ;;  %1053 = vst [vmem:[%s6085_s17 + $0x488] sm:$0xff] %v1052_v17  ;;  %v1056_v19 = vld [vmem:[%s6080_s16 + $0x930] sm:$0xff] }
  0x6f   : > { %1055 = vst [vmem:[%s6085_s17 + $0x490] sm:$0xff] %v1054_v18  ;;  %v1058_v20 = vld [vmem:[%s6080_s16 + $0x940] sm:$0xff]  ;;  %v1060_v21 = vld [vmem:[%s6080_s16 + $0x950] sm:$0xff]  ;;  %1057 = vst [vmem:[%s6085_s17 + $0x498] sm:$0xff] %v1056_v19 }
  0x70   : > { %1059 = vst [vmem:[%s6085_s17 + $0x4a0] sm:$0xff] %v1058_v20  ;;  %1061 = vst [vmem:[%s6085_s17 + $0x4a8] sm:$0xff] %v1060_v21  ;;  %v1062_v22 = vld [vmem:[%s6080_s16 + $0x960] sm:$0xff]  ;;  %v1064_v23 = vld [vmem:[%s6080_s16 + $0x970] sm:$0xff] }
  0x71   : > { %v1066_v24 = vld [vmem:[%s6080_s16 + $0x980] sm:$0xff]  ;;  %1063 = vst [vmem:[%s6085_s17 + $0x4b0] sm:$0xff] %v1062_v22  ;;  %1065 = vst [vmem:[%s6085_s17 + $0x4b8] sm:$0xff] %v1064_v23  ;;  %v1068_v25 = vld [vmem:[%s6080_s16 + $0x990] sm:$0xff] }
  0x72   : > { %1067 = vst [vmem:[%s6085_s17 + $0x4c0] sm:$0xff] %v1066_v24  ;;  %v1070_v26 = vld [vmem:[%s6080_s16 + $0x9a0] sm:$0xff]  ;;  %v1072_v27 = vld [vmem:[%s6080_s16 + $0x9b0] sm:$0xff]  ;;  %1069 = vst [vmem:[%s6085_s17 + $0x4c8] sm:$0xff] %v1068_v25 }
  0x73   : > { %1071 = vst [vmem:[%s6085_s17 + $0x4d0] sm:$0xff] %v1070_v26  ;;  %1073 = vst [vmem:[%s6085_s17 + $0x4d8] sm:$0xff] %v1072_v27  ;;  %v1074_v28 = vld [vmem:[%s6080_s16 + $0x9c0] sm:$0xff]  ;;  %v1076_v29 = vld [vmem:[%s6080_s16 + $0x9d0] sm:$0xff] }
  0x74   : > { %v1078_v30 = vld [vmem:[%s6080_s16 + $0x9e0] sm:$0xff]  ;;  %1075 = vst [vmem:[%s6085_s17 + $0x4e0] sm:$0xff] %v1074_v28  ;;  %1077 = vst [vmem:[%s6085_s17 + $0x4e8] sm:$0xff] %v1076_v29  ;;  %v1080_v31 = vld [vmem:[%s6080_s16 + $0x9f0] sm:$0xff] }
  0x75   : > { %1079 = vst [vmem:[%s6085_s17 + $0x4f0] sm:$0xff] %v1078_v30  ;;  %v1082_v32 = vld [vmem:[%s6080_s16 + $0xa00] sm:$0xff]  ;;  %v1084_v33 = vld [vmem:[%s6080_s16 + $0xa10] sm:$0xff]  ;;  %1081 = vst [vmem:[%s6085_s17 + $0x4f8] sm:$0xff] %v1080_v31 }
  0x76   : > { %1083 = vst [vmem:[%s6085_s17 + $0x500] sm:$0xff] %v1082_v32  ;;  %1085 = vst [vmem:[%s6085_s17 + $0x508] sm:$0xff] %v1084_v33  ;;  %v1086_v34 = vld [vmem:[%s6080_s16 + $0xa20] sm:$0xff]  ;;  %v1088_v35 = vld [vmem:[%s6080_s16 + $0xa30] sm:$0xff] }
  0x77   : > { %v1090_v36 = vld [vmem:[%s6080_s16 + $0xa40] sm:$0xff]  ;;  %1087 = vst [vmem:[%s6085_s17 + $0x510] sm:$0xff] %v1086_v34  ;;  %1089 = vst [vmem:[%s6085_s17 + $0x518] sm:$0xff] %v1088_v35  ;;  %v1092_v37 = vld [vmem:[%s6080_s16 + $0xa50] sm:$0xff] }
  0x78   : > { %1091 = vst [vmem:[%s6085_s17 + $0x520] sm:$0xff] %v1090_v36  ;;  %v1094_v38 = vld [vmem:[%s6080_s16 + $0xa60] sm:$0xff]  ;;  %v1096_v39 = vld [vmem:[%s6080_s16 + $0xa70] sm:$0xff]  ;;  %1093 = vst [vmem:[%s6085_s17 + $0x528] sm:$0xff] %v1092_v37 }
  0x79   : > { %1095 = vst [vmem:[%s6085_s17 + $0x530] sm:$0xff] %v1094_v38  ;;  %1097 = vst [vmem:[%s6085_s17 + $0x538] sm:$0xff] %v1096_v39  ;;  %v1098_v40 = vld [vmem:[%s6080_s16 + $0xa80] sm:$0xff]  ;;  %v1100_v41 = vld [vmem:[%s6080_s16 + $0xa90] sm:$0xff] }
  0x7a   : > { %v1102_v42 = vld [vmem:[%s6080_s16 + $0xaa0] sm:$0xff]  ;;  %1099 = vst [vmem:[%s6085_s17 + $0x540] sm:$0xff] %v1098_v40  ;;  %1101 = vst [vmem:[%s6085_s17 + $0x548] sm:$0xff] %v1100_v41  ;;  %v1104_v43 = vld [vmem:[%s6080_s16 + $0xab0] sm:$0xff] }
  0x7b   : > { %1103 = vst [vmem:[%s6085_s17 + $0x550] sm:$0xff] %v1102_v42  ;;  %v1106_v44 = vld [vmem:[%s6080_s16 + $0xac0] sm:$0xff]  ;;  %v1108_v45 = vld [vmem:[%s6080_s16 + $0xad0] sm:$0xff]  ;;  %1105 = vst [vmem:[%s6085_s17 + $0x558] sm:$0xff] %v1104_v43 }
  0x7c   : > { %1107 = vst [vmem:[%s6085_s17 + $0x560] sm:$0xff] %v1106_v44  ;;  %1109 = vst [vmem:[%s6085_s17 + $0x568] sm:$0xff] %v1108_v45  ;;  %v1110_v46 = vld [vmem:[%s6080_s16 + $0xae0] sm:$0xff]  ;;  %v1112_v47 = vld [vmem:[%s6080_s16 + $0xaf0] sm:$0xff] }
  0x7d   : > { %v1114_v48 = vld [vmem:[%s6080_s16 + $0xb00] sm:$0xff]  ;;  %1111 = vst [vmem:[%s6085_s17 + $0x570] sm:$0xff] %v1110_v46  ;;  %1113 = vst [vmem:[%s6085_s17 + $0x578] sm:$0xff] %v1112_v47  ;;  %v1116_v49 = vld [vmem:[%s6080_s16 + $0xb10] sm:$0xff] }
  0x7e   : > { %1115 = vst [vmem:[%s6085_s17 + $0x580] sm:$0xff] %v1114_v48  ;;  %v1118_v50 = vld [vmem:[%s6080_s16 + $0xb20] sm:$0xff]  ;;  %v1120_v51 = vld [vmem:[%s6080_s16 + $0xb30] sm:$0xff]  ;;  %1117 = vst [vmem:[%s6085_s17 + $0x588] sm:$0xff] %v1116_v49 }
  0x7f   : > { %1119 = vst [vmem:[%s6085_s17 + $0x590] sm:$0xff] %v1118_v50  ;;  %1121 = vst [vmem:[%s6085_s17 + $0x598] sm:$0xff] %v1120_v51  ;;  %v1122_v52 = vld [vmem:[%s6080_s16 + $0xb40] sm:$0xff]  ;;  %v1124_v53 = vld [vmem:[%s6080_s16 + $0xb50] sm:$0xff] }
  0x80   : > { %v1126_v54 = vld [vmem:[%s6080_s16 + $0xb60] sm:$0xff]  ;;  %1123 = vst [vmem:[%s6085_s17 + $0x5a0] sm:$0xff] %v1122_v52  ;;  %1125 = vst [vmem:[%s6085_s17 + $0x5a8] sm:$0xff] %v1124_v53  ;;  %v1128_v55 = vld [vmem:[%s6080_s16 + $0xb70] sm:$0xff] }
  0x81   : > { %1127 = vst [vmem:[%s6085_s17 + $0x5b0] sm:$0xff] %v1126_v54  ;;  %v1130_v56 = vld [vmem:[%s6080_s16 + $0xb80] sm:$0xff]  ;;  %v1132_v57 = vld [vmem:[%s6080_s16 + $0xb90] sm:$0xff]  ;;  %1129 = vst [vmem:[%s6085_s17 + $0x5b8] sm:$0xff] %v1128_v55 }
  0x82   : > { %1131 = vst [vmem:[%s6085_s17 + $0x5c0] sm:$0xff] %v1130_v56  ;;  %1133 = vst [vmem:[%s6085_s17 + $0x5c8] sm:$0xff] %v1132_v57  ;;  %v1134_v58 = vld [vmem:[%s6080_s16 + $0xba0] sm:$0xff]  ;;  %v1136_v59 = vld [vmem:[%s6080_s16 + $0xbb0] sm:$0xff] }
  0x83   : > { %v1138_v60 = vld [vmem:[%s6080_s16 + $0xbc0] sm:$0xff]  ;;  %1135 = vst [vmem:[%s6085_s17 + $0x5d0] sm:$0xff] %v1134_v58  ;;  %1137 = vst [vmem:[%s6085_s17 + $0x5d8] sm:$0xff] %v1136_v59  ;;  %v1140_v61 = vld [vmem:[%s6080_s16 + $0xbd0] sm:$0xff] }
  0x84   : > { %1139 = vst [vmem:[%s6085_s17 + $0x5e0] sm:$0xff] %v1138_v60  ;;  %v1142_v62 = vld [vmem:[%s6080_s16 + $0xbe0] sm:$0xff]  ;;  %v1144_v63 = vld [vmem:[%s6080_s16 + $0xbf0] sm:$0xff]  ;;  %1141 = vst [vmem:[%s6085_s17 + $0x5e8] sm:$0xff] %v1140_v61 }
  0x85   : > { %1143 = vst [vmem:[%s6085_s17 + $0x5f0] sm:$0xff] %v1142_v62  ;;  %1145 = vst [vmem:[%s6085_s17 + $0x5f8] sm:$0xff] %v1144_v63  ;;  %v1146_v0 = vld [vmem:[%s6080_s16 + $0xc00] sm:$0xff]  ;;  %v1148_v1 = vld [vmem:[%s6080_s16 + $0xc10] sm:$0xff] }
  0x86   : > { %v1150_v2 = vld [vmem:[%s6080_s16 + $0xc20] sm:$0xff]  ;;  %1147 = vst [vmem:[%s6085_s17 + $0x600] sm:$0xff] %v1146_v0  ;;  %1149 = vst [vmem:[%s6085_s17 + $0x608] sm:$0xff] %v1148_v1  ;;  %v1152_v3 = vld [vmem:[%s6080_s16 + $0xc30] sm:$0xff] }
  0x87   : > { %1151 = vst [vmem:[%s6085_s17 + $0x610] sm:$0xff] %v1150_v2  ;;  %v1154_v4 = vld [vmem:[%s6080_s16 + $0xc40] sm:$0xff]  ;;  %v1156_v5 = vld [vmem:[%s6080_s16 + $0xc50] sm:$0xff]  ;;  %1153 = vst [vmem:[%s6085_s17 + $0x618] sm:$0xff] %v1152_v3 }
  0x88   : > { %1155 = vst [vmem:[%s6085_s17 + $0x620] sm:$0xff] %v1154_v4  ;;  %1157 = vst [vmem:[%s6085_s17 + $0x628] sm:$0xff] %v1156_v5  ;;  %v1158_v6 = vld [vmem:[%s6080_s16 + $0xc60] sm:$0xff]  ;;  %v1160_v7 = vld [vmem:[%s6080_s16 + $0xc70] sm:$0xff] }
  0x89   : > { %v1162_v8 = vld [vmem:[%s6080_s16 + $0xc80] sm:$0xff]  ;;  %1159 = vst [vmem:[%s6085_s17 + $0x630] sm:$0xff] %v1158_v6  ;;  %1161 = vst [vmem:[%s6085_s17 + $0x638] sm:$0xff] %v1160_v7  ;;  %v1164_v9 = vld [vmem:[%s6080_s16 + $0xc90] sm:$0xff] }
  0x8a   : > { %1163 = vst [vmem:[%s6085_s17 + $0x640] sm:$0xff] %v1162_v8  ;;  %v1166_v10 = vld [vmem:[%s6080_s16 + $0xca0] sm:$0xff]  ;;  %v1168_v11 = vld [vmem:[%s6080_s16 + $0xcb0] sm:$0xff]  ;;  %1165 = vst [vmem:[%s6085_s17 + $0x648] sm:$0xff] %v1164_v9 }
  0x8b   : > { %1167 = vst [vmem:[%s6085_s17 + $0x650] sm:$0xff] %v1166_v10  ;;  %1169 = vst [vmem:[%s6085_s17 + $0x658] sm:$0xff] %v1168_v11  ;;  %v1170_v12 = vld [vmem:[%s6080_s16 + $0xcc0] sm:$0xff]  ;;  %v1172_v13 = vld [vmem:[%s6080_s16 + $0xcd0] sm:$0xff] }
  0x8c   : > { %v1174_v14 = vld [vmem:[%s6080_s16 + $0xce0] sm:$0xff]  ;;  %1171 = vst [vmem:[%s6085_s17 + $0x660] sm:$0xff] %v1170_v12  ;;  %1173 = vst [vmem:[%s6085_s17 + $0x668] sm:$0xff] %v1172_v13  ;;  %v1176_v15 = vld [vmem:[%s6080_s16 + $0xcf0] sm:$0xff] }
  0x8d   : > { %1175 = vst [vmem:[%s6085_s17 + $0x670] sm:$0xff] %v1174_v14  ;;  %v1178_v16 = vld [vmem:[%s6080_s16 + $0xd00] sm:$0xff]  ;;  %v1180_v17 = vld [vmem:[%s6080_s16 + $0xd10] sm:$0xff]  ;;  %1177 = vst [vmem:[%s6085_s17 + $0x678] sm:$0xff] %v1176_v15 }
  0x8e   : > { %1179 = vst [vmem:[%s6085_s17 + $0x680] sm:$0xff] %v1178_v16  ;;  %1181 = vst [vmem:[%s6085_s17 + $0x688] sm:$0xff] %v1180_v17  ;;  %v1182_v18 = vld [vmem:[%s6080_s16 + $0xd20] sm:$0xff]  ;;  %v1184_v19 = vld [vmem:[%s6080_s16 + $0xd30] sm:$0xff] }
  0x8f   : > { %v1186_v20 = vld [vmem:[%s6080_s16 + $0xd40] sm:$0xff]  ;;  %1183 = vst [vmem:[%s6085_s17 + $0x690] sm:$0xff] %v1182_v18  ;;  %1185 = vst [vmem:[%s6085_s17 + $0x698] sm:$0xff] %v1184_v19  ;;  %v1188_v21 = vld [vmem:[%s6080_s16 + $0xd50] sm:$0xff] }
  0x90   : > { %1187 = vst [vmem:[%s6085_s17 + $0x6a0] sm:$0xff] %v1186_v20  ;;  %v1190_v22 = vld [vmem:[%s6080_s16 + $0xd60] sm:$0xff]  ;;  %v1192_v23 = vld [vmem:[%s6080_s16 + $0xd70] sm:$0xff]  ;;  %1189 = vst [vmem:[%s6085_s17 + $0x6a8] sm:$0xff] %v1188_v21 }
  0x91   : > { %1191 = vst [vmem:[%s6085_s17 + $0x6b0] sm:$0xff] %v1190_v22  ;;  %1193 = vst [vmem:[%s6085_s17 + $0x6b8] sm:$0xff] %v1192_v23  ;;  %v1194_v24 = vld [vmem:[%s6080_s16 + $0xd80] sm:$0xff]  ;;  %v1196_v25 = vld [vmem:[%s6080_s16 + $0xd90] sm:$0xff] }
  0x92   : > { %v1198_v26 = vld [vmem:[%s6080_s16 + $0xda0] sm:$0xff]  ;;  %1195 = vst [vmem:[%s6085_s17 + $0x6c0] sm:$0xff] %v1194_v24  ;;  %1197 = vst [vmem:[%s6085_s17 + $0x6c8] sm:$0xff] %v1196_v25  ;;  %v1200_v27 = vld [vmem:[%s6080_s16 + $0xdb0] sm:$0xff] }
  0x93   : > { %1199 = vst [vmem:[%s6085_s17 + $0x6d0] sm:$0xff] %v1198_v26  ;;  %v1202_v28 = vld [vmem:[%s6080_s16 + $0xdc0] sm:$0xff]  ;;  %v1204_v29 = vld [vmem:[%s6080_s16 + $0xdd0] sm:$0xff]  ;;  %1201 = vst [vmem:[%s6085_s17 + $0x6d8] sm:$0xff] %v1200_v27 }
  0x94   : > { %1203 = vst [vmem:[%s6085_s17 + $0x6e0] sm:$0xff] %v1202_v28  ;;  %1205 = vst [vmem:[%s6085_s17 + $0x6e8] sm:$0xff] %v1204_v29  ;;  %v1206_v30 = vld [vmem:[%s6080_s16 + $0xde0] sm:$0xff]  ;;  %v1208_v31 = vld [vmem:[%s6080_s16 + $0xdf0] sm:$0xff] }
  0x95   : > { %v1210_v32 = vld [vmem:[%s6080_s16 + $0xe00] sm:$0xff]  ;;  %1207 = vst [vmem:[%s6085_s17 + $0x6f0] sm:$0xff] %v1206_v30  ;;  %1209 = vst [vmem:[%s6085_s17 + $0x6f8] sm:$0xff] %v1208_v31  ;;  %v1212_v33 = vld [vmem:[%s6080_s16 + $0xe10] sm:$0xff] }
  0x96   : > { %1211 = vst [vmem:[%s6085_s17 + $0x700] sm:$0xff] %v1210_v32  ;;  %v1214_v34 = vld [vmem:[%s6080_s16 + $0xe20] sm:$0xff]  ;;  %v1216_v35 = vld [vmem:[%s6080_s16 + $0xe30] sm:$0xff]  ;;  %1213 = vst [vmem:[%s6085_s17 + $0x708] sm:$0xff] %v1212_v33 }
  0x97   : > { %1215 = vst [vmem:[%s6085_s17 + $0x710] sm:$0xff] %v1214_v34  ;;  %1217 = vst [vmem:[%s6085_s17 + $0x718] sm:$0xff] %v1216_v35  ;;  %v1218_v36 = vld [vmem:[%s6080_s16 + $0xe40] sm:$0xff]  ;;  %v1220_v37 = vld [vmem:[%s6080_s16 + $0xe50] sm:$0xff] }
  0x98   : > { %v1222_v38 = vld [vmem:[%s6080_s16 + $0xe60] sm:$0xff]  ;;  %1219 = vst [vmem:[%s6085_s17 + $0x720] sm:$0xff] %v1218_v36  ;;  %1221 = vst [vmem:[%s6085_s17 + $0x728] sm:$0xff] %v1220_v37  ;;  %v1224_v39 = vld [vmem:[%s6080_s16 + $0xe70] sm:$0xff] }
  0x99   : > { %1223 = vst [vmem:[%s6085_s17 + $0x730] sm:$0xff] %v1222_v38  ;;  %v1226_v40 = vld [vmem:[%s6080_s16 + $0xe80] sm:$0xff]  ;;  %v1228_v41 = vld [vmem:[%s6080_s16 + $0xe90] sm:$0xff]  ;;  %1225 = vst [vmem:[%s6085_s17 + $0x738] sm:$0xff] %v1224_v39 }
  0x9a   : > { %1227 = vst [vmem:[%s6085_s17 + $0x740] sm:$0xff] %v1226_v40  ;;  %1229 = vst [vmem:[%s6085_s17 + $0x748] sm:$0xff] %v1228_v41  ;;  %v1230_v42 = vld [vmem:[%s6080_s16 + $0xea0] sm:$0xff]  ;;  %v1232_v43 = vld [vmem:[%s6080_s16 + $0xeb0] sm:$0xff] }
  0x9b   : > { %v1234_v44 = vld [vmem:[%s6080_s16 + $0xec0] sm:$0xff]  ;;  %1231 = vst [vmem:[%s6085_s17 + $0x750] sm:$0xff] %v1230_v42  ;;  %1233 = vst [vmem:[%s6085_s17 + $0x758] sm:$0xff] %v1232_v43  ;;  %v1236_v45 = vld [vmem:[%s6080_s16 + $0xed0] sm:$0xff] }
  0x9c   : > { %1235 = vst [vmem:[%s6085_s17 + $0x760] sm:$0xff] %v1234_v44  ;;  %v1238_v46 = vld [vmem:[%s6080_s16 + $0xee0] sm:$0xff]  ;;  %v1240_v47 = vld [vmem:[%s6080_s16 + $0xef0] sm:$0xff]  ;;  %1237 = vst [vmem:[%s6085_s17 + $0x768] sm:$0xff] %v1236_v45 }
  0x9d   : > { %1239 = vst [vmem:[%s6085_s17 + $0x770] sm:$0xff] %v1238_v46  ;;  %1241 = vst [vmem:[%s6085_s17 + $0x778] sm:$0xff] %v1240_v47  ;;  %v1242_v48 = vld [vmem:[%s6080_s16 + $0xf00] sm:$0xff]  ;;  %v1244_v49 = vld [vmem:[%s6080_s16 + $0xf10] sm:$0xff] }
  0x9e   : > { %v1246_v50 = vld [vmem:[%s6080_s16 + $0xf20] sm:$0xff]  ;;  %1243 = vst [vmem:[%s6085_s17 + $0x780] sm:$0xff] %v1242_v48  ;;  %1245 = vst [vmem:[%s6085_s17 + $0x788] sm:$0xff] %v1244_v49  ;;  %v1248_v51 = vld [vmem:[%s6080_s16 + $0xf30] sm:$0xff] }
  0x9f   : > { %1247 = vst [vmem:[%s6085_s17 + $0x790] sm:$0xff] %v1246_v50  ;;  %v1250_v52 = vld [vmem:[%s6080_s16 + $0xf40] sm:$0xff]  ;;  %v1252_v53 = vld [vmem:[%s6080_s16 + $0xf50] sm:$0xff]  ;;  %1249 = vst [vmem:[%s6085_s17 + $0x798] sm:$0xff] %v1248_v51 }
  0xa0   : > { %1251 = vst [vmem:[%s6085_s17 + $0x7a0] sm:$0xff] %v1250_v52  ;;  %1253 = vst [vmem:[%s6085_s17 + $0x7a8] sm:$0xff] %v1252_v53  ;;  %v1254_v54 = vld [vmem:[%s6080_s16 + $0xf60] sm:$0xff]  ;;  %v1256_v55 = vld [vmem:[%s6080_s16 + $0xf70] sm:$0xff] }
  0xa1   : > { %v1258_v56 = vld [vmem:[%s6080_s16 + $0xf80] sm:$0xff]  ;;  %1255 = vst [vmem:[%s6085_s17 + $0x7b0] sm:$0xff] %v1254_v54  ;;  %1257 = vst [vmem:[%s6085_s17 + $0x7b8] sm:$0xff] %v1256_v55  ;;  %v1260_v57 = vld [vmem:[%s6080_s16 + $0xf90] sm:$0xff] }
  0xa2   : > { %1259 = vst [vmem:[%s6085_s17 + $0x7c0] sm:$0xff] %v1258_v56  ;;  %v1262_v58 = vld [vmem:[%s6080_s16 + $0xfa0] sm:$0xff]  ;;  %v1264_v59 = vld [vmem:[%s6080_s16 + $0xfb0] sm:$0xff]  ;;  %1261 = vst [vmem:[%s6085_s17 + $0x7c8] sm:$0xff] %v1260_v57 }
  0xa3   : > { %1263 = vst [vmem:[%s6085_s17 + $0x7d0] sm:$0xff] %v1262_v58  ;;  %1265 = vst [vmem:[%s6085_s17 + $0x7d8] sm:$0xff] %v1264_v59  ;;  %v1266_v60 = vld [vmem:[%s6080_s16 + $0xfc0] sm:$0xff]  ;;  %v1268_v61 = vld [vmem:[%s6080_s16 + $0xfd0] sm:$0xff] }
  0xa4   : > { %v1270_v62 = vld [vmem:[%s6080_s16 + $0xfe0] sm:$0xff]  ;;  %1267 = vst [vmem:[%s6085_s17 + $0x7e0] sm:$0xff] %v1266_v60  ;;  %1269 = vst [vmem:[%s6085_s17 + $0x7e8] sm:$0xff] %v1268_v61  ;;  %v1272_v63 = vld [vmem:[%s6080_s16 + $0xff0] sm:$0xff] }
  0xa5   : > { %1271 = vst [vmem:[%s6085_s17 + $0x7f0] sm:$0xff] %v1270_v62  ;;  %1273 = vst [vmem:[%s6085_s17 + $0x7f8] sm:$0xff] %v1272_v63 }
  0xa6 PF: > { %1290 = sbr.rel (%p6054_p7) target bundleno = 923 (0x39b), region = 74 }
  0xad   : > { %5950 = dma.done.wait (%p6058_p8), [#allocation3], 16  }
  0xae   : > { %5952 = vsyncadd (%p6058_p8), [#allocation3], 4294967280  ;;  %s1297_s23 = sand.u32 1, %s5955_s18  }
  0xaf   : > { %s5094_s25 = sshll.u32 %s1297_s23, 11 }
  0xb0   : > { %s6603_s26 = scalar_lea.vmem [#allocation4], %s5094_s25 }
  0xb1   : > { %1303 = sfence }
  0xb2   : > { %v5099_v0 = vld [vmem:[%s8229_s1 + $0x8] sm:$0xf]  ;;  %v1542_v1 = vld [vmem:[%s8229_s1] sm:$0xf]  ;;  %v5974_v2 = vmov 0   ;;  %v6638_v10 = vld [vmem:[%s8228_s0 + $0xc] sm:$0xff] }
  0xb3   : > { %5525 = vset.pattern.permute.xlu1 %v5974_v2  ;;  %5524 = vset.pattern.permute.xlu0 %v5974_v2  ;;  %v5136_v3 = vld [vmem:[%s8229_s1 + $0x90] sm:$0xf]  ;;  %v5098_v4 = vld [vmem:[%s8229_s1 + $0x4] sm:$0xf]  ;;  %v5100_v5 = vld [vmem:[%s8229_s1 + $0xc] sm:$0xf]  ;;  %v6648_v12 = vcombine.high %v6638_v10, %v6638_v10 }
  0xb4   : > { %1596 = vperm.xlu1 %5525, %v5099_v0   ;;  %1545 = vperm.xlu0 %5524, %v1542_v1   ;;  %v5137_v6 = vld [vmem:[%s8229_s1 + $0x94] sm:$0xf]  ;;  %v6626_v7 = vld [vmem:[%s8228_s0] sm:$0xff]  ;;  %v5138_v8 = vld [vmem:[%s8229_s1 + $0x98] sm:$0xf]  ;;  %s5975_s27 = smov 127  }
  0xb5   : > { %v6633_v9 = vcombine.high %v6626_v7, %v6626_v7  ;;  %v6644_v11 = vld [vmem:[%s8228_s0 + $0x8] sm:$0xf]  ;;  %v6655_v13 = vld [vmem:[%s8228_s0 + $0x14] sm:$0xf]  ;;  %v5101_v14 = vld [vmem:[%s8229_s1 + $0x10] sm:$0xf] }
  0xb6   : > { %v5139_v15 = vld [vmem:[%s8229_s1 + $0x9c] sm:$0xf]  ;;  %s5976_s11 = smov 126   ;;  %v5102_v16 = vld [vmem:[%s8229_s1 + $0x14] sm:$0xf]  ;;  %s5977_s16 = smov 112  }
  0xb7   : > { %v5140_v17 = vld [vmem:[%s8229_s1 + $0xa0] sm:$0xf]  ;;  %v5103_v18 = vld [vmem:[%s8229_s1 + $0x18] sm:$0xf]  ;;  %v5141_v19 = vld [vmem:[%s8229_s1 + $0xa4] sm:$0xf] }
  0xb8   : > { %2301 = vperm.xlu1 %5525, %v5136_v3   ;;  %1560 = vperm.xlu0 %5524, %v5098_v4   ;;  %s5978_s6 = smov 111   ;;  %v5104_v20 = vld [vmem:[%s8229_s1 + $0x1c] sm:$0xf]  ;;  %v5142_v21 = vld [vmem:[%s8229_s1 + $0xa8] sm:$0xf]  ;;  %s5979_s18 = smov 110  }
  0xb9   : > { %v5105_v22 = vld [vmem:[%s8229_s1 + $0x20] sm:$0xf]  ;;  %v5143_v23 = vld [vmem:[%s8229_s1 + $0xac] sm:$0xf]  ;;  %s5980_s13 = smov 96   ;;  %s5982_s17 = smov 94  }
  0xba   : > { %v5528_v24 = vld [vmem:[%s6603_s26 + $0x4] ss:$8 sps:$4 sm:$0xff]   ;;  %v5532_v26 = vld [vmem:[%s6603_s26] ss:$8 sps:$4 sm:$0xff]   ;;  %v5534_v28 = vld [vmem:[%s6603_s26 + $0x14] ss:$8 sps:$4 sm:$0xff]  }
  0xbb   : > { %v5530_v25 = vld [vmem:[%s6603_s26 + $0x404] ss:$8 sps:$4 sm:$0xff]   ;;  %v5533_v27 = vld [vmem:[%s6603_s26 + $0x400] ss:$8 sps:$4 sm:$0xff]   ;;  %4618 = vmatprep.subr.bf16.mxu1 %v5528_v24  ;;  %v5536_v29 = vld [vmem:[%s6603_s26 + $0x414] ss:$8 sps:$4 sm:$0xff]  }
  0xbc   : > { %1611 = vperm.xlu1 %5525, %v5100_v5   ;;  %2316 = vperm.xlu0 %5524, %v5137_v6   ;;  %v5538_v30 = vld [vmem:[%s6603_s26 + $0x10] ss:$8 sps:$4 sm:$0xff]   ;;  %v5540_v32 = vld [vmem:[%s6603_s26 + $0x24] ss:$8 sps:$4 sm:$0xff]   ;;  %v5544_v34 = vld [vmem:[%s6603_s26 + $0x20] ss:$8 sps:$4 sm:$0xff]  }
  0xbd   : > { %4782 = vmatprep.subr.bf16.mxu0 %v5530_v25  ;;  %4619 = vmatpush1.bf16.msra.mxu1 %v5532_v26  ;;  %v5539_v31 = vld [vmem:[%s6603_s26 + $0x410] ss:$8 sps:$4 sm:$0xff]   ;;  %v5542_v33 = vld [vmem:[%s6603_s26 + $0x424] ss:$8 sps:$4 sm:$0xff]   ;;  %v5545_v35 = vld [vmem:[%s6603_s26 + $0x420] ss:$8 sps:$4 sm:$0xff]  }
  0xbe   : > { %4783 = vmatpush1.bf16.msra.mxu0 %v5533_v27  ;;  %4620 = vmatprep.subr.bf16.mxu1 %v5534_v28  ;;  %v5144_v36 = vld [vmem:[%s8229_s1 + $0xb0] sm:$0xf]  ;;  %v5546_v37 = vld [vmem:[%s6603_s26 + $0x34] ss:$8 sps:$4 sm:$0xff]   ;;  %v5552_v41 = vld [vmem:[%s6603_s26 + $0x44] ss:$8 sps:$4 sm:$0xff]  }
  0xbf   : > { %4784 = vmatprep.subr.bf16.mxu0 %v5536_v29  ;;  %v5548_v38 = vld [vmem:[%s6603_s26 + $0x434] ss:$8 sps:$4 sm:$0xff]   ;;  %v5550_v39 = vld [vmem:[%s6603_s26 + $0x30] ss:$8 sps:$4 sm:$0xff]   ;;  %v5554_v42 = vld [vmem:[%s6603_s26 + $0x444] ss:$8 sps:$4 sm:$0xff]  }
  0xc0   : > { %2331 = vperm.xlu0 %5524, %v5138_v8   ;;  %1565 = vrot.lane.b32.xlu1 %v6633_v9, %s5975_s27  ;;  %v5551_v40 = vld [vmem:[%s6603_s26 + $0x430] ss:$8 sps:$4 sm:$0xff]   ;;  %v5556_v43 = vld [vmem:[%s6603_s26 + $0x40] ss:$8 sps:$4 sm:$0xff]   ;;  %v5558_v45 = vld [vmem:[%s6603_s26 + $0x54] ss:$8 sps:$4 sm:$0xff]  }
  0xc1   : > { %4621 = vmatpush1.bf16.msra.mxu1 %v5538_v30  ;;  %v5557_v44 = vld [vmem:[%s6603_s26 + $0x440] ss:$8 sps:$4 sm:$0xff]   ;;  %v5560_v46 = vld [vmem:[%s6603_s26 + $0x454] ss:$8 sps:$4 sm:$0xff]   ;;  %v5562_v47 = vld [vmem:[%s6603_s26 + $0x50] ss:$8 sps:$4 sm:$0xff]  }
  0xc2   : > { %4785 = vmatpush1.bf16.msra.mxu0 %v5539_v31  ;;  %4622 = vmatprep.subr.bf16.mxu1 %v5540_v32  ;;  %v5563_v48 = vld [vmem:[%s6603_s26 + $0x450] ss:$8 sps:$4 sm:$0xff]   ;;  %v5564_v49 = vld [vmem:[%s6603_s26 + $0x64] ss:$8 sps:$4 sm:$0xff]   ;;  %v5568_v51 = vld [vmem:[%s6603_s26 + $0x60] ss:$8 sps:$4 sm:$0xff]  }
  0xc3   : > { %4786 = vmatprep.subr.bf16.mxu0 %v5542_v33  ;;  %v5566_v50 = vld [vmem:[%s6603_s26 + $0x464] ss:$8 sps:$4 sm:$0xff]   ;;  %v5569_v52 = vld [vmem:[%s6603_s26 + $0x460] ss:$8 sps:$4 sm:$0xff]   ;;  %v5570_v53 = vld [vmem:[%s6603_s26 + $0x74] ss:$8 sps:$4 sm:$0xff]  }
  0xc4   : > { %1567 = vrot.lane.b32.xlu0 %v6644_v11, %s5975_s27  ;;  %1571 = vrot.lane.b32.xlu1 %v6648_v12, %s5975_s27  ;;  %v5572_v54 = vld [vmem:[%s6603_s26 + $0x474] ss:$8 sps:$4 sm:$0xff]   ;;  %v5574_v55 = vld [vmem:[%s6603_s26 + $0x70] ss:$8 sps:$4 sm:$0xff]   ;;  %vm1454_vm0 = vcmask 916480   ;;  %vm1429_vm1 = vcmask 1031168  }
  0xc5   : > { %4623 = vmatpush1.bf16.msra.mxu1 %v5544_v34  ;;  %v5575_v56 = vld [vmem:[%s6603_s26 + $0x470] ss:$8 sps:$4 sm:$0xff]   ;;  %v5576_v57 = vld [vmem:[%s6603_s26 + $0x84] ss:$8 sps:$4 sm:$0xff]   ;;  %v5580_v59 = vld [vmem:[%s6603_s26 + $0x80] ss:$8 sps:$4 sm:$0xff]  }
  0xc6   : > { %4787 = vmatpush1.bf16.msra.mxu0 %v5545_v35  ;;  %4624 = vmatprep.subr.bf16.mxu1 %v5546_v37  ;;  %v5578_v58 = vld [vmem:[%s6603_s26 + $0x484] ss:$8 sps:$4 sm:$0xff]   ;;  %v5581_v60 = vld [vmem:[%s6603_s26 + $0x480] ss:$8 sps:$4 sm:$0xff]   ;;  %v5582_v61 = vld [vmem:[%s6603_s26 + $0x94] ss:$8 sps:$4 sm:$0xff]  }
  0xc7   : > { %4788 = vmatprep.subr.bf16.mxu0 %v5548_v38  ;;  %v5584_v62 = vld [vmem:[%s6603_s26 + $0x494] ss:$8 sps:$4 sm:$0xff]   ;;  %v5586_v63 = vld [vmem:[%s6603_s26 + $0x90] ss:$8 sps:$4 sm:$0xff]   ;;  %v5588_v3 = vld [vmem:[%s6603_s26 + $0xa4] ss:$8 sps:$4 sm:$0xff]  }
  0xc8   : > { %1573 = vrot.lane.b32.xlu0 %v6655_v13, %s5975_s27  ;;  %1626 = vperm.xlu1 %5525, %v5101_v14   ;;  %v5587_v0 = vld [vmem:[%s6603_s26 + $0x490] ss:$8 sps:$4 sm:$0xff]   ;;  %v5590_v4 = vld [vmem:[%s6603_s26 + $0x4a4] ss:$8 sps:$4 sm:$0xff]   ;;  %v5592_v6 = vld [vmem:[%s6603_s26 + $0xa0] ss:$8 sps:$4 sm:$0xff]  }
  0xc9   : > { %4625 = vmatpush1.bf16.msra.mxu1 %v5550_v39  ;;  %v5106_v5 = vld [vmem:[%s8229_s1 + $0x24] sm:$0xf]  ;;  %v5107_v8 = vld [vmem:[%s8229_s1 + $0x28] sm:$0xf]  ;;  %v5596_v14 = vld [vmem:[%s6603_s26 + $0x4b4] ss:$8 sps:$4 sm:$0xff]  }
  0xca   : > { %4789 = vmatpush1.bf16.msra.mxu0 %v5551_v40  ;;  %4626 = vmatprep.subr.bf16.mxu1 %v5552_v41  ;;  %v5604_v24 = vld [vmem:[%s6603_s26 + $0xc0] ss:$8 sps:$4 sm:$0xff]   ;;  %v5109_v25 = vld [vmem:[%s8229_s1 + $0x30] sm:$0xf]  ;;  %v5606_v29 = vld [vmem:[%s6603_s26 + $0xd4] ss:$8 sps:$4 sm:$0xff]  }
  0xcb   : > { %4790 = vmatprep.subr.bf16.mxu0 %v5554_v42  ;;  %v5605_v26 = vld [vmem:[%s6603_s26 + $0x4c0] ss:$8 sps:$4 sm:$0xff]   ;;  %v5608_v30 = vld [vmem:[%s6603_s26 + $0x4d4] ss:$8 sps:$4 sm:$0xff]   ;;  %v5610_v32 = vld [vmem:[%s6603_s26 + $0xd0] ss:$8 sps:$4 sm:$0xff]  }
  0xcc   : > { %2346 = vperm.xlu0 %5524, %v5139_v15   ;;  %1419 = vrot.lane.b32.xlu1 %v6633_v9, %s5976_s11  ;;  %v5108_v15 = vld [vmem:[%s8229_s1 + $0x2c] sm:$0xf]  ;;  %v5148_v31 = vld [vmem:[%s8229_s1 + $0xbc] sm:$0xf]  ;;  %v5110_v33 = vld [vmem:[%s8229_s1 + $0x34] sm:$0xf] }
  0xcd   : > { %4627 = vmatpush1.bf16.msra.mxu1 %v5556_v43  ;;  %v5611_v34 = vld [vmem:[%s6603_s26 + $0x4d0] ss:$8 sps:$4 sm:$0xff]   ;;  %v5612_v37 = vld [vmem:[%s6603_s26 + $0xe4] ss:$8 sps:$4 sm:$0xff]   ;;  %v5149_v39 = vld [vmem:[%s8229_s1 + $0xc0] sm:$0xf] }
  0xce   : > { %4791 = vmatpush1.bf16.msra.mxu0 %v5557_v44  ;;  %4628 = vmatprep.subr.bf16.mxu1 %v5558_v45  ;;  %v5614_v38 = vld [vmem:[%s6603_s26 + $0x4e4] ss:$8 sps:$4 sm:$0xff]   ;;  %v5616_v40 = vld [vmem:[%s6603_s26 + $0xe0] ss:$8 sps:$4 sm:$0xff]   ;;  %v5111_v41 = vld [vmem:[%s8229_s1 + $0x38] sm:$0xf] }
  0xcf   : > { %4792 = vmatprep.subr.bf16.mxu0 %v5560_v46  ;;  %v5150_v44 = vld [vmem:[%s8229_s1 + $0xc4] sm:$0xf]  ;;  %v5112_v45 = vld [vmem:[%s8229_s1 + $0x3c] sm:$0xf]  ;;  %vm1575_vm2 = vcmask 1039360   ;;  %vm1641_vm5 = vcmask 908288  }
  0xd0   : > { %1421 = vrot.lane.b32.xlu0 %v6644_v11, %s5976_s11  ;;  %1425 = vrot.lane.b32.xlu1 %v6648_v12, %s5976_s11  ;;  %vm1479_vm6 = vcmask 900096   ;;  %vm1504_vm9 = vcmask 785408   ;;  %vm1707_vm10 = vcmask 777216   ;;  %vm1529_vm11 = vcmask 769024   ;;  %s1768_s7 = sld [smem:[#allocation2]]  ;;  %s5145_s8 = sld [smem:[#allocation2 + $0x4]] }
  0xd1   : > { %4629 = vmatpush1.bf16.msra.mxu1 %v5562_v47  ;;  %vm1739_vm12 = vcmask 1043456   ;;  %vm2993_vm13 = vcmask 1041409   ;;  %s7585_s28 = sld [smem:[#allocation2 + $0x1]]  ;;  %s7608_s29 = sld [smem:[#allocation2 + $0x5]] }
  0xd2   : > { %4793 = vmatpush1.bf16.msra.mxu0 %v5563_v48  ;;  %4630 = vmatprep.subr.bf16.mxu1 %v5564_v49  ;;  %v5151_v48 = vld [vmem:[%s8229_s1 + $0xc8] sm:$0xf]  ;;  %v5113_v49 = vld [vmem:[%s8229_s1 + $0x40] sm:$0xf]  ;;  %s7964_s9 = sld [smem:[#allocation2 + $0x6]]  ;;  %s8071_s10 = sld [smem:[#allocation2 + $0x7]] }
  0xd3   : > { %4794 = vmatprep.subr.bf16.mxu0 %v5566_v50  ;;  %s5095_s12 = sshll.u32 %s5963_s20, 1 }
  0xd4   : > { %1427 = vrot.lane.b32.xlu0 %v6655_v13, %s5976_s11  ;;  %1563 = vrot.lane.b32.xlu1 %v6626_v7, %s5975_s27  ;;  %p1348_p3 = scmp.lt.s32.totalorder %s5095_s12, 3 }
  0xd5   : > { %4631 = vmatpush1.bf16.msra.mxu1 %v5568_v51 }
  0xd6   : > { %4795 = vmatpush1.bf16.msra.mxu0 %v5569_v52  ;;  %4632 = vmatprep.subr.bf16.mxu1 %v5570_v53  ;;  %v5152_v52 = vld [vmem:[%s8229_s1 + $0xcc] sm:$0xf]  ;;  %v5617_v53 = vld [vmem:[%s6603_s26 + $0x4e0] ss:$8 sps:$4 sm:$0xff]   ;;  %s8477_s12 = smov (!%p1348_p3, %s5095_s12), 3 }
  0xd7   : > { %4796 = vmatprep.subr.bf16.mxu0 %v5572_v54  ;;  %v5114_v54 = vld [vmem:[%s8229_s1 + $0x44] sm:$0xf]  ;;  %s5097_s20 = sshll.u32 %s8477_s12, 1 }
  0xd8   : > { %1569 = vrot.lane.b32.xlu0 %v6638_v10, %s5975_s27  ;;  %1417 = vrot.lane.b32.xlu1 %v6626_v7, %s5976_s11 }
  0xd9   : > { %4633 = vmatpush1.bf16.msra.mxu1 %v5574_v55 }
  0xda   : > { %4797 = vmatpush1.bf16.msra.mxu0 %v5575_v56  ;;  %4634 = vmatprep.subr.bf16.mxu1 %v5576_v57  ;;  %v5618_v57 = vld [vmem:[%s6603_s26 + $0xf4] ss:$8 sps:$4 sm:$0xff]  }
  0xdb   : > { %4798 = vmatprep.subr.bf16.mxu0 %v5578_v58  ;;  %v5620_v58 = vld [vmem:[%s6603_s26 + $0x4f4] ss:$8 sps:$4 sm:$0xff]  }
  0xdc   : > { %1423 = vrot.lane.b32.xlu0 %v6638_v10, %s5976_s11  ;;  %1662 = vperm.xlu1 %5525, %v5102_v16   ;;  %v5598_v16 = vld [vmem:[%s6603_s26 + $0xb0] ss:$8 sps:$4 sm:$0xff]   ;;  %s8074_s11 = sld [smem:[#allocation2 + $0x3]] }
  0xdd   : > { %4635 = vmatpush1.bf16.msra.mxu1 %v5580_v59  ;;  %v5622_v59 = vld [vmem:[%s6603_s26 + $0xf0] ss:$8 sps:$4 sm:$0xff]  }
  0xde   : > { %4799 = vmatpush1.bf16.msra.mxu0 %v5581_v60  ;;  %4636 = vmatprep.subr.bf16.mxu1 %v5582_v61  ;;  %v5623_v60 = vld [vmem:[%s6603_s26 + $0x4f0] ss:$8 sps:$4 sm:$0xff]   ;;  %v5626_v61 = vld [vmem:[%s6603_s26 + $0x104] ss:$8 sps:$4 sm:$0xff]  }
  0xdf   : > { %4800 = vmatprep.subr.bf16.mxu0 %v5584_v62  ;;  %v5153_v62 = vld [vmem:[%s8229_s1 + $0xd0] sm:$0xf] }
  0xe0   : > { %2361 = vperm.xlu0 %5524, %v5140_v17   ;;  %1444 = vrot.lane.b32.xlu1 %v6633_v9, %s5977_s16  ;;  %v5146_v17 = vld [vmem:[%s8229_s1 + $0xb4] sm:$0xf] }
  0xe1   : > { %4637 = vmatpush1.bf16.msra.mxu1 %v5586_v63  ;;  %v5629_v63 = vld [vmem:[%s6603_s26 + $0x504] ss:$8 sps:$4 sm:$0xff]  }
  0xe2   : > { %4801 = vmatpush1.bf16.msra.mxu0 %v5587_v0  ;;  %4638 = vmatprep.subr.bf16.mxu1 %v5588_v3  ;;  %v5154_v0 = vld [vmem:[%s8229_s1 + $0xd4] sm:$0xf] }
  0xe3   : > { %4802 = vmatprep.subr.bf16.mxu0 %v5590_v4 }
  0xe4   : > { %1446 = vrot.lane.b32.xlu0 %v6644_v11, %s5977_s16  ;;  %1450 = vrot.lane.b32.xlu1 %v6648_v12, %s5977_s16 }
  0xe5   : > { %4639 = vmatpush1.bf16.msra.mxu1 %v5592_v6  ;;  %v5117_v6 = vld [vmem:[%s8229_s1 + $0x4c] sm:$0xf] }
  0xe8   : > { %1452 = vrot.lane.b32.xlu0 %v6655_v13, %s5977_s16  ;;  %1442 = vrot.lane.b32.xlu1 %v6626_v7, %s5977_s16 }
  0xec   : > { %1448 = vrot.lane.b32.xlu0 %v6638_v10, %s5977_s16  ;;  %1677 = vperm.xlu1 %5525, %v5103_v18   ;;  %s5981_s16 = smov 95   ;;  %v5599_v18 = vld [vmem:[%s6603_s26 + $0x4b0] ss:$8 sps:$4 sm:$0xff]  }
  0xf0   : > { %2376 = vperm.xlu0 %5524, %v5141_v19   ;;  %1631 = vrot.lane.b32.xlu1 %v6633_v9, %s5978_s6 }
  0xf4   : > { %1633 = vrot.lane.b32.xlu0 %v6644_v11, %s5978_s6  ;;  %1637 = vrot.lane.b32.xlu1 %v6648_v12, %s5978_s6 }
  0xf8   : > { %1639 = vrot.lane.b32.xlu0 %v6655_v13, %s5978_s6  ;;  %1692 = vperm.xlu1 %5525, %v5104_v20  }
  0xfc   : > { %2391 = vperm.xlu0 %5524, %v5142_v21   ;;  %1469 = vrot.lane.b32.xlu1 %v6633_v9, %s5979_s18  ;;  %v5600_v21 = vld [vmem:[%s6603_s26 + $0xc4] ss:$8 sps:$4 sm:$0xff]  }
 0x100   : > { %1471 = vrot.lane.b32.xlu0 %v6644_v11, %s5979_s18  ;;  %1475 = vrot.lane.b32.xlu1 %v6648_v12, %s5979_s18 }
 0x104   : > { %1477 = vrot.lane.b32.xlu0 %v6655_v13, %s5979_s18  ;;  %1629 = vrot.lane.b32.xlu1 %v6626_v7, %s5978_s6 }
 0x108   : > { %1635 = vrot.lane.b32.xlu0 %v6638_v10, %s5978_s6  ;;  %1467 = vrot.lane.b32.xlu1 %v6626_v7, %s5979_s18 }
 0x10c   : > { %1473 = vrot.lane.b32.xlu0 %v6638_v10, %s5979_s18  ;;  %1728 = vperm.xlu1 %5525, %v5105_v22   ;;  %v5602_v22 = vld [vmem:[%s6603_s26 + $0x4c4] ss:$8 sps:$4 sm:$0xff]   ;;  %s7610_s18 = sld [smem:[#allocation2 + $0x2]] }
 0x110   : > { %2406 = vperm.xlu0 %5524, %v5143_v23   ;;  %1494 = vrot.lane.b32.xlu1 %v6633_v9, %s5980_s13  ;;  %v5147_v23 = vld [vmem:[%s8229_s1 + $0xb8] sm:$0xf] }
 0x114   : > { %1496 = vrot.lane.b32.xlu0 %v6644_v11, %s5980_s13  ;;  %1500 = vrot.lane.b32.xlu1 %v6648_v12, %s5980_s13 }
 0x118   : > { %1502 = vrot.lane.b32.xlu0 %v6655_v13, %s5980_s13  ;;  %1492 = vrot.lane.b32.xlu1 %v6626_v7, %s5980_s13 }
 0x11c   : > { %1498 = vrot.lane.b32.xlu0 %v6638_v10, %s5980_s13  ;;  %2421 = vperm.xlu1 %5525, %v5144_v36  }
 0x120   : > { %1697 = vrot.lane.b32.xlu0 %v6633_v9, %s5981_s16  ;;  %1699 = vrot.lane.b32.xlu1 %v6644_v11, %s5981_s16 }
 0x124   : > { %1703 = vrot.lane.b32.xlu0 %v6648_v12, %s5981_s16  ;;  %1705 = vrot.lane.b32.xlu1 %v6655_v13, %s5981_s16 }
 0x128   : > { %1519 = vrot.lane.b32.xlu0 %v6633_v9, %s5982_s17  ;;  %1521 = vrot.lane.b32.xlu1 %v6644_v11, %s5982_s17 }
 0x12c   : > { %1525 = vrot.lane.b32.xlu0 %v6648_v12, %s5982_s17  ;;  %1527 = vrot.lane.b32.xlu1 %v6655_v13, %s5982_s17 }
 0x130   : > { %1695 = vrot.lane.b32.xlu0 %v6626_v7, %s5981_s16  ;;  %1701 = vrot.lane.b32.xlu1 %v6638_v10, %s5981_s16 }
 0x133   : > { %v6783_v1 = vpop.permute.xlu1 %1596  ;;  %v6785_v2 = vpop.permute.xlu0 %1545 }
 0x134   : > { %1517 = vrot.lane.b32.xlu0 %v6626_v7, %s5982_s17  ;;  %1523 = vrot.lane.b32.xlu1 %v6638_v10, %s5982_s17  ;;  %v5593_v7 = vld [vmem:[%s6603_s26 + $0x4a0] ss:$8 sps:$4 sm:$0xff]   ;;  %v5594_v10 = vld [vmem:[%s6603_s26 + $0xb4] ss:$8 sps:$4 sm:$0xff]   ;;  %s1360_s17 = scalar_lea.vmem %s8233_s5, %s5097_s20 }
 0x135   : > { %4803 = vmatpush1.bf16.msra.mxu0 %v5593_v7  ;;  %4640 = vmatprep.subr.bf16.mxu1 %v5594_v10  ;;  %v5118_v10 = vld [vmem:[%s8229_s1 + $0x50] sm:$0xf] }
 0x136   : > { %4804 = vmatprep.subr.bf16.mxu0 %v5596_v14  ;;  %4641 = vmatpush1.bf16.msra.mxu1 %v5598_v16  ;;  %v5156_v14 = vld [vmem:[%s8229_s1 + $0xd8] sm:$0xf] }
 0x137   : > { %v6801_v11 = vpop.permute.xlu1 %2301  ;;  %v6803_v13 = vpop.permute.xlu0 %1560  ;;  %4642 = vmatprep.subr.bf16.mxu1 %v5600_v21 }
 0x138   : > { %1782 = vperm.xlu0 %5524, %v5106_v5   ;;  %1797 = vperm.xlu1 %5525, %v5107_v8   ;;  %v5116_v5 = vld [vmem:[%s8229_s1 + $0x48] sm:$0xf] }
 0x139   : > { %4805 = vmatpush1.bf16.msra.mxu0 %v5599_v18  ;;  %v5119_v18 = vld [vmem:[%s8229_s1 + $0x54] sm:$0xf] }
 0x13a   : > { %4806 = vmatprep.subr.bf16.mxu0 %v5602_v22  ;;  %4643 = vmatpush1.bf16.msra.mxu1 %v5604_v24  ;;  %v5120_v24 = vld [vmem:[%s8229_s1 + $0x58] sm:$0xf] }
 0x13b   : > { %v6815_v19 = vpop.permute.xlu1 %1611  ;;  %v6817_v20 = vpop.permute.xlu0 %2316  ;;  %4644 = vmatprep.subr.bf16.mxu1 %v5606_v29 }
 0x13c   : > { %1812 = vperm.xlu0 %5524, %v5108_v15   ;;  %2474 = vperm.xlu1 %5525, %v5146_v17   ;;  %v5157_v17 = vld [vmem:[%s8229_s1 + $0xdc] sm:$0xf] }
 0x13d   : > { %4807 = vmatpush1.bf16.msra.mxu0 %v5605_v26 }
 0x13e   : > { %4808 = vmatprep.subr.bf16.mxu0 %v5608_v30  ;;  %4645 = vmatpush1.bf16.msra.mxu1 %v5610_v32  ;;  %v5159_v30 = vld [vmem:[%s8229_s1 + $0xe4] sm:$0xf] }
 0x13f   : > { %v6829_v27 = vpop.permute.xlu0 %2331  ;;  %v6831_v28 = vpop.permute.xlu1 %1565  ;;  %4646 = vmatprep.subr.bf16.mxu1 %v5612_v37  ;;  %v5160_v37 = vld [vmem:[%s8229_s1 + $0xe8] sm:$0xf] }
 0x140   : > { %2489 = vperm.xlu0 %5524, %v5147_v23   ;;  %1827 = vperm.xlu1 %5525, %v5109_v25   ;;  %v5158_v23 = vld [vmem:[%s8229_s1 + $0xe0] sm:$0xf] }
 0x141   : > { %4809 = vmatpush1.bf16.msra.mxu0 %v5611_v34 }
 0x142   : > { %4810 = vmatprep.subr.bf16.mxu0 %v5614_v38  ;;  %4647 = vmatpush1.bf16.msra.mxu1 %v5616_v40  ;;  %v5122_v38 = vld [vmem:[%s8229_s1 + $0x60] sm:$0xf] }
 0x143   : > { %v6843_v35 = vpop.permute.xlu0 %1567  ;;  %v6845_v36 = vpop.permute.xlu1 %1571  ;;  %4648 = vmatprep.subr.bf16.mxu1 %v5618_v57 }
 0x144   : > { %2504 = vperm.xlu0 %5524, %v5148_v31   ;;  %1842 = vperm.xlu1 %5525, %v5110_v33   ;;  %v5121_v31 = vld [vmem:[%s8229_s1 + $0x5c] sm:$0xf] }
 0x145   : > { %4811 = vmatpush1.bf16.msra.mxu0 %v5617_v53  ;;  %v5124_v53 = vld [vmem:[%s8229_s1 + $0x68] sm:$0xf] }
 0x146   : > { %4812 = vmatprep.subr.bf16.mxu0 %v5620_v58  ;;  %4649 = vmatpush1.bf16.msra.mxu1 %v5622_v59  ;;  %v5163_v59 = vld [vmem:[%s8229_s1 + $0xf4] sm:$0xf] }
 0x147   : > { %v6856_v42 = vpop.permute.xlu0 %1573  ;;  %v6858_v43 = vpop.permute.xlu1 %1626  ;;  %4659 = vmatprep.subr.bf16.mxu1 %v5626_v61  ;;  %v5164_v61 = vld [vmem:[%s8229_s1 + $0xf8] sm:$0xf] }
 0x148   : > { %2519 = vperm.xlu0 %5524, %v5149_v39   ;;  %1857 = vperm.xlu1 %5525, %v5111_v41   ;;  %v5161_v41 = vld [vmem:[%s8229_s1 + $0xec] sm:$0xf] }
 0x149   : > { %4813 = vmatpush1.bf16.msra.mxu0 %v5623_v60 }
 0x14a   : > { %4823 = vmatprep.subr.bf16.mxu0 %v5629_v63 }
 0x14b   : > { %v6866_v46 = vpop.permute.xlu0 %2346  ;;  %v6868_v47 = vpop.permute.xlu1 %1419 }
 0x14c   : > { %2534 = vperm.xlu0 %5524, %v5150_v44   ;;  %1872 = vperm.xlu1 %5525, %v5112_v45   ;;  %v5123_v44 = vld [vmem:[%s8229_s1 + $0x64] sm:$0xf] }
 0x14f   : > { %v6876_v50 = vpop.permute.xlu0 %1421  ;;  %v6878_v51 = vpop.permute.xlu1 %1425 }
 0x150   : > { %2549 = vperm.xlu0 %5524, %v5151_v48   ;;  %1887 = vperm.xlu1 %5525, %v5113_v49   ;;  %v8234_v49 = vlaneseq }
 0x152   : > { %v1363_v58 = vand.u32 127, %v8234_v49 }
 0x153   : > { %v6887_v55 = vpop.permute.xlu0 %1427  ;;  %v6889_v56 = vpop.permute.xlu1 %1563 }
 0x154   : > { %2564 = vperm.xlu0 %5524, %v5152_v52   ;;  %1902 = vperm.xlu1 %5525, %v5114_v54   ;;  %v5162_v52 = vld [vmem:[%s8229_s1 + $0xf0] sm:$0xf]  ;;  %v1369_v60 = vand.u32 15, %v1363_v58 }
 0x156   : > { %vm7000_vm3 = vcmp.ne.s32.totalorder %v1369_v60, 15  ;;  %vm7015_vm4 = vcmp.ne.s32.totalorder %v1369_v60, 0 }
 0x157   : > { %v6903_v3 = vpop.permute.xlu0 %1569  ;;  %v6905_v4 = vpop.permute.xlu1 %1417 }
 0x158   : > { %2579 = vperm.xlu0 %5524, %v5153_v62   ;;  %2594 = vperm.xlu1 %5525, %v5154_v0  }
 0x15b   : > { %v6913_v8 = vpop.permute.xlu0 %1423  ;;  %v6915_v7 = vpop.permute.xlu1 %1662 }
 0x15c   : > { %1955 = vperm.xlu0 %5524, %v5116_v5   ;;  %1970 = vperm.xlu1 %5525, %v5117_v6   ;;  %v1430_v5 = vsel %vm1429_vm1, %v6905_v4, %v6868_v47  ;;  %v7010_v6 = vsel %vm1575_vm2, %v6889_v56, %v6831_v28 }
 0x15d   : > { %8347 = vst [vmem:[#allocation8_spill] sm:$0xff] %v7010_v6  ;;  %v7024_v4 = vsel %vm7000_vm3, %v1430_v5, 0.0 }
 0x15e   : > { %8350 = vst [vmem:[#allocation9_spill] sm:$0xff] %v7024_v4 }
 0x15f   : > { %v6923_v15 = vpop.permute.xlu0 %2361  ;;  %v6925_v16 = vpop.permute.xlu1 %1444 }
 0x160   : > { %1985 = vperm.xlu0 %5524, %v5118_v10   ;;  %2647 = vperm.xlu1 %5525, %v5156_v14   ;;  %v5126_v10 = vld [vmem:[%s8229_s1 + $0x6c] sm:$0xf] }
 0x163   : > { %v6933_v21 = vpop.permute.xlu0 %1446  ;;  %v6935_v22 = vpop.permute.xlu1 %1450 }
 0x164   : > { %2662 = vperm.xlu0 %5524, %v5157_v17   ;;  %2000 = vperm.xlu1 %5525, %v5119_v18   ;;  %v5127_v17 = vld [vmem:[%s8229_s1 + $0x70] sm:$0xf] }
 0x167   : > { %v6943_v25 = vpop.permute.xlu0 %1452  ;;  %v1443_v26 = vpop.permute.xlu1 %1442 }
 0x168   : > { %v1455_v29 = vsel %vm1454_vm0, %v1443_v26, %v6925_v16  ;;  %2677 = vperm.xlu0 %5524, %v5158_v23   ;;  %2015 = vperm.xlu1 %5525, %v5120_v24   ;;  %v2319_v23 = vmul.f32 %v6817_v20, %v7010_v6  ;;  %v7035_v24 = vsel %vm1575_vm2, %v6903_v3, %v6845_v36  ;;  %v5128_v3 = vld [vmem:[%s8229_s1 + $0x74] sm:$0xf] }
 0x169   : > { %8351 = vst [vmem:[#allocation10_spill] sm:$0xff] %v7035_v24  ;;  %v1432_v26 = vsel %vm1429_vm1, %v6913_v8, %v6878_v51 }
 0x16b   : > { %v1449_v32 = vpop.permute.xlu0 %1448  ;;  %v6953_v33 = vpop.permute.xlu1 %1677 }
 0x16c   : > { %8343 = vst [vmem:[#allocation6_spill] sm:$0xff] %v6953_v33  ;;  %2692 = vperm.xlu0 %5524, %v5159_v30   ;;  %v6957_v34 = vsel %vm1454_vm0, %v1449_v32, %v6935_v22  ;;  %2030 = vperm.xlu1 %5525, %v5121_v31   ;;  %v5912_v30 = vld [vmem:[%s8228_s0] sm:$0xff]  ;;  %v7049_v32 = vsel %vm7015_vm4, %v1455_v29, 0.0  ;;  %v2321_v29 = vmul.f32 %v6817_v20, %v7035_v24 }
 0x16d   : > { %v7045_v31 = vsel %vm7015_vm4, %v5912_v30, 0.0 }
 0x16e   : > { %8352 = vst [vmem:[#allocation11_spill] sm:$0xff] %v7045_v31  ;;  %v2304_v8 = vmul.f32 %v6801_v11, %v7045_v31 }
 0x16f   : > { %v6965_v39 = vpop.permute.xlu0 %2376  ;;  %v6967_v40 = vpop.permute.xlu1 %1631 }
 0x170   : > { %2707 = vperm.xlu0 %5524, %v5160_v37   ;;  %2045 = vperm.xlu1 %5525, %v5122_v38   ;;  %v2334_v37 = vmul.f32 %v6829_v27, %v7024_v4  ;;  %v5166_v38 = vld [vmem:[%s8229_s1 + $0xfc] sm:$0xf] }
 0x173   : > { %v6975_v45 = vpop.permute.xlu0 %1633  ;;  %v6977_v48 = vpop.permute.xlu1 %1637 }
 0x174   : > { %2722 = vperm.xlu0 %5524, %v5161_v41   ;;  %2060 = vperm.xlu1 %5525, %v5123_v44   ;;  %v1364_v41 = vadd.s32 128, %v1363_v58  ;;  %v7065_v44 = vsel %vm7000_vm3, %v1432_v26, 0.0  ;;  %v2323_v58 = vadd.f32 %v2319_v23, %v2304_v8  ;;  %v5167_v23 = vld [vmem:[%s8229_s1 + $0x100] sm:$0xf]  ;;  %v5129_v8 = vld [vmem:[%s8229_s1 + $0x78] sm:$0xf] }
 0x175   : > { %8353 = vst [vmem:[#allocation12_spill] sm:$0xff] %v7065_v44  ;;  %v2336_v30 = vmul.f32 %v6829_v27, %v7065_v44 }
 0x176   : > { %v2338_v26 = vadd.f32 %v2334_v37, %v2323_v58 }
 0x177   : > { %v6985_v54 = vpop.permute.xlu0 %1639  ;;  %v6987_v57 = vpop.permute.xlu1 %1692 }
 0x178   : > { %8344 = vst [vmem:[#allocation7_spill] sm:$0xff] %v6987_v57  ;;  %2737 = vperm.xlu0 %5524, %v5162_v52   ;;  %2075 = vperm.xlu1 %5525, %v5124_v53  }
 0x17b   : > { %v6996_v62 = vpop.permute.xlu0 %2391  ;;  %v6998_v63 = vpop.permute.xlu1 %1469 }
 0x17c   : > { %2752 = vperm.xlu0 %5524, %v5163_v59   ;;  %2767 = vperm.xlu1 %5525, %v5164_v61   ;;  %v5913_v59 = vld [vmem:[%s8228_s0 + $0xc] sm:$0xff]  ;;  %v2349_v61 = vmul.f32 %v6866_v46, %v7049_v32 }
 0x17d   : > { %v7074_v60 = vsel %vm7015_vm4, %v5913_v59, 0.0 }
 0x17e   : > { %8354 = vst [vmem:[#allocation13_spill] sm:$0xff] %v7074_v60  ;;  %v2353_v49 = vadd.f32 %v2349_v61, %v2338_v26 }
 0x17f   : > { %v7026_v18 = vpop.permute.xlu0 %1471  ;;  %v7028_v56 = vpop.permute.xlu1 %1475 }
 0x180   : > { %2128 = vperm.xlu0 %5524, %v5126_v10   ;;  %2143 = vperm.xlu1 %5525, %v5127_v17   ;;  %v2306_v10 = vmul.f32 %v6801_v11, %v7074_v60  ;;  %v7087_v17 = vsel %vm7015_vm4, %v6957_v34, 0.0 }
 0x181   : > { %v2351_v57 = vmul.f32 %v6866_v46, %v7087_v17 }
 0x182   : > { %v2325_v59 = vadd.f32 %v2321_v29, %v2306_v10 }
 0x183   : > { %v7067_v52 = vpop.permute.xlu0 %1477  ;;  %v1630_v53 = vpop.permute.xlu1 %1629 }
 0x184   : > { %v7080_v5 = vsel %vm1641_vm5, %v1630_v53, %v6967_v40  ;;  %2158 = vperm.xlu0 %5524, %v5128_v3   ;;  %2820 = vperm.xlu1 %5525, %v5166_v38   ;;  %v1376_v53 = vand.u32 15, %v1364_v41  ;;  %v5168_v41 = vld [vmem:[%s8229_s1 + $0x104] sm:$0xf]  ;;  %v2340_v29 = vadd.f32 %v2336_v30, %v2325_v59  ;;  %v5169_v59 = vld [vmem:[%s8229_s1 + $0x108] sm:$0xf] }
 0x185   : > { %8355 = vst [vmem:[#allocation14_spill] sm:$0xff] %v7080_v5  ;;  %v2364_v3 = vmul.f32 %v6923_v15, %v7080_v5  ;;  %v8393_v0 = vld [vmem:[#allocation13_spill] sm:$0xff] }
 0x186   : > { %vm7121_vm7 = vcmp.ne.s32.totalorder %v1376_v53, 0  ;;  %vm7158_vm8 = vcmp.ne.s32.totalorder %v1376_v53, 15 }
 0x187   : > { %v1636_v34 = vpop.permute.xlu0 %1635  ;;  %v1468_v38 = vpop.permute.xlu1 %1467  ;;  %v2368_v61 = vadd.f32 %v2364_v3, %v2353_v49 }
 0x188   : > { %v7103_v37 = vsel %vm1641_vm5, %v1636_v34, %v6977_v48  ;;  %v1480_v58 = vsel %vm1479_vm6, %v1468_v38, %v6998_v63  ;;  %2835 = vperm.xlu0 %5524, %v5167_v23   ;;  %2173 = vperm.xlu1 %5525, %v5129_v8   ;;  %v5130_v23 = vld [vmem:[%s8229_s1 + $0x7c] sm:$0xf] }
 0x189   : > { %8356 = vst [vmem:[#allocation15_spill] sm:$0xff] %v7103_v37  ;;  %v7109_v33 = vsel %vm7000_vm3, %v1480_v58, 0.0  ;;  %v2366_v10 = vmul.f32 %v6923_v15, %v7103_v37  ;;  %v2355_v58 = vadd.f32 %v2351_v57, %v2340_v29  ;;  %v7146_v57 = vsel %vm7121_vm7, %v6648_v12, 0.0 }
 0x18a   : > { %v2379_v26 = vmul.f32 %v6965_v39, %v7109_v33  ;;  %8362 = vst [vmem:[#allocation19_spill] sm:$0xff] %v7146_v57  ;;  %v1431_v12 = vsel %vm1429_vm1, %v6868_v47, %v6876_v50  ;;  %v1548_v47 = vmul.f32 %v6785_v2, %v7045_v31 }
 0x18b   : > { %v1474_v8 = vpop.permute.xlu0 %1473  ;;  %v7125_v38 = vpop.permute.xlu1 %1728 }
 0x18c   : > { %8359 = vst [vmem:[#allocation16_spill] sm:$0xff] %v7125_v38  ;;  %v7127_v30 = vadd.f32 %v2379_v26, %v2368_v61  ;;  %v1482_v49 = vsel %vm1479_vm6, %v1474_v8, %v7028_v56  ;;  %2850 = vperm.xlu0 %5524, %v5168_v41   ;;  %2188 = vperm.xlu1 %5525, %v5130_v23   ;;  %v7141_v38 = vsel %vm7121_vm7, %v6633_v9, 0.0  ;;  %v5131_v61 = vld [vmem:[%s8229_s1 + $0x80] sm:$0xf] }
 0x18d   : > { %v7133_v3 = vsel %vm7000_vm3, %v1482_v49, 0.0  ;;  %8361 = vst [vmem:[#allocation18_spill] sm:$0xff] %v7141_v38  ;;  %v2370_v41 = vadd.f32 %v2366_v10, %v2355_v58  ;;  %v7156_v26 = vsel %vm1575_vm2, %v6831_v28, %v6843_v35  ;;  %v1433_v10 = vsel %vm1429_vm1, %v6878_v51, %v6887_v55 }
 0x18e   : > { %8360 = vst [vmem:[#allocation17_spill] sm:$0xff] %v7133_v3  ;;  %v2381_v29 = vmul.f32 %v6965_v39, %v7133_v3  ;;  %8363 = vst [vmem:[#allocation20_spill] sm:$0xff] %v7156_v26  ;;  %v7175_v28 = vsel %vm1575_vm2, %v6845_v36, %v6856_v42  ;;  %v1549_v50 = vmul.f32 %v6785_v2, %v7141_v38  ;;  %v5170_v36 = vld [vmem:[%s8229_s1 + $0x10c] sm:$0xf]  ;;  %v7197_v58 = vsel %vm7158_vm8, %v1431_v12, 0.0 }
 0x18f   : > { %v7168_v23 = vpop.permute.xlu0 %2406  ;;  %v7170_v8 = vpop.permute.xlu1 %1494  ;;  %8366 = vst [vmem:[#allocation21_spill] sm:$0xff] %v7175_v28  ;;  %v1550_v51 = vmul.f32 %v6785_v2, %v7074_v60  ;;  %v1456_v55 = vsel %vm1454_vm0, %v6925_v16, %v6933_v21  ;;  %v1551_v42 = vmul.f32 %v6785_v2, %v7146_v57  ;;  %v1585_v53 = vmul.f32 %v7156_v26, %v6803_v13  ;;  %v5132_v16 = vld [vmem:[%s8229_s1 + $0x84] sm:$0xf] }
 0x190   : > { %v7177_v35 = vadd.f32 %v2381_v29, %v2370_v41  ;;  %2865 = vperm.xlu0 %5524, %v5169_v59   ;;  %2203 = vperm.xlu1 %5525, %v5131_v61   ;;  %8367 = vst [vmem:[#allocation22_spill] sm:$0xff] %v7197_v58  ;;  %v7201_v49 = vsel %vm7158_vm8, %v1433_v10, 0.0  ;;  %v2305_v21 = vmul.f32 %v6801_v11, %v7141_v38 }
 0x191   : > { %8368 = vst [vmem:[#allocation23_spill] sm:$0xff] %v7201_v49  ;;  %v2320_v2 = vmul.f32 %v6817_v20, %v7156_v26  ;;  %v1587_v59 = vmul.f32 %v7175_v28, %v6803_v13  ;;  %v2322_v41 = vmul.f32 %v6817_v20, %v7175_v28  ;;  %v2307_v12 = vmul.f32 %v6801_v11, %v7146_v57 }
 0x192   : > { %v1584_v10 = vmul.f32 %v7010_v6, %v6803_v13  ;;  %v1586_v60 = vmul.f32 %v7035_v24, %v6803_v13  ;;  %v7224_v26 = vsel %vm7121_vm7, %v1456_v55, 0.0  ;;  %v1600_v20 = vmul.f32 %v6783_v1, %v7197_v58  ;;  %v5171_v13 = vld [vmem:[%s8229_s1 + $0x110] sm:$0xf]  ;;  %v5133_v6 = vld [vmem:[%s8229_s1 + $0x88] sm:$0xf] }
 0x193   : > { %v1497_v29 = vpop.permute.xlu0 %1496  ;;  %v7214_v61 = vpop.permute.xlu1 %1500  ;;  %v2335_v28 = vmul.f32 %v6829_v27, %v7197_v58  ;;  %v1602_v11 = vmul.f32 %v6783_v1, %v7201_v49  ;;  %v1458_v57 = vsel %vm1454_vm0, %v6935_v22, %v6943_v25  ;;  %v1589_v55 = vadd.f32 %v1585_v53, %v1549_v50 }
 0x194   : > { %2880 = vperm.xlu0 %5524, %v5170_v36   ;;  %2218 = vperm.xlu1 %5525, %v5132_v16   ;;  %v2337_v36 = vmul.f32 %v6829_v27, %v7201_v49  ;;  %v1599_v24 = vmul.f32 %v6783_v1, %v7024_v4  ;;  %v1601_v58 = vmul.f32 %v6783_v1, %v7065_v44  ;;  %v7251_v49 = vsel %vm7121_vm7, %v1458_v57, 0.0 }
 0x195   : > { %v2324_v22 = vadd.f32 %v2320_v2, %v2305_v21  ;;  %v1591_v25 = vadd.f32 %v1587_v59, %v1551_v42  ;;  %v2326_v16 = vadd.f32 %v2322_v41, %v2307_v12  ;;  %v1615_v38 = vmul.f32 %v6815_v19, %v7224_v26 }
 0x196   : > { %v1588_v31 = vadd.f32 %v1584_v10, %v1548_v47  ;;  %v1590_v27 = vadd.f32 %v1586_v60, %v1550_v51  ;;  %v1604_v44 = vadd.f32 %v1600_v20, %v1589_v55  ;;  %v5172_v60 = vld [vmem:[%s8229_s1 + $0x114] sm:$0xf]  ;;  %v2350_v12 = vmul.f32 %v6866_v46, %v7224_v26 }
 0x197   : > { %v1503_v50 = vpop.permute.xlu0 %1502  ;;  %v1493_v53 = vpop.permute.xlu1 %1492  ;;  %v2339_v21 = vadd.f32 %v2335_v28, %v2324_v22  ;;  %v1606_v42 = vadd.f32 %v1602_v11, %v1591_v25  ;;  %v2341_v47 = vadd.f32 %v2337_v36, %v2326_v16  ;;  %v5134_v28 = vld [vmem:[%s8229_s1 + $0x8c] sm:$0xf]  ;;  %v1481_v10 = vsel %vm1479_vm6, %v6998_v63, %v7026_v18 }
 0x198   : > { %v1505_v1 = vsel %vm1504_vm9, %v1493_v53, %v7170_v8  ;;  %2895 = vperm.xlu0 %5524, %v5171_v13   ;;  %2233 = vperm.xlu1 %5525, %v5133_v6   ;;  %v1603_v57 = vadd.f32 %v1599_v24, %v1588_v31  ;;  %v1605_v51 = vadd.f32 %v1601_v58, %v1590_v27 }
 0x199   : > { %v7257_v2 = vsel %vm7015_vm4, %v1505_v1, 0.0  ;;  %v1619_v41 = vadd.f32 %v1615_v38, %v1604_v44  ;;  %v1617_v6 = vmul.f32 %v6815_v19, %v7251_v49  ;;  %v2352_v58 = vmul.f32 %v6866_v46, %v7251_v49 }
 0x19a   : > { %8369 = vst [vmem:[#allocation24_spill] sm:$0xff] %v7257_v2  ;;  %v2394_v59 = vmul.f32 %v6996_v62, %v7257_v2  ;;  %v7281_v44 = vsel %vm1641_vm5, %v6967_v40, %v6975_v45  ;;  %v1614_v63 = vmul.f32 %v6815_v19, %v7049_v32  ;;  %v7293_v18 = vsel %vm1641_vm5, %v6977_v48, %v6985_v54  ;;  %v5173_v45 = vld [vmem:[%s8229_s1 + $0x118] sm:$0xf] }
 0x19b   : > { %v1499_v24 = vpop.permute.xlu0 %1498  ;;  %v7274_v31 = vpop.permute.xlu1 %2421  ;;  %8370 = vst [vmem:[#allocation25_spill] sm:$0xff] %v7281_v44  ;;  %8371 = vst [vmem:[#allocation26_spill] sm:$0xff] %v7293_v18  ;;  %v1483_v46 = vsel %vm1479_vm6, %v7028_v56, %v7067_v52  ;;  %v7309_v48 = vsel %vm7158_vm8, %v1481_v10, 0.0  ;;  %v1506_v54 = vsel %vm1504_vm9, %v7170_v8, %v1497_v29  ;;  %v5174_v56 = vld [vmem:[%s8229_s1 + $0x11c] sm:$0xf]  ;;  %v2354_v52 = vadd.f32 %v2350_v12, %v2339_v21 }
 0x19c   : > { %v7284_v38 = vadd.f32 %v2394_v59, %v7127_v30  ;;  %v1507_v20 = vsel %vm1504_vm9, %v1499_v24, %v7214_v61  ;;  %2910 = vperm.xlu0 %5524, %v5172_v60   ;;  %2248 = vperm.xlu1 %5525, %v5134_v28   ;;  %v1616_v30 = vmul.f32 %v6815_v19, %v7087_v17  ;;  %v7330_v22 = vsel %vm7158_vm8, %v1483_v46, 0.0  ;;  %v8379_v46 = vld [vmem:[#allocation7_spill] sm:$0xff] }
 0x19d   : > { %v7300_v40 = vsel %vm7015_vm4, %v1507_v20, 0.0  ;;  %8373 = vst [vmem:[#allocation28_spill] sm:$0xff] %v7309_v48  ;;  %v1621_v11 = vadd.f32 %v1617_v6, %v1606_v42  ;;  %v1651_v13 = vmul.f32 %v7281_v44, %v6858_v43  ;;  %v2365_v19 = vmul.f32 %v6923_v15, %v7281_v44  ;;  %8374 = vst [vmem:[#allocation29_spill] sm:$0xff] %v7330_v22 }
 0x19e   : > { %8372 = vst [vmem:[#allocation27_spill] sm:$0xff] %v7300_v40  ;;  %v2396_v14 = vmul.f32 %v6996_v62, %v7300_v40  ;;  %v1653_v8 = vmul.f32 %v7293_v18, %v6858_v43  ;;  %v2367_v29 = vmul.f32 %v6923_v15, %v7293_v18  ;;  %v1666_v16 = vmul.f32 %v6915_v7, %v7309_v48 }
 0x19f   : > { %v7322_v55 = vpop.permute.xlu0 %1697  ;;  %v1700_v36 = vpop.permute.xlu1 %1699  ;;  %v2380_v53 = vmul.f32 %v6965_v39, %v7309_v48  ;;  %v7341_v27 = vsel %vm7121_vm7, %v1506_v54, 0.0  ;;  %v1508_v15 = vsel %vm1504_vm9, %v7214_v61, %v1503_v50  ;;  %v2356_v1 = vadd.f32 %v2352_v58, %v2341_v47  ;;  %v8377_v50 = vld [vmem:[#allocation6_spill] sm:$0xff] }
 0x1a0   : > { %v7333_v25 = vadd.f32 %v2396_v14, %v7177_v35  ;;  %2925 = vperm.xlu0 %5524, %v5173_v45   ;;  %8375 = vst [vmem:[#allocation30_spill] sm:$0xff] %v7341_v27  ;;  %2940 = vperm.xlu1 %5525, %v5174_v56   ;;  %v1618_v21 = vadd.f32 %v1614_v63, %v1603_v57 }
 0x1a1   : > { %v1620_v42 = vadd.f32 %v1616_v30, %v1605_v51  ;;  %v1650_v35 = vmul.f32 %v7080_v5, %v6858_v43  ;;  %v1655_v60 = vadd.f32 %v1651_v13, %v1619_v41  ;;  %v2369_v59 = vadd.f32 %v2365_v19, %v2354_v52 }
 0x1a2   : > { %v1668_v28 = vmul.f32 %v6915_v7, %v7330_v22  ;;  %v7351_v12 = vsel %vm1707_vm10, %v7322_v55, %v1700_v36  ;;  %v2382_v61 = vmul.f32 %v6965_v39, %v7330_v22  ;;  %v1681_v47 = vmul.f32 %v8377_v50, %v7341_v27 }
 0x1a3   : > { %8376 = vst [vmem:[#allocation31_spill] sm:$0xff] %v7351_v12  ;;  %v1704_v6 = vpop.permute.xlu0 %1703  ;;  %v1706_v10 = vpop.permute.xlu1 %1705  ;;  %v2395_v57 = vmul.f32 %v6996_v62, %v7341_v27  ;;  %v7361_v51 = vsel %vm7121_vm7, %v1508_v15, 0.0  ;;  %v1657_v41 = vadd.f32 %v1653_v8, %v1621_v11  ;;  %v2371_v24 = vadd.f32 %v2367_v29, %v2356_v1  ;;  %v8382_v15 = vld [vmem:[#allocation16_spill] sm:$0xff] }
 0x1a4   : > { %8378 = vst [vmem:[#allocation6_spill] sm:$0xff] %v7361_v51  ;;  %v1670_v58 = vadd.f32 %v1666_v16, %v1655_v60  ;;  %v2384_v20 = vadd.f32 %v2380_v53, %v2369_v59  ;;  %v1654_v63 = vadd.f32 %v1650_v35, %v1618_v21  ;;  %v1717_v45 = vmul.f32 %v7351_v12, %v8379_v46 }
 0x1a5   : > { %v2410_v39 = vmul.f32 %v7168_v23, %v7351_v12  ;;  %v7368_v30 = vsel %vm1707_vm10, %v1704_v6, %v1706_v10  ;;  %v1652_v54 = vmul.f32 %v7103_v37, %v6858_v43  ;;  %v1683_v34 = vmul.f32 %v8377_v50, %v7361_v51 }
 0x1a6   : > { %8380 = vst [vmem:[#allocation7_spill] sm:$0xff] %v7368_v30  ;;  %v2397_v14 = vmul.f32 %v6996_v62, %v7361_v51  ;;  %v1672_v11 = vadd.f32 %v1668_v28, %v1657_v41  ;;  %v1685_v19 = vadd.f32 %v1681_v47, %v1670_v58  ;;  %v2386_v36 = vadd.f32 %v2382_v61, %v2371_v24  ;;  %v8401_v51 = vld [vmem:[#allocation23_spill] sm:$0xff] }
 0x1a7   : > { %v1520_v56 = vpop.permute.xlu0 %1519  ;;  %v1522_v52 = vpop.permute.xlu1 %1521  ;;  %v2399_v8 = vadd.f32 %v2395_v57, %v2384_v20  ;;  %v1665_v29 = vmul.f32 %v6915_v7, %v7109_v33  ;;  %v1719_v43 = vmul.f32 %v7368_v30, %v8379_v46  ;;  %v2412_v16 = vmul.f32 %v7168_v23, %v7368_v30  ;;  %v8399_v30 = vld [vmem:[#allocation22_spill] sm:$0xff] }
 0x1a8   : > { %v1531_v13 = vsel %vm1529_vm11, %v1520_v56, %v1522_v52  ;;  %v1721_v53 = vadd.f32 %v1717_v45, %v1685_v19  ;;  %v1656_v60 = vadd.f32 %v1652_v54, %v1620_v42  ;;  %v1667_v59 = vmul.f32 %v6915_v7, %v7133_v3 }
 0x1a9   : > { %v7385_v62 = vsel %vm7158_vm8, %v1531_v13, 0.0  ;;  %v2414_v21 = vadd.f32 %v2410_v39, %v2399_v8  ;;  %v1687_v61 = vadd.f32 %v1683_v34, %v1672_v11  ;;  %v2401_v47 = vadd.f32 %v2397_v14, %v2386_v36 }
 0x1aa   : > { %8381 = vst [vmem:[#allocation32_spill] sm:$0xff] %v7385_v62  ;;  %v1732_v1 = vmul.f32 %v8382_v15, %v7385_v62  ;;  %v2425_v35 = vmul.f32 %v7274_v31, %v7385_v62  ;;  %v1680_v57 = vmul.f32 %v8377_v50, %v7257_v2  ;;  %v1682_v20 = vmul.f32 %v8377_v50, %v7300_v40 }
 0x1ab   : > { %v1526_v28 = vpop.permute.xlu0 %1525  ;;  %v1528_v10 = vpop.permute.xlu1 %1527  ;;  %v1723_v45 = vadd.f32 %v1719_v43, %v1687_v61  ;;  %v2416_v7 = vadd.f32 %v2412_v16, %v2401_v47  ;;  %v1669_v52 = vadd.f32 %v1665_v29, %v1654_v63  ;;  %v1671_v11 = vadd.f32 %v1667_v59, %v1656_v60 }
 0x1ac   : > { %v1533_v41 = vsel %vm1529_vm11, %v1526_v28, %v1528_v10  ;;  %v1736_v24 = vadd.f32 %v1732_v1, %v1721_v53  ;;  %v2429_v58 = vadd.f32 %v2425_v35, %v2414_v21 }
 0x1ad   : > { %v7400_v42 = vsel %vm7158_vm8, %v1533_v41, 0.0  ;;  %v1684_v53 = vadd.f32 %v1680_v57, %v1669_v52  ;;  %v1686_v1 = vadd.f32 %v1682_v20, %v1671_v11 }
 0x1ae   : > { %8383 = vst [vmem:[#allocation16_spill] sm:$0xff] %v7400_v42  ;;  %v1734_v39 = vmul.f32 %v8382_v15, %v7400_v42  ;;  %v1747_v54 = vsel %vm1739_vm12, %v1736_v24, 0.0  ;;  %v2427_v34 = vmul.f32 %v7274_v31, %v7400_v42  ;;  %v2439_v14 = vsel %vm1739_vm12, %v2429_v58, 0.0 }
 0x1af   : > { %v1696_v13 = vpop.permute.xlu0 %1695  ;;  %v1702_v50 = vpop.permute.xlu1 %1701  ;;  %v1748_v19 = vrot.slane %v1747_v54, 4  ;;  %v2440_v9 = vrot.slane %v2439_v14, 4 }
 0x1b0   : > { %v7410_v36 = vsel %vm1707_vm10, %v1696_v13, %v7322_v55  ;;  %v7413_v8 = vsel %vm1707_vm10, %v1702_v50, %v1704_v6  ;;  %v1738_v43 = vadd.f32 %v1734_v39, %v1723_v45  ;;  %v2431_v16 = vadd.f32 %v2427_v34, %v2416_v7 }
 0x1b1   : > { %8384 = vst [vmem:[#allocation33_spill] sm:$0xff] %v7410_v36  ;;  %8385 = vst [vmem:[#allocation34_spill] sm:$0xff] %v7413_v8  ;;  %v1716_v63 = vmul.f32 %v7410_v36, %v8379_v46  ;;  %v1718_v29 = vmul.f32 %v7413_v8, %v8379_v46  ;;  %v1749_v21 = vadd.f32 %v1748_v19, %v1747_v54  ;;  %v7435_v54 = vstv %s1768_s7 }
 0x1b2   : > { %v1761_v35 = vsel %vm1739_vm12, %v1738_v43, 0.0  ;;  %v2441_v60 = vadd.f32 %v2440_v9, %v2439_v14  ;;  %v2453_v55 = vsel %vm1739_vm12, %v2431_v16, 0.0  ;;  %v2409_v47 = vmul.f32 %v7168_v23, %v7410_v36  ;;  %v8389_v9 = vld [vmem:[#allocation11_spill] sm:$0xff] }
 0x1b3   : > { %v7421_v59 = vadd.f32 %v1716_v63, %v1684_v53  ;;  %v7423_v6 = vadd.f32 %v1718_v29, %v1686_v1  ;;  %v1518_v10 = vpop.permute.xlu0 %1517  ;;  %v1524_v61 = vpop.permute.xlu1 %1523  ;;  %v2411_v57 = vmul.f32 %v7168_v23, %v7413_v8  ;;  %v1750_v41 = vrot.slane %v1749_v21, 2  ;;  %v8391_v53 = vld [vmem:[#allocation8_spill] sm:$0xff] }
 0x1b4   : > { %v1530_v46 = vsel %vm1529_vm11, %v1518_v10, %v1520_v56  ;;  %v1532_v24 = vsel %vm1529_vm11, %v1524_v61, %v1526_v28  ;;  %v1762_v58 = vrot.slane %v1761_v35, 4  ;;  %v2442_v20 = vrot.slane %v2441_v60, 2  ;;  %v8392_v1 = vld [vmem:[#allocation20_spill] sm:$0xff]  ;;  %v8394_v10 = vld [vmem:[#allocation19_spill] sm:$0xff] }
 0x1b5   : > { %v2454_v45 = vrot.slane %v2453_v55, 4  ;;  %v7433_v7 = vsel %vm7000_vm3, %v1530_v46, 0.0  ;;  %v7437_v34 = vstv %s5145_s8  ;;  %v7440_v14 = vadd.f32 %v2409_v47, %v7284_v38  ;;  %v8390_v38 = vld [vmem:[#allocation18_spill] sm:$0xff]  ;;  %v8400_v8 = vld [vmem:[#allocation12_spill] sm:$0xff] }
 0x1b6   : > { %8386 = vst [vmem:[#allocation35_spill] sm:$0xff] %v7433_v7  ;;  %v7443_v23 = vadd.f32 %v2411_v57, %v7333_v25  ;;  %v7447_v56 = vsel %vm7000_vm3, %v1532_v24, 0.0  ;;  %v1751_v52 = vadd.f32 %v1750_v41, %v1749_v21  ;;  %v7451_v11 = vmul.f32 %v8382_v15, %v7433_v7  ;;  %v8395_v21 = vld [vmem:[#allocation10_spill] sm:$0xff]  ;;  %v8396_v57 = vld [vmem:[#allocation21_spill] sm:$0xff] }
 0x1b7   : > { %v1783_v39 = vpop.permute.xlu0 %1782  ;;  %8388 = vst [vmem:[#allocation37_spill] sm:$0xff] %v7447_v56  ;;  %v1798_v28 = vpop.permute.xlu1 %1797  ;;  %v1763_v13 = vadd.f32 %v1762_v58, %v1761_v35  ;;  %v2443_v50 = vadd.f32 %v2442_v20, %v2441_v60  ;;  %v2455_v19 = vadd.f32 %v2454_v45, %v2453_v55  ;;  %v7463_v35 = vmul.f32 %v7274_v31, %v7433_v7 }
 0x1b8   : > { %8387 = vst [vmem:[#allocation36_spill] sm:$0xff] %v7443_v23  ;;  %v1785_v43 = vmul.f32 %v1783_v39, %v8389_v9  ;;  %v1786_v16 = vmul.f32 %v1783_v39, %v8390_v38  ;;  %v1800_v25 = vmul.f32 %v1798_v28, %v8391_v53  ;;  %v1801_v63 = vmul.f32 %v1798_v28, %v8392_v1 }
 0x1b9   : > { %v1787_v29 = vmul.f32 %v1783_v39, %v8393_v0  ;;  %v1788_v61 = vmul.f32 %v1783_v39, %v8394_v10  ;;  %v1802_v47 = vmul.f32 %v1798_v28, %v8395_v21  ;;  %v1803_v46 = vmul.f32 %v1798_v28, %v8396_v57  ;;  %8397 = vst [vmem:[#allocation38_spill] sm:$0xff] %v7463_v35 }
 0x1ba   : > { %v7467_v60 = vmul.f32 %v8382_v15, %v7447_v56  ;;  %v7471_v55 = vmul.f32 %v7274_v31, %v7447_v56  ;;  %v1752_v58 = vrot.slane %v1751_v52, 1  ;;  %v1764_v45 = vrot.slane %v1763_v13, 2 }
 0x1bb   : > { %v1813_v41 = vpop.permute.xlu0 %1812  ;;  %v2475_v24 = vpop.permute.xlu1 %2474  ;;  %v2444_v39 = vrot.slane %v2443_v50, 1  ;;  %v2456_v28 = vrot.slane %v2455_v19, 2  ;;  %v1804_v42 = vadd.f32 %v1800_v25, %v1785_v43  ;;  %v1805_v62 = vadd.f32 %v1801_v63, %v1786_v16 }
 0x1bc   : > { %8398 = vst [vmem:[#allocation39_spill] sm:$0xff] %v7471_v55  ;;  %v1815_v20 = vmul.f32 %v1813_v41, %v7024_v4  ;;  %v1816_v7 = vmul.f32 %v1813_v41, %v8399_v30  ;;  %v1817_v12 = vmul.f32 %v1813_v41, %v8400_v8  ;;  %v1806_v36 = vadd.f32 %v1802_v47, %v1787_v29 }
 0x1bd   : > { %v1807_v15 = vadd.f32 %v1803_v46, %v1788_v61  ;;  %v1818_v40 = vmul.f32 %v1813_v41, %v8401_v51  ;;  %v2477_v31 = vmul.f32 %v2475_v24, %v8389_v9  ;;  %v2478_v27 = vmul.f32 %v2475_v24, %v8390_v38 }
 0x1be   : > { %v2479_v55 = vmul.f32 %v2475_v24, %v8393_v0  ;;  %v2480_v23 = vmul.f32 %v2475_v24, %v8394_v10  ;;  %v1819_v25 = vadd.f32 %v1815_v20, %v1804_v42  ;;  %v1820_v47 = vadd.f32 %v1816_v7, %v1805_v62 }
 0x1bf   : > { %v2490_v56 = vpop.permute.xlu0 %2489  ;;  %v1828_v16 = vpop.permute.xlu1 %1827  ;;  %v1821_v46 = vadd.f32 %v1817_v12, %v1806_v36  ;;  %v1822_v9 = vadd.f32 %v1818_v40, %v1807_v15  ;;  %v2445_v2 = vadd.f32 %v2444_v39, %v2443_v50 }
 0x1c0   : > { %v2492_v43 = vmul.f32 %v2490_v56, %v8391_v53  ;;  %v2493_v63 = vmul.f32 %v2490_v56, %v8392_v1  ;;  %v2494_v29 = vmul.f32 %v2490_v56, %v8395_v21  ;;  %v2495_v61 = vmul.f32 %v2490_v56, %v8396_v57 }
 0x1c1   : > { %v1830_v41 = vmul.f32 %v1828_v16, %v7049_v32  ;;  %v1831_v38 = vmul.f32 %v1828_v16, %v7224_v26  ;;  %v1832_v0 = vmul.f32 %v1828_v16, %v7087_v17  ;;  %v1833_v24 = vmul.f32 %v1828_v16, %v7251_v49 }
 0x1c2   : > { %v1753_v53 = vadd.f32 %v1752_v58, %v1751_v52  ;;  %v2496_v42 = vadd.f32 %v2492_v43, %v2477_v31  ;;  %v1765_v1 = vadd.f32 %v1764_v45, %v1763_v13  ;;  %v2457_v21 = vadd.f32 %v2456_v28, %v2455_v19 }
 0x1c3   : > { %v2505_v10 = vpop.permute.xlu0 %2504  ;;  %v1843_v20 = vpop.permute.xlu1 %1842  ;;  %v2497_v35 = vadd.f32 %v2493_v63, %v2478_v27  ;;  %v2498_v56 = vadd.f32 %v2494_v29, %v2479_v55  ;;  %v2499_v62 = vadd.f32 %v2495_v61, %v2480_v23  ;;  %v1834_v36 = vadd.f32 %v1830_v41, %v1819_v25 }
 0x1c4   : > { %v2507_v12 = vmul.f32 %v2505_v10, %v7024_v4  ;;  %v1835_v7 = vadd.f32 %v1831_v38, %v1820_v47  ;;  %v2508_v40 = vmul.f32 %v2505_v10, %v8399_v30  ;;  %v2509_v15 = vmul.f32 %v2505_v10, %v8400_v8 }
 0x1c5   : > { %v1836_v16 = vadd.f32 %v1832_v0, %v1821_v46  ;;  %v1837_v57 = vadd.f32 %v1833_v24, %v1822_v9  ;;  %v2510_v52 = vmul.f32 %v2505_v10, %v8401_v51  ;;  %v1845_v13 = vmul.f32 %v1843_v20, %v7080_v5 }
 0x1c6   : > { %v1846_v50 = vmul.f32 %v1843_v20, %v7281_v44  ;;  %v1847_v27 = vmul.f32 %v1843_v20, %v7103_v37  ;;  %v1766_v23 = vrot.slane %v1765_v1, 1  ;;  %v2458_v19 = vrot.slane %v2457_v21, 1 }
 0x1c7   : > { %v2520_v55 = vpop.permute.xlu0 %2519  ;;  %v2511_v58 = vadd.f32 %v2507_v12, %v2496_v42  ;;  %v1848_v38 = vmul.f32 %v1843_v20, %v7293_v18  ;;  %v1771_v45 = vadd.f32 %v7435_v54, %v1753_v53  ;;  %v2463_v39 = vadd.f32 %v7437_v34, %v2445_v2  ;;  %v1858_v31 = vpop.permute.xlu1 %1857 }
 0x1c8   : > { %v2512_v0 = vadd.f32 %v2508_v40, %v2497_v35  ;;  %v2513_v9 = vadd.f32 %v2509_v15, %v2498_v56  ;;  %v1767_v28 = vadd.f32 %v1766_v23, %v1765_v1  ;;  %v2459_v10 = vadd.f32 %v2458_v19, %v2457_v21 }
 0x1c9   : > { %v2514_v43 = vadd.f32 %v2510_v52, %v2499_v62  ;;  %v2522_v25 = vmul.f32 %v2520_v55, %v7049_v32  ;;  %v2523_v63 = vmul.f32 %v2520_v55, %v7224_v26  ;;  %v2524_v29 = vmul.f32 %v2520_v55, %v7087_v17 }
 0x1ca   : > { %v1849_v61 = vadd.f32 %v1845_v13, %v1834_v36  ;;  %v1850_v47 = vadd.f32 %v1846_v50, %v1835_v7  ;;  %v1773_v46 = vadd.f32 %v7435_v54, %v1767_v28  ;;  %v2465_v53 = vadd.f32 %v7437_v34, %v2459_v10 }
 0x1cb   : > { %v1851_v41 = vadd.f32 %v1847_v27, %v1836_v16  ;;  %v1775_v2 = vmax.f32 %v1771_v45, 0.0  ;;  %v2467_v35 = vmax.f32 %v2463_v39, 0.0  ;;  %v2525_v1 = vmul.f32 %v2520_v55, %v7251_v49  ;;  %v2535_v56 = vpop.permute.xlu0 %2534  ;;  %v1873_v13 = vpop.permute.xlu1 %1872 }
 0x1cc   : > { %v1777_v21 = vmax.f32 %v1773_v46, 0.0  ;;  %v2469_v24 = vmax.f32 %v2465_v53, 0.0  ;;  %v1860_v42 = vmul.f32 %v1858_v31, %v7109_v33  ;;  %v1861_v20 = vmul.f32 %v1858_v31, %v7309_v48  ;;  %v8405_v46 = vld [vmem:[#allocation39_spill] sm:$0xff] }
 0x1cd   : > { %v1852_v62 = vadd.f32 %v1848_v38, %v1837_v57  ;;  %v2526_v12 = vadd.f32 %v2522_v25, %v2511_v58  ;;  %v2527_v36 = vadd.f32 %v2523_v63, %v2512_v0  ;;  %v2528_v7 = vadd.f32 %v2524_v29, %v2513_v9  ;;  %v8402_v0 = vld [vmem:[#allocation38_spill] sm:$0xff] }
 0x1ce   : > { %v2995_v40 = vsel %vm2993_vm13, %v1777_v21, %v1775_v2  ;;  %v3027_v15 = vsel %vm2993_vm13, %v2469_v24, %v2467_v35  ;;  %v1862_v16 = vmul.f32 %v1858_v31, %v7133_v3  ;;  %v1863_v52 = vmul.f32 %v1858_v31, %v7330_v22 }
 0x1cf   : > { %v3055_v50 = vpack.c.bf16 %v2995_v40, %v2995_v40  ;;  %v3063_v27 = vpack.c.bf16 %v3027_v15, %v3027_v15  ;;  %v2529_v23 = vadd.f32 %v2525_v1, %v2514_v43  ;;  %v2537_v19 = vmul.f32 %v2535_v56, %v7080_v5  ;;  %v8403_v43 = vld [vmem:[#allocation24_spill] sm:$0xff]  ;;  %v2550_v63 = vpop.permute.xlu0 %2549  ;;  %v8406_v1 = vld [vmem:[#allocation30_spill] sm:$0xff]  ;;  %v8407_v15 = vld [vmem:[#allocation27_spill] sm:$0xff] }
 0x1d0   : > { %v1864_v55 = vadd.f32 %v1860_v42, %v1849_v61  ;;  %v1865_v45 = vadd.f32 %v1861_v20, %v1850_v47  ;;  %v2538_v57 = vmul.f32 %v2535_v56, %v7281_v44  ;;  %v2539_v58 = vmul.f32 %v2535_v56, %v7103_v37  ;;  %v8404_v47 = vld [vmem:[#allocation36_spill] sm:$0xff] }
 0x1d1   : > { %4650 = vmatprep.mubr.bf16.mxu1 %v3055_v50  ;;  %4814 = vmatprep.mubr.bf16.mxu0 %v3063_v27  ;;  %v1735_v38 = vadd.f32 %v7451_v11, %v7421_v59  ;;  %v1737_v39 = vadd.f32 %v7467_v60, %v7423_v6  ;;  %v2428_v9 = vadd.f32 %v8402_v0, %v7440_v14 }
 0x1d2   : > { %v1866_v28 = vadd.f32 %v1862_v16, %v1851_v41  ;;  %v1867_v10 = vadd.f32 %v1863_v52, %v1852_v62  ;;  %v2540_v31 = vmul.f32 %v2535_v56, %v7293_v18  ;;  %v1875_v25 = vmul.f32 %v1873_v13, %v8403_v43  ;;  %v1888_v41 = vpop.permute.xlu1 %1887  ;;  %v8408_v52 = vld [vmem:[#allocation6_spill] sm:$0xff] }
 0x1d3   : > { %v1740_v29 = vsel %vm1739_vm12, %v1735_v38, 0.0  ;;  %v1754_v61 = vsel %vm1739_vm12, %v1737_v39, 0.0  ;;  %v2430_v59 = vadd.f32 %v8405_v46, %v8404_v47  ;;  %v2432_v11 = vsel %vm1739_vm12, %v2428_v9, 0.0 }
 0x1d4   : > { %v2541_v6 = vadd.f32 %v2537_v19, %v2526_v12  ;;  %v1741_v60 = vrot.slane %v1740_v29, 4  ;;  %v1755_v53 = vrot.slane %v1754_v61, 4  ;;  %v2433_v14 = vrot.slane %v2432_v11, 4 }
 0x1d5   : > { %v2542_v2 = vadd.f32 %v2538_v57, %v2527_v36  ;;  %v7527_v35 = vadd.f32 %v2539_v58, %v2528_v7  ;;  %v1876_v21 = vmul.f32 %v1873_v13, %v8406_v1  ;;  %v2446_v24 = vsel %vm1739_vm12, %v2430_v59, 0.0  ;;  %v2565_v7 = vpop.permute.xlu0 %2564 }
 0x1d6   : > { %v1742_v42 = vadd.f32 %v1741_v60, %v1740_v29  ;;  %v1756_v20 = vadd.f32 %v1755_v53, %v1754_v61  ;;  %v2434_v56 = vadd.f32 %v2433_v14, %v2432_v11  ;;  %v2447_v62 = vrot.slane %v2446_v24, 4  ;;  %v1903_v61 = vpop.permute.xlu1 %1902 }
 0x1d7   : > { %v2544_v40 = vadd.f32 %v2540_v31, %v2529_v23  ;;  %v1877_v16 = vmul.f32 %v1873_v13, %v8407_v15  ;;  %v1878_v12 = vmul.f32 %v1873_v13, %v8408_v52  ;;  %v1879_v50 = vadd.f32 %v1875_v25, %v1864_v55  ;;  %v8409_v25 = vld [vmem:[#allocation33_spill] sm:$0xff] }
 0x1d8   : > { %v1743_v27 = vrot.slane %v1742_v42, 2  ;;  %v1757_v19 = vrot.slane %v1756_v20, 2  ;;  %v2435_v38 = vrot.slane %v2434_v56, 2  ;;  %v2448_v36 = vadd.f32 %v2447_v62, %v2446_v24  ;;  %v8410_v24 = vld [vmem:[#allocation31_spill] sm:$0xff] }
 0x1d9   : > { %v1880_v57 = vadd.f32 %v1876_v21, %v1865_v45  ;;  %v2552_v58 = vmul.f32 %v2550_v63, %v7109_v33  ;;  %v2553_v39 = vmul.f32 %v2550_v63, %v7309_v48  ;;  %v2555_v0 = vmul.f32 %v2550_v63, %v7330_v22 }
 0x1da   : > { %v1744_v9 = vadd.f32 %v1743_v27, %v1742_v42  ;;  %v1758_v29 = vadd.f32 %v1757_v19, %v1756_v20  ;;  %v2436_v23 = vadd.f32 %v2435_v38, %v2434_v56  ;;  %v2449_v31 = vrot.slane %v2448_v36, 2  ;;  %v2580_v19 = vpop.permute.xlu0 %2579 }
 0x1db   : > { %v1881_v47 = vadd.f32 %v1877_v16, %v1866_v28  ;;  %v1882_v13 = vadd.f32 %v1878_v12, %v1867_v10  ;;  %v2554_v55 = vmul.f32 %v2550_v63, %v7133_v3  ;;  %v1890_v46 = vmul.f32 %v1888_v41, %v8409_v25  ;;  %v8411_v28 = vld [vmem:[#allocation34_spill] sm:$0xff]  ;;  %v8412_v16 = vld [vmem:[#allocation7_spill] sm:$0xff] }
 0x1dc   : > { %v1745_v59 = vrot.slane %v1744_v9, 1  ;;  %v1759_v11 = vrot.slane %v1758_v29, 1  ;;  %v2437_v45 = vrot.slane %v2436_v23, 1  ;;  %v2450_v60 = vadd.f32 %v2449_v31, %v2448_v36  ;;  %v7545_v36 = vpop.permute.xlu1 %2594 }
 0x1dd   : > { %v2556_v53 = vadd.f32 %v2552_v58, %v2541_v6  ;;  %v2557_v14 = vadd.f32 %v2553_v39, %v2542_v2  ;;  %v2559_v21 = vadd.f32 %v2555_v0, %v2544_v40  ;;  %v1891_v62 = vmul.f32 %v1888_v41, %v8410_v24  ;;  %v8413_v58 = vld [vmem:[#allocation35_spill] sm:$0xff]  ;;  %v8414_v0 = vld [vmem:[#allocation32_spill] sm:$0xff] }
 0x1de   : > { %v1746_v42 = vadd.f32 %v1745_v59, %v1744_v9  ;;  %v1760_v20 = vadd.f32 %v1759_v11, %v1758_v29  ;;  %v2438_v56 = vadd.f32 %v2437_v45, %v2436_v23  ;;  %v2451_v27 = vrot.slane %v2450_v60, 1  ;;  %v8415_v29 = vld [vmem:[#allocation37_spill] sm:$0xff]  ;;  %v7556_v3 = vpop.permute.xlu0 %1955 }
 0x1df   : > { %v1892_v10 = vmul.f32 %v1888_v41, %v8411_v28  ;;  %v1893_v63 = vmul.f32 %v1888_v41, %v8412_v16  ;;  %v1894_v12 = vadd.f32 %v1890_v46, %v1879_v50  ;;  %v2568_v38 = vmul.f32 %v2565_v7, %v8406_v1  ;;  %v8416_v41 = vld [vmem:[#allocation16_spill] sm:$0xff] }
 0x1e0   : > { %v1770_v22 = vadd.f32 %v7435_v54, %v1746_v42  ;;  %v1772_v6 = vadd.f32 %v7435_v54, %v1760_v20  ;;  %v2452_v2 = vadd.f32 %v2451_v27, %v2450_v60  ;;  %v2462_v40 = vadd.f32 %v7437_v34, %v2438_v56  ;;  %v5624_v20 = vld [vmem:[%s6603_s26 + $0x100] ss:$8 sps:$4 sm:$0xff]  }
 0x1e1   : > { %v1905_v39 = vmul.f32 %v1903_v61, %v8413_v58  ;;  %v1906_v9 = vmul.f32 %v1903_v61, %v8414_v0  ;;  %v1907_v23 = vmul.f32 %v1903_v61, %v8415_v29  ;;  %v1908_v50 = vmul.f32 %v1903_v61, %v8416_v41 }
 0x1e2   : > { %v1774_v31 = vmax.f32 %v1770_v22, 0.0  ;;  %v1776_v46 = vmax.f32 %v1772_v6, 0.0  ;;  %v2464_v59 = vadd.f32 %v7437_v34, %v2452_v2  ;;  %v2466_v54 = vmax.f32 %v2462_v40, 0.0  ;;  %v5632_v6 = vld [vmem:[%s6603_s26 + $0x114] ss:$8 sps:$4 sm:$0xff]  }
 0x1e3   : > { %v1895_v11 = vadd.f32 %v1891_v62, %v1880_v57  ;;  %v1896_v45 = vadd.f32 %v1892_v10, %v1881_v47  ;;  %v1897_v60 = vadd.f32 %v1893_v63, %v1882_v13  ;;  %v1909_v42 = vadd.f32 %v1905_v39, %v1894_v12  ;;  %v5627_v47 = vld [vmem:[%s6603_s26 + $0x500] ss:$8 sps:$4 sm:$0xff]   ;;  %v7563_v12 = vpop.permute.xlu1 %1970  ;;  %v5635_v39 = vld [vmem:[%s6603_s26 + $0x514] ss:$8 sps:$4 sm:$0xff]  }
 0x1e4   : > { %v2994_v56 = vsel %vm2993_vm13, %v1776_v46, %v1774_v31  ;;  %v2468_v27 = vmax.f32 %v2464_v59, 0.0  ;;  %v2567_v1 = vmul.f32 %v2565_v7, %v8403_v43  ;;  %v2569_v61 = vmul.f32 %v2565_v7, %v8407_v15  ;;  %v5630_v46 = vld [vmem:[%s6603_s26 + $0x110] ss:$8 sps:$4 sm:$0xff]   ;;  %v5638_v59 = vld [vmem:[%s6603_s26 + $0x124] ss:$8 sps:$4 sm:$0xff]  }
 0x1e5   : > { %v3054_v22 = vpack.c.bf16 %v2994_v56, %v2994_v56  ;;  %v2570_v34 = vmul.f32 %v2565_v7, %v8408_v52  ;;  %v2572_v2 = vadd.f32 %v2568_v38, %v2557_v14  ;;  %v2583_v57 = vmul.f32 %v2580_v19, %v8410_v24  ;;  %v5636_v56 = vld [vmem:[%s6603_s26 + $0x120] ss:$8 sps:$4 sm:$0xff]  }
 0x1e6   : > { %v3026_v13 = vsel %vm2993_vm13, %v2468_v27, %v2466_v54  ;;  %v1910_v62 = vadd.f32 %v1906_v9, %v1895_v11  ;;  %v1911_v10 = vadd.f32 %v1907_v23, %v1896_v45  ;;  %v1912_v63 = vadd.f32 %v1908_v50, %v1897_v60  ;;  %v5633_v11 = vld [vmem:[%s6603_s26 + $0x510] ss:$8 sps:$4 sm:$0xff]  }
 0x1e7   : > { %4651 = vmatmul.mubr.bf16.vlgmr.msra.gmra.mrb[0].mxu1 %v3054_v22  ;;  %v3062_v40 = vpack.c.bf16 %v3026_v13, %v3026_v13  ;;  %v1913_v31 = vsel %vm1739_vm12, %v1909_v42, 0.0  ;;  %v2582_v7 = vmul.f32 %v2580_v19, %v8409_v25  ;;  %v2585_v14 = vmul.f32 %v2580_v19, %v8412_v16  ;;  %v5654_v16 = vld [vmem:[%s6603_s26 + $0x150] ss:$8 sps:$4 sm:$0xff]  }
 0x1e8   : > { %4660 = vmatpush1.bf16.msra.mxu1 %v5624_v20  ;;  %v2558_v38 = vadd.f32 %v2554_v55, %v7527_v35  ;;  %v2584_v9 = vmul.f32 %v2580_v19, %v8411_v28  ;;  %v2571_v23 = vadd.f32 %v2567_v1, %v2556_v53  ;;  %v2574_v50 = vadd.f32 %v2570_v34, %v2559_v21  ;;  %v7576_v35 = vpop.permute.xlu0 %1985  ;;  %v5641_v19 = vld [vmem:[%s6603_s26 + $0x524] ss:$8 sps:$4 sm:$0xff]  }
 0x1e9   : > { %4815 = vmatmul.mubr.bf16.vlgmr.msra.gmra.mrb[0].mxu0 %v3062_v40  ;;  %4661 = vmatprep.subr.bf16.mxu1 %v5632_v6  ;;  %v2587_v54 = vadd.f32 %v2583_v57, %v2572_v2  ;;  %v1914_v60 = vrot.slane %v1913_v31, 4  ;;  %v1920_v42 = vsel %vm1739_vm12, %v1910_v62, 0.0  ;;  %v1927_v20 = vsel %vm1739_vm12, %v1911_v10, 0.0  ;;  %v5644_v57 = vld [vmem:[%s6603_s26 + $0x134] ss:$8 sps:$4 sm:$0xff]  }
 0x1ea   : > { %4824 = vmatpush1.bf16.msra.mxu0 %v5627_v47  ;;  %v2573_v45 = vadd.f32 %v2569_v61, %v2558_v38  ;;  %v1934_v55 = vsel %vm1739_vm12, %v1912_v63, 0.0  ;;  %v2586_v1 = vadd.f32 %v2582_v7, %v2571_v23  ;;  %v2589_v53 = vadd.f32 %v2585_v14, %v2574_v50  ;;  %v7583_v61 = vpop.permute.xlu1 %2647  ;;  %v5639_v10 = vld [vmem:[%s6603_s26 + $0x520] ss:$8 sps:$4 sm:$0xff]   ;;  %v5647_v14 = vld [vmem:[%s6603_s26 + $0x534] ss:$8 sps:$4 sm:$0xff]  }
 0x1eb   : > { %4825 = vmatprep.subr.bf16.mxu0 %v5635_v39  ;;  %v2598_v21 = vmul.f32 %v7545_v36, %v8414_v0  ;;  %v1921_v22 = vrot.slane %v1920_v42, 4  ;;  %v2597_v6 = vmul.f32 %v7545_v36, %v8413_v58  ;;  %v2600_v34 = vmul.f32 %v7545_v36, %v8416_v41  ;;  %v8417_v38 = vld [vmem:[#allocation11_spill] sm:$0xff]  ;;  %v8423_v41 = vld [vmem:[#allocation18_spill] sm:$0xff]  ;;  %v8426_v58 = vld [vmem:[#allocation21_spill] sm:$0xff] }
 0x1ec   : > { %4662 = vmatpush1.bf16.msra.mxu1 %v5630_v46  ;;  %v2588_v27 = vadd.f32 %v2584_v9, %v2573_v45  ;;  %v1915_v47 = vadd.f32 %v1914_v60, %v1913_v31  ;;  %v1928_v13 = vrot.slane %v1927_v20, 4  ;;  %v1935_v62 = vrot.slane %v1934_v55, 4  ;;  %v5642_v31 = vld [vmem:[%s6603_s26 + $0x130] ss:$8 sps:$4 sm:$0xff]   ;;  %v5650_v50 = vld [vmem:[%s6603_s26 + $0x144] ss:$8 sps:$4 sm:$0xff]  }
 0x1ed   : > { %4663 = vmatprep.subr.bf16.mxu1 %v5638_v59  ;;  %v2602_v2 = vadd.f32 %v2598_v21, %v2587_v54  ;;  %v2599_v63 = vmul.f32 %v7545_v36, %v8415_v29  ;;  %v2601_v40 = vadd.f32 %v2597_v6, %v2586_v1  ;;  %v2604_v39 = vadd.f32 %v2600_v34, %v2589_v53  ;;  %v7601_v59 = vpop.permute.xlu0 %2662  ;;  %v8419_v60 = vld [vmem:[#allocation8_spill] sm:$0xff]  ;;  %v8420_v6 = vld [vmem:[#allocation10_spill] sm:$0xff] }
 0x1ee   : > { %4826 = vmatpush1.bf16.msra.mxu0 %v5633_v11  ;;  %v1958_v46 = vmul.f32 %v7556_v3, %v8417_v38  ;;  %v1922_v54 = vadd.f32 %v1921_v22, %v1920_v42  ;;  %v8418_v11 = vld [vmem:[#allocation13_spill] sm:$0xff]  ;;  %v1916_v1 = vrot.slane %v1915_v47, 2  ;;  %v1929_v53 = vadd.f32 %v1928_v13, %v1927_v20  ;;  %v5648_v20 = vld [vmem:[%s6603_s26 + $0x140] ss:$8 sps:$4 sm:$0xff]  }
 0x1ef   : > { %4827 = vmatprep.subr.bf16.mxu0 %v5641_v19  ;;  %v2612_v7 = vsel %vm1739_vm12, %v2602_v2, 0.0  ;;  %v2603_v9 = vadd.f32 %v2599_v63, %v2588_v27  ;;  %v2626_v36 = vsel %vm1739_vm12, %v2604_v39, 0.0  ;;  %v1960_v45 = vmul.f32 %v7556_v3, %v8418_v11  ;;  %v7613_v27 = vpop.permute.xlu1 %2000 }
 0x1f0   : > { %4664 = vmatpush1.bf16.msra.mxu1 %v5636_v56  ;;  %v2613_v23 = vrot.slane %v2612_v7, 4  ;;  %v1973_v19 = vmul.f32 %v7563_v12, %v8419_v60  ;;  %v1936_v21 = vadd.f32 %v1935_v62, %v1934_v55  ;;  %v2627_v42 = vrot.slane %v2626_v36, 4  ;;  %v5645_v56 = vld [vmem:[%s6603_s26 + $0x530] ss:$8 sps:$4 sm:$0xff]  }
 0x1f1   : > { %4665 = vmatprep.subr.bf16.mxu1 %v5644_v57  ;;  %v2605_v22 = vsel %vm1739_vm12, %v2601_v40, 0.0  ;;  %v1975_v34 = vmul.f32 %v7563_v12, %v8420_v6  ;;  %v5653_v57 = vld [vmem:[%s6603_s26 + $0x544] ss:$8 sps:$4 sm:$0xff]   ;;  %v2619_v39 = vsel %vm1739_vm12, %v2603_v9, 0.0  ;;  %v7622_v55 = vstv %s7585_s28  ;;  %v5651_v9 = vld [vmem:[%s6603_s26 + $0x540] ss:$8 sps:$4 sm:$0xff]  }
 0x1f2   : > { %4828 = vmatpush1.bf16.msra.mxu0 %v5639_v10  ;;  %v1977_v2 = vadd.f32 %v1973_v19, %v1958_v46  ;;  %v2614_v63 = vadd.f32 %v2613_v23, %v2612_v7  ;;  %8421 = vst [vmem:[#allocation22_spill] sm:$0xff] %v7622_v55  ;;  %v1923_v13 = vrot.slane %v1922_v54, 2  ;;  %v2628_v62 = vadd.f32 %v2627_v42, %v2626_v36  ;;  %v8424_v42 = vld [vmem:[#allocation19_spill] sm:$0xff] }
 0x1f3   : > { %4829 = vmatprep.subr.bf16.mxu0 %v5647_v14  ;;  %v1979_v10 = vadd.f32 %v1975_v34, %v1960_v45  ;;  %v1988_v40 = vmul.f32 %v7576_v35, %v7024_v4  ;;  %v5656_v14 = vld [vmem:[%s6603_s26 + $0x154] ss:$8 sps:$4 sm:$0xff]   ;;  %v7627_v29 = vadd.f32 %v1916_v1, %v1915_v47  ;;  %v1930_v46 = vrot.slane %v1929_v53, 2 }
 0x1f4   : > { %4666 = vmatpush1.bf16.msra.mxu1 %v5642_v31  ;;  %v1937_v7 = vrot.slane %v1936_v21, 2  ;;  %v2606_v23 = vrot.slane %v2605_v22, 4  ;;  %v7630_v31 = vpop.permute.xlu0 %2677  ;;  %v2620_v19 = vrot.slane %v2619_v39, 4  ;;  %v1959_v36 = vmul.f32 %v7556_v3, %v8423_v41  ;;  %v5659_v45 = vld [vmem:[%s6603_s26 + $0x554] ss:$8 sps:$4 sm:$0xff]  }
 0x1f5   : > { %4667 = vmatprep.subr.bf16.mxu1 %v5650_v50  ;;  %8422 = vst [vmem:[#allocation12_spill] sm:$0xff] %v7627_v29  ;;  %v1990_v47 = vmul.f32 %v7576_v35, %v8400_v8  ;;  %v1992_v50 = vadd.f32 %v1988_v40, %v1977_v2  ;;  %v2615_v1 = vrot.slane %v2614_v63, 2  ;;  %v8425_v34 = vld [vmem:[#allocation20_spill] sm:$0xff]  ;;  %v1976_v28 = vmul.f32 %v7563_v12, %v8426_v58  ;;  %v5662_v2 = vld [vmem:[%s6603_s26 + $0x164] ss:$8 sps:$4 sm:$0xff]  }
 0x1f6   : > { %4830 = vmatpush1.bf16.msra.mxu0 %v5645_v56  ;;  %v1961_v56 = vmul.f32 %v7556_v3, %v8424_v42  ;;  %v1974_v0 = vmul.f32 %v7563_v12, %v8425_v34  ;;  %v2629_v24 = vrot.slane %v2628_v62, 2  ;;  %v7648_v40 = vstv %s7608_s29 }
 0x1f7   : > { %4831 = vmatprep.subr.bf16.mxu0 %v5653_v57  ;;  %v7644_v57 = vpop.permute.xlu1 %2015  ;;  %v1994_v25 = vadd.f32 %v1990_v47, %v1979_v10  ;;  %8427 = vst [vmem:[#allocation23_spill] sm:$0xff] %v7648_v40  ;;  %v7651_v52 = vstv %s7610_s18  ;;  %v7654_v15 = vadd.f32 %v1923_v13, %v1922_v54  ;;  %v7656_v43 = vadd.f32 %v1930_v46, %v1929_v53  ;;  %v5665_v13 = vld [vmem:[%s6603_s26 + $0x564] ss:$8 sps:$4 sm:$0xff]  }
 0x1f8   : > { %4668 = vmatpush1.bf16.msra.mxu1 %v5648_v20  ;;  %8428 = vst [vmem:[#allocation38_spill] sm:$0xff] %v7651_v52  ;;  %v1989_v12 = vmul.f32 %v7576_v35, %v8399_v30  ;;  %v5657_v20 = vld [vmem:[%s6603_s26 + $0x550] ss:$8 sps:$4 sm:$0xff]   ;;  %v7661_v10 = vadd.f32 %v1937_v7, %v1936_v21  ;;  %v7665_v47 = vadd.f32 %v2620_v19, %v2619_v39  ;;  %v5660_v7 = vld [vmem:[%s6603_s26 + $0x160] ss:$8 sps:$4 sm:$0xff]  }
 0x1f9   : > { %4669 = vmatprep.subr.bf16.mxu1 %v5656_v14  ;;  %v7663_v14 = vadd.f32 %v2606_v23, %v2605_v22  ;;  %v2003_v54 = vmul.f32 %v7613_v27, %v7049_v32  ;;  %v7670_v3 = vadd.f32 %v2615_v1, %v2614_v63  ;;  %v1978_v53 = vadd.f32 %v1974_v0, %v1959_v36  ;;  %v7675_v22 = vpop.permute.xlu0 %2692  ;;  %v5663_v19 = vld [vmem:[%s6603_s26 + $0x560] ss:$8 sps:$4 sm:$0xff]  }
 0x1fa   : > { %4832 = vmatpush1.bf16.msra.mxu0 %v5651_v9  ;;  %v1980_v46 = vadd.f32 %v1976_v28, %v1961_v56  ;;  %v2005_v21 = vmul.f32 %v7613_v27, %v7087_v17  ;;  %v7677_v39 = vadd.f32 %v2629_v24, %v2628_v62  ;;  %v1991_v23 = vmul.f32 %v7576_v35, %v8401_v51  ;;  %v5668_v28 = vld [vmem:[%s6603_s26 + $0x174] ss:$8 sps:$4 sm:$0xff]  }
 0x1fb   : > { %4833 = vmatprep.subr.bf16.mxu0 %v5659_v45  ;;  %v2650_v9 = vmul.f32 %v7583_v61, %v8417_v38  ;;  %v2007_v63 = vadd.f32 %v2003_v54, %v1992_v50  ;;  %v1993_v0 = vadd.f32 %v1989_v12, %v1978_v53  ;;  %v2666_v24 = vmul.f32 %v7601_v59, %v8425_v34  ;;  %v2031_v36 = vpop.permute.xlu1 %2030  ;;  %v5671_v56 = vld [vmem:[%s6603_s26 + $0x574] ss:$8 sps:$4 sm:$0xff]  }
 0x1fc   : > { %4670 = vmatpush1.bf16.msra.mxu1 %v5654_v16  ;;  %v2665_v16 = vmul.f32 %v7601_v59, %v8419_v60  ;;  %v2009_v62 = vadd.f32 %v2005_v21, %v1994_v25  ;;  %v2651_v35 = vmul.f32 %v7583_v61, %v8423_v41  ;;  %v2667_v50 = vmul.f32 %v7601_v59, %v8420_v6  ;;  %v5674_v21 = vld [vmem:[%s6603_s26 + $0x184] ss:$8 sps:$4 sm:$0xff]  }
 0x1fd   : > { %4671 = vmatprep.subr.bf16.mxu1 %v5662_v2  ;;  %v2668_v45 = vmul.f32 %v7601_v59, %v8426_v58  ;;  %v2018_v1 = vmul.f32 %v7644_v57, %v7080_v5  ;;  %v2004_v25 = vmul.f32 %v7613_v27, %v7224_v26  ;;  %v2006_v2 = vmul.f32 %v7613_v27, %v7251_v49  ;;  %v5666_v59 = vld [vmem:[%s6603_s26 + $0x170] ss:$8 sps:$4 sm:$0xff]   ;;  %v7715_v6 = vpop.permute.xlu0 %2707 }
 0x1fe   : > { %4834 = vmatpush1.bf16.msra.mxu0 %v5657_v20  ;;  %v2680_v12 = vmul.f32 %v7630_v31, %v7024_v4  ;;  %v2020_v20 = vmul.f32 %v7644_v57, %v7103_v37  ;;  %v2652_v54 = vmul.f32 %v7583_v61, %v8418_v11  ;;  %v2681_v53 = vmul.f32 %v7630_v31, %v8399_v30  ;;  %v5669_v58 = vld [vmem:[%s6603_s26 + $0x570] ss:$8 sps:$4 sm:$0xff]  }
 0x1ff   : > { %4835 = vmatprep.subr.bf16.mxu0 %v5665_v13  ;;  %v2653_v13 = vmul.f32 %v7583_v61, %v8424_v42  ;;  %v2022_v27 = vadd.f32 %v2018_v1, %v2007_v63  ;;  %v2669_v52 = vadd.f32 %v2665_v16, %v2650_v9  ;;  %v2670_v29 = vadd.f32 %v2666_v24, %v2651_v35  ;;  %v5672_v24 = vld [vmem:[%s6603_s26 + $0x180] ss:$8 sps:$4 sm:$0xff]  }
 0x200   : > { %4672 = vmatpush1.bf16.msra.mxu1 %v5660_v7  ;;  %v1995_v7 = vadd.f32 %v1991_v23, %v1980_v46  ;;  %v2024_v4 = vadd.f32 %v2020_v20, %v2009_v62  ;;  %v2671_v34 = vadd.f32 %v2667_v50, %v2652_v54  ;;  %v2682_v61 = vmul.f32 %v7630_v31, %v8400_v8  ;;  %v2046_v62 = vpop.permute.xlu1 %2045  ;;  %v5675_v1 = vld [vmem:[%s6603_s26 + $0x580] ss:$8 sps:$4 sm:$0xff]   ;;  %v8430_v54 = vld [vmem:[#allocation29_spill] sm:$0xff] }
 0x201   : > { %4673 = vmatprep.subr.bf16.mxu1 %v5668_v28  ;;  %v2672_v41 = vadd.f32 %v2668_v45, %v2653_v13  ;;  %v2683_v63 = vmul.f32 %v7630_v31, %v8401_v51  ;;  %v5677_v28 = vld [vmem:[%s6603_s26 + $0x584] ss:$8 sps:$4 sm:$0xff]   ;;  %v2008_v46 = vadd.f32 %v2004_v25, %v1993_v0  ;;  %v2684_v9 = vadd.f32 %v2680_v12, %v2669_v52  ;;  %v5680_v52 = vld [vmem:[%s6603_s26 + $0x194] ss:$8 sps:$4 sm:$0xff]  }
 0x202   : > { %4836 = vmatpush1.bf16.msra.mxu0 %v5663_v19  ;;  %v2010_v23 = vadd.f32 %v2006_v2, %v1995_v7  ;;  %v2019_v16 = vmul.f32 %v7644_v57, %v7281_v44  ;;  %v2685_v19 = vadd.f32 %v2681_v53, %v2670_v29  ;;  %v2021_v35 = vmul.f32 %v7644_v57, %v7293_v18  ;;  %v8429_v12 = vld [vmem:[#allocation17_spill] sm:$0xff] }
 0x203   : > { %4837 = vmatprep.subr.bf16.mxu0 %v5671_v56  ;;  %v2695_v31 = vmul.f32 %v7675_v22, %v7049_v32  ;;  %v2696_v0 = vmul.f32 %v7675_v22, %v7224_v26  ;;  %v2698_v50 = vmul.f32 %v7675_v22, %v7251_v49  ;;  %v2033_v45 = vmul.f32 %v2031_v36, %v7109_v33  ;;  %v5678_v7 = vld [vmem:[%s6603_s26 + $0x190] ss:$8 sps:$4 sm:$0xff]  }
 0x204   : > { %4674 = vmatpush1.bf16.msra.mxu1 %v5666_v59  ;;  %v1925_v29 = vrot.slane %v7654_v15, 1  ;;  %v1939_v57 = vrot.slane %v7661_v10, 1  ;;  %v7738_v56 = vadd.f32 %v2682_v61, %v2671_v34  ;;  %v2687_v25 = vadd.f32 %v2683_v63, %v2672_v41  ;;  %v7747_v34 = vpop.permute.xlu0 %2722 }
 0x205   : > { %4675 = vmatprep.subr.bf16.mxu1 %v5674_v21  ;;  %v2034_v2 = vmul.f32 %v2031_v36, %v7309_v48  ;;  %v2035_v20 = vmul.f32 %v2031_v36, %v8429_v12  ;;  %v2023_v59 = vadd.f32 %v2019_v16, %v2008_v46  ;;  %v2036_v13 = vmul.f32 %v2031_v36, %v8430_v54  ;;  %v5686_v36 = vld [vmem:[%s6603_s26 + $0x1a4] ss:$8 sps:$4 sm:$0xff]  }
 0x206   : > { %4838 = vmatpush1.bf16.msra.mxu0 %v5669_v58  ;;  %v5683_v58 = vld [vmem:[%s6603_s26 + $0x594] ss:$8 sps:$4 sm:$0xff]   ;;  %v1926_v53 = vadd.f32 %v1925_v29, %v7654_v15  ;;  %v1940_v21 = vadd.f32 %v1939_v57, %v7661_v10  ;;  %v2025_v41 = vadd.f32 %v2021_v35, %v2010_v23  ;;  %v7751_v61 = vmul.f32 %v7675_v22, %v7087_v17  ;;  %v2061_v23 = vpop.permute.xlu1 %2060 }
 0x207   : > { %4839 = vmatprep.subr.bf16.mxu0 %v5677_v28  ;;  %v7753_v63 = vadd.f32 %v2695_v31, %v2684_v9  ;;  %v2700_v28 = vadd.f32 %v2696_v0, %v2685_v19  ;;  %v2702_v46 = vadd.f32 %v2698_v50, %v2687_v25  ;;  %v2037_v15 = vadd.f32 %v2033_v45, %v2022_v27  ;;  %v5689_v19 = vld [vmem:[%s6603_s26 + $0x5a4] ss:$8 sps:$4 sm:$0xff]   ;;  %v5684_v50 = vld [vmem:[%s6603_s26 + $0x1a0] ss:$8 sps:$4 sm:$0xff]  }
 0x208   : > { %4676 = vmatpush1.bf16.msra.mxu1 %v5672_v24  ;;  %v1944_v16 = vadd.f32 %v7622_v55, %v1926_v53  ;;  %v1946_v10 = vadd.f32 %v7622_v55, %v1940_v21  ;;  %v5681_v24 = vld [vmem:[%s6603_s26 + $0x590] ss:$8 sps:$4 sm:$0xff]   ;;  %v2038_v35 = vadd.f32 %v2034_v2, %v2023_v59  ;;  %v2039_v29 = vadd.f32 %v2035_v20, %v2024_v4  ;;  %v5692_v2 = vld [vmem:[%s6603_s26 + $0x1b4] ss:$8 sps:$4 sm:$0xff]   ;;  %v8434_v21 = vld [vmem:[#allocation6_spill] sm:$0xff] }
 0x209   : > { %4677 = vmatprep.subr.bf16.mxu1 %v5680_v52  ;;  %v2617_v22 = vrot.slane %v7670_v3, 1  ;;  %v2631_v9 = vrot.slane %v7677_v39, 1  ;;  %v2040_v31 = vadd.f32 %v2036_v13, %v2025_v41  ;;  %v2711_v52 = vmul.f32 %v7715_v6, %v7281_v44  ;;  %v8431_v4 = vld [vmem:[#allocation24_spill] sm:$0xff]  ;;  %v8433_v13 = vld [vmem:[#allocation27_spill] sm:$0xff] }
 0x20a   : > { %4840 = vmatpush1.bf16.msra.mxu0 %v5675_v1  ;;  %v1948_v0 = vmax.f32 %v1944_v16, 0.0  ;;  %v1950_v27 = vmax.f32 %v1946_v10, 0.0  ;;  %v2713_v45 = vmul.f32 %v7715_v6, %v7293_v18  ;;  %v2048_v57 = vmul.f32 %v2046_v62, %v8431_v4  ;;  %v5687_v41 = vld [vmem:[%s6603_s26 + $0x5a0] ss:$8 sps:$4 sm:$0xff]   ;;  %v7776_v16 = vpop.permute.xlu0 %2737  ;;  %v5698_v18 = vld [vmem:[%s6603_s26 + $0x1c4] ss:$8 sps:$4 sm:$0xff]  }
 0x20b   : > { %4841 = vmatprep.subr.bf16.mxu0 %v5683_v58  ;;  %v2618_v1 = vadd.f32 %v2617_v22, %v7670_v3  ;;  %v2632_v25 = vadd.f32 %v2631_v9, %v7677_v39  ;;  %v8432_v58 = vld [vmem:[#allocation30_spill] sm:$0xff]  ;;  %v2050_v53 = vmul.f32 %v2046_v62, %v8433_v13  ;;  %v5695_v22 = vld [vmem:[%s6603_s26 + $0x5b4] ss:$8 sps:$4 sm:$0xff]   ;;  %v7785_v9 = vmul.f32 %v7715_v6, %v7080_v5 }
 0x20c   : > { %4678 = vmatpush1.bf16.msra.mxu1 %v5678_v7  ;;  %v3003_v20 = vsel %vm2993_vm13, %v1950_v27, %v1948_v0  ;;  %v2049_v59 = vmul.f32 %v2046_v62, %v8432_v58  ;;  %v2051_v7 = vmul.f32 %v2046_v62, %v8434_v21  ;;  %v7789_v62 = vmul.f32 %v7715_v6, %v7103_v37  ;;  %v8435_v0 = vld [vmem:[#allocation33_spill] sm:$0xff] }
 0x20d   : > { %4679 = vmatprep.subr.bf16.mxu1 %v5686_v36  ;;  %v3057_v10 = vpack.c.bf16 %v3003_v20, %v3003_v20  ;;  %v2636_v3 = vadd.f32 %v7648_v40, %v2618_v1  ;;  %v2638_v39 = vadd.f32 %v7648_v40, %v2632_v25  ;;  %v2726_v36 = vmul.f32 %v7747_v34, %v7309_v48  ;;  %v2076_v1 = vpop.permute.xlu1 %2075  ;;  %v5690_v25 = vld [vmem:[%s6603_s26 + $0x1b0] ss:$8 sps:$4 sm:$0xff]   ;;  %v8436_v40 = vld [vmem:[#allocation31_spill] sm:$0xff] }
 0x20e   : > { %4842 = vmatpush1.bf16.msra.mxu0 %v5681_v24  ;;  %v2715_v24 = vadd.f32 %v2711_v52, %v2700_v28  ;;  %v2063_v27 = vmul.f32 %v2061_v23, %v8435_v0  ;;  %v2717_v20 = vadd.f32 %v2713_v45, %v2702_v46  ;;  %v2064_v55 = vmul.f32 %v2061_v23, %v8436_v40  ;;  %v8437_v28 = vld [vmem:[#allocation7_spill] sm:$0xff] }
 0x20f   : > { %4843 = vmatprep.subr.bf16.mxu0 %v5689_v19  ;;  %4691 = vmatprep.mubr.bf16.mxu1 %v3057_v10  ;;  %v2640_v48 = vmax.f32 %v2636_v3, 0.0  ;;  %v2642_v19 = vmax.f32 %v2638_v39, 0.0  ;;  %v2052_v44 = vadd.f32 %v2048_v57, %v2037_v15  ;;  %v2053_v5 = vadd.f32 %v2049_v59, %v2038_v35  ;;  %v5701_v3 = vld [vmem:[%s6603_s26 + $0x5c4] ss:$8 sps:$4 sm:$0xff]   ;;  %v7804_v59 = vpop.permute.xlu0 %2752 }
 0x210   : > { %4680 = vmatpush1.bf16.msra.mxu1 %v5684_v50  ;;  %v2728_v6 = vmul.f32 %v7747_v34, %v8430_v54  ;;  %v2066_v52 = vmul.f32 %v2061_v23, %v8437_v28  ;;  %v5693_v50 = vld [vmem:[%s6603_s26 + $0x5b0] ss:$8 sps:$4 sm:$0xff]   ;;  %v2054_v37 = vadd.f32 %v2050_v53, %v2039_v29  ;;  %v2055_v10 = vadd.f32 %v2051_v7, %v2040_v31  ;;  %v8438_v39 = vld [vmem:[#allocation34_spill] sm:$0xff]  ;;  %v8439_v31 = vld [vmem:[#allocation35_spill] sm:$0xff] }
 0x211   : > { %4681 = vmatprep.subr.bf16.mxu1 %v5692_v2  ;;  %v3035_v46 = vsel %vm2993_vm13, %v2642_v19, %v2640_v48  ;;  %v2730_v45 = vadd.f32 %v2726_v36, %v2715_v24  ;;  %v2065_v15 = vmul.f32 %v2061_v23, %v8438_v39  ;;  %v2067_v35 = vadd.f32 %v2063_v27, %v2052_v44  ;;  %v8440_v7 = vld [vmem:[#allocation32_spill] sm:$0xff]  ;;  %v8442_v19 = vld [vmem:[#allocation37_spill] sm:$0xff] }
 0x212   : > { %4844 = vmatpush1.bf16.msra.mxu0 %v5687_v41  ;;  %v3065_v2 = vpack.c.bf16 %v3035_v46, %v3035_v46  ;;  %v2741_v57 = vmul.f32 %v7776_v16, %v8432_v58  ;;  %v5696_v41 = vld [vmem:[%s6603_s26 + $0x1c0] ss:$8 sps:$4 sm:$0xff]   ;;  %v2068_v29 = vadd.f32 %v2064_v55, %v2053_v5  ;;  %v2743_v48 = vmul.f32 %v7776_v16, %v8434_v21  ;;  %v5704_v23 = vld [vmem:[%s6603_s26 + $0x1d4] ss:$8 sps:$4 sm:$0xff]   ;;  %v7814_v5 = vpop.permute.xlu1 %2767 }
 0x213   : > { %4845 = vmatprep.subr.bf16.mxu0 %v5695_v22  ;;  %v2078_v53 = vmul.f32 %v2076_v1, %v8439_v31  ;;  %v2079_v36 = vmul.f32 %v2076_v1, %v8440_v7  ;;  %v2732_v22 = vadd.f32 %v2728_v6, %v2717_v20  ;;  %v2070_v24 = vadd.f32 %v2066_v52, %v2055_v10  ;;  %v8441_v27 = vld [vmem:[#allocation16_spill] sm:$0xff]  ;;  %v5699_v55 = vld [vmem:[%s6603_s26 + $0x5c0] ss:$8 sps:$4 sm:$0xff]  }
 0x214   : > { %4682 = vmatpush1.bf16.msra.mxu1 %v5690_v25  ;;  %4855 = vmatprep.mubr.bf16.mxu0 %v3065_v2  ;;  %v2081_v25 = vmul.f32 %v2076_v1, %v8441_v27  ;;  %v2080_v46 = vmul.f32 %v2076_v1, %v8442_v19  ;;  %v5707_v44 = vld [vmem:[%s6603_s26 + $0x5d4] ss:$8 sps:$4 sm:$0xff]   ;;  %v2701_v20 = vadd.f32 %v7751_v61, %v7738_v56  ;;  %v5702_v10 = vld [vmem:[%s6603_s26 + $0x1d0] ss:$8 sps:$4 sm:$0xff]  }
 0x215   : > { %4683 = vmatprep.subr.bf16.mxu1 %v5698_v18  ;;  %v2082_v21 = vadd.f32 %v2078_v53, %v2067_v35  ;;  %v2083_v58 = vadd.f32 %v2079_v36, %v2068_v29  ;;  %v2756_v18 = vmul.f32 %v7804_v59, %v8436_v40  ;;  %v2745_v6 = vadd.f32 %v2741_v57, %v2730_v45  ;;  %v5710_v29 = vld [vmem:[%s6603_s26 + $0x1e4] ss:$8 sps:$4 sm:$0xff]   ;;  %v5705_v53 = vld [vmem:[%s6603_s26 + $0x5d0] ss:$8 sps:$4 sm:$0xff]  }
 0x216   : > { %4846 = vmatpush1.bf16.msra.mxu0 %v5693_v50  ;;  %v2085_v52 = vadd.f32 %v2081_v25, %v2070_v24  ;;  %v2758_v50 = vmul.f32 %v7804_v59, %v8437_v28  ;;  %v2725_v1 = vmul.f32 %v7747_v34, %v7109_v33  ;;  %v2069_v2 = vadd.f32 %v2065_v15, %v2054_v37  ;;  %v7847_v24 = vpop.permute.xlu1 %2143  ;;  %v8448_v40 = vld [vmem:[#allocation9_spill] sm:$0xff] }
 0x217   : > { %4847 = vmatprep.subr.bf16.mxu0 %v5701_v3  ;;  %v2747_v35 = vadd.f32 %v2743_v48, %v2732_v22  ;;  %v2086_v3 = vsel %vm1739_vm12, %v2082_v21, 0.0  ;;  %v2727_v56 = vmul.f32 %v7747_v34, %v8429_v12  ;;  %v2093_v61 = vsel %vm1739_vm12, %v2083_v58, 0.0  ;;  %v5713_v34 = vld [vmem:[%s6603_s26 + $0x5e4] ss:$8 sps:$4 sm:$0xff]  }
 0x218   : > { %4684 = vmatpush1.bf16.msra.mxu1 %v5696_v41  ;;  %v2107_v45 = vsel %vm1739_vm12, %v2085_v52, 0.0  ;;  %v2760_v57 = vadd.f32 %v2756_v18, %v2745_v6  ;;  %v7834_v41 = vpop.permute.xlu0 %2128  ;;  %v2714_v37 = vadd.f32 %v7785_v9, %v7753_v63  ;;  %v2716_v21 = vadd.f32 %v7789_v62, %v2701_v20  ;;  %v5708_v63 = vld [vmem:[%s6603_s26 + $0x1e0] ss:$8 sps:$4 sm:$0xff]  }
 0x219   : > { %4685 = vmatprep.subr.bf16.mxu1 %v5704_v23  ;;  %v2084_v15 = vadd.f32 %v2080_v46, %v2069_v2  ;;  %v2762_v48 = vadd.f32 %v2758_v50, %v2747_v35  ;;  %v2740_v58 = vmul.f32 %v7776_v16, %v8431_v4  ;;  %v2742_v36 = vmul.f32 %v7776_v16, %v8433_v13  ;;  %v5711_v6 = vld [vmem:[%s6603_s26 + $0x5e0] ss:$8 sps:$4 sm:$0xff]   ;;  %v5719_v35 = vld [vmem:[%s6603_s26 + $0x5f4] ss:$8 sps:$4 sm:$0xff]  }
 0x21a   : > { %4848 = vmatpush1.bf16.msra.mxu0 %v5699_v55  ;;  %v2087_v23 = vrot.slane %v2086_v3, 4  ;;  %v2771_v22 = vmul.f32 %v7814_v5, %v8440_v7  ;;  %v2622_v9 = vrot.slane %v7665_v47, 2  ;;  %v2094_v62 = vrot.slane %v2093_v61, 4  ;;  %v5716_v55 = vld [vmem:[%s6603_s26 + $0x1f4] ss:$8 sps:$4 sm:$0xff]  }
 0x21b   : > { %4849 = vmatprep.subr.bf16.mxu0 %v5707_v44  ;;  %v2108_v44 = vrot.slane %v2107_v45, 4  ;;  %v2773_v25 = vmul.f32 %v7814_v5, %v8441_v27  ;;  %v2729_v16 = vadd.f32 %v2725_v1, %v2714_v37  ;;  %v2731_v46 = vadd.f32 %v2727_v56, %v2716_v21  ;;  %v5714_v21 = vld [vmem:[%s6603_s26 + $0x1f0] ss:$8 sps:$4 sm:$0xff]  }
 0x21c   : > { %4686 = vmatpush1.bf16.msra.mxu1 %v5702_v10  ;;  %v2755_v18 = vmul.f32 %v7804_v59, %v8435_v0  ;;  %v2775_v20 = vadd.f32 %v2771_v22, %v2760_v57  ;;  %v2100_v50 = vsel %vm1739_vm12, %v2084_v15, 0.0  ;;  %v2757_v10 = vmul.f32 %v7804_v59, %v8438_v39  ;;  %v7867_v37 = vpop.permute.xlu0 %2158 }
 0x21d   : > { %4687 = vmatprep.subr.bf16.mxu1 %v5710_v29  ;;  %v2777_v2 = vadd.f32 %v2773_v25, %v2762_v48  ;;  %v8443_v1 = vrot.slane %v7663_v14, 2  ;;  %v2744_v56 = vadd.f32 %v2740_v58, %v2729_v16  ;;  %v2746_v57 = vadd.f32 %v2742_v36, %v2731_v46 }
 0x21e   : > { %4850 = vmatpush1.bf16.msra.mxu0 %v5705_v53  ;;  %v2088_v53 = vadd.f32 %v2087_v23, %v2086_v3  ;;  %v2095_v15 = vadd.f32 %v2094_v62, %v2093_v61  ;;  %v2109_v22 = vadd.f32 %v2108_v44, %v2107_v45  ;;  %v2785_v59 = vsel %vm1739_vm12, %v2775_v20, 0.0  ;;  %v7876_v23 = vpop.permute.xlu1 %2820  ;;  %v5725_v44 = vld [vmem:[%s6603_s26 + $0x604] ss:$8 sps:$4 sm:$0xff]  }
 0x21f   : > { %4851 = vmatprep.subr.bf16.mxu0 %v5713_v34  ;;  %v7865_v29 = vadd.f32 %v8443_v1, %v7663_v14  ;;  %v2799_v48 = vsel %vm1739_vm12, %v2777_v2, 0.0  ;;  %v5722_v34 = vld [vmem:[%s6603_s26 + $0x204] ss:$8 sps:$4 sm:$0xff]   ;;  %v7874_v14 = vadd.f32 %v2622_v9, %v7665_v47  ;;  %v2101_v58 = vrot.slane %v2100_v50, 4  ;;  %v8445_v1 = vld [vmem:[#allocation20_spill] sm:$0xff] }
 0x220   : > { %4688 = vmatpush1.bf16.msra.mxu1 %v5708_v63  ;;  %v2759_v36 = vadd.f32 %v2755_v18, %v2744_v56  ;;  %v2786_v3 = vrot.slane %v2785_v59, 4  ;;  %v5717_v63 = vld [vmem:[%s6603_s26 + $0x5f0] ss:$8 sps:$4 sm:$0xff]   ;;  %v2761_v25 = vadd.f32 %v2757_v10, %v2746_v57  ;;  %v2770_v61 = vmul.f32 %v7814_v5, %v8439_v31  ;;  %v8444_v10 = vld [vmem:[#allocation18_spill] sm:$0xff] }
 0x221   : > { %4689 = vmatprep.subr.bf16.mxu1 %v5716_v55  ;;  %v2800_v45 = vrot.slane %v2799_v48, 4  ;;  %v2131_v62 = vmul.f32 %v7834_v41, %v8417_v38  ;;  %v2089_v55 = vrot.slane %v2088_v53, 2  ;;  %v2772_v47 = vmul.f32 %v7814_v5, %v8442_v19  ;;  %v8446_v56 = vld [vmem:[#allocation10_spill] sm:$0xff] }
 0x222   : > { %4852 = vmatpush1.bf16.msra.mxu0 %v5711_v6  ;;  %v2787_v9 = vadd.f32 %v2786_v3, %v2785_v59  ;;  %v2133_v16 = vmul.f32 %v7834_v41, %v8418_v11  ;;  %v2096_v46 = vrot.slane %v2095_v15, 2  ;;  %v2110_v18 = vrot.slane %v2109_v22, 2  ;;  %v8447_v3 = vld [vmem:[#allocation21_spill] sm:$0xff]  ;;  %v2174_v19 = vpop.permute.xlu1 %2173 }
 0x223   : > { %4853 = vmatprep.subr.bf16.mxu0 %v5719_v35  ;;  %v2801_v20 = vadd.f32 %v2800_v45, %v2799_v48  ;;  %v2146_v6 = vmul.f32 %v7847_v24, %v8419_v60  ;;  %v2132_v2 = vmul.f32 %v7834_v41, %v8444_v10  ;;  %v2134_v35 = vmul.f32 %v7834_v41, %v8424_v42 }
 0x224   : > { %4690 = vmatpush1.bf16.msra.mxu1 %v5714_v21  ;;  %v2147_v5 = vmul.f32 %v7847_v24, %v8445_v1  ;;  %v2148_v57 = vmul.f32 %v7847_v24, %v8446_v56  ;;  %v2836_v21 = vpop.permute.xlu0 %2835  ;;  %v2788_v59 = vrot.slane %v2787_v9, 2  ;;  %v2149_v45 = vmul.f32 %v7847_v24, %v8447_v3 }
 0x225   : > { %4700 = vmatprep.subr.bf16.mxu1 %v5722_v34  ;;  %v2802_v48 = vrot.slane %v2801_v20, 2  ;;  %v2150_v34 = vadd.f32 %v2146_v6, %v2131_v62  ;;  %v2610_v52 = vrot.slane %v7865_v29, 1  ;;  %v2624_v27 = vrot.slane %v7874_v14, 1 }
 0x226   : > { %4854 = vmatpush1.bf16.msra.mxu0 %v5717_v63  ;;  %v7902_v41 = vadd.f32 %v2101_v58, %v2100_v50  ;;  %v2152_v7 = vadd.f32 %v2148_v57, %v2133_v16  ;;  %v7904_v28 = vadd.f32 %v2089_v55, %v2088_v53  ;;  %v7906_v31 = vadd.f32 %v2770_v61, %v2759_v36  ;;  %v2189_v6 = vpop.permute.xlu1 %2188 }
 0x227   : > { %4864 = vmatprep.subr.bf16.mxu0 %v5725_v44  ;;  %v7908_v63 = vadd.f32 %v2772_v47, %v2761_v25  ;;  %v2161_v39 = vmul.f32 %v7867_v37, %v8448_v40  ;;  %v7912_v24 = vadd.f32 %v2096_v46, %v2095_v15  ;;  %v7914_v62 = vadd.f32 %v2110_v18, %v2109_v22 }
 0x228   : > { %v2151_v44 = vadd.f32 %v2147_v5, %v2132_v2  ;;  %v2163_v50 = vmul.f32 %v7867_v37, %v8400_v8  ;;  %v7918_v58 = vadd.f32 %v2788_v59, %v2787_v9  ;;  %v7920_v16 = vadd.f32 %v2802_v48, %v2801_v20  ;;  %v2851_v55 = vpop.permute.xlu0 %2850  ;;  %v8449_v48 = vld [vmem:[#allocation14_spill] sm:$0xff] }
 0x229   : > { %v2153_v53 = vadd.f32 %v2149_v45, %v2134_v35  ;;  %v2165_v36 = vadd.f32 %v2161_v39, %v2150_v34  ;;  %v2162_v25 = vmul.f32 %v7867_v37, %v8399_v30  ;;  %v2823_v15 = vmul.f32 %v7876_v23, %v8417_v38 }
 0x22a   : > { %v2167_v61 = vadd.f32 %v2163_v50, %v2152_v7  ;;  %v2838_v22 = vmul.f32 %v2836_v21, %v8419_v60  ;;  %v2164_v47 = vmul.f32 %v7867_v37, %v8401_v51  ;;  %v2825_v9 = vmul.f32 %v7876_v23, %v8418_v11 }
 0x22b   : > { %v2840_v46 = vmul.f32 %v2836_v21, %v8446_v56  ;;  %v2176_v39 = vmul.f32 %v2174_v19, %v7049_v32  ;;  %v2839_v18 = vmul.f32 %v2836_v21, %v8445_v1  ;;  %v2841_v7 = vmul.f32 %v2836_v21, %v8447_v3 }
 0x22c   : > { %v2842_v20 = vadd.f32 %v2838_v22, %v2823_v15  ;;  %v2178_v38 = vmul.f32 %v2174_v19, %v7087_v17  ;;  %v2177_v2 = vmul.f32 %v2174_v19, %v7224_v26  ;;  %v2179_v37 = vmul.f32 %v2174_v19, %v7251_v49  ;;  %v8450_v19 = vld [vmem:[#allocation15_spill] sm:$0xff]  ;;  %v2866_v15 = vpop.permute.xlu0 %2865 }
 0x22d   : > { %v2844_v60 = vadd.f32 %v2840_v46, %v2825_v9  ;;  %v2180_v35 = vadd.f32 %v2176_v39, %v2165_v36  ;;  %v2824_v11 = vmul.f32 %v7876_v23, %v8444_v10  ;;  %v2826_v5 = vmul.f32 %v7876_v23, %v8424_v42 }
 0x22e   : > { %v2182_v56 = vadd.f32 %v2178_v38, %v2167_v61  ;;  %v2853_v1 = vmul.f32 %v2851_v55, %v8448_v40  ;;  %v2166_v57 = vadd.f32 %v2162_v25, %v2151_v44  ;;  %v2168_v21 = vadd.f32 %v2164_v47, %v2153_v53  ;;  %v8451_v44 = vld [vmem:[#allocation12_spill] sm:$0xff] }
 0x22f   : > { %v2855_v59 = vmul.f32 %v2851_v55, %v8400_v8  ;;  %v2191_v3 = vmul.f32 %v2189_v6, %v8449_v48  ;;  %v2843_v45 = vadd.f32 %v2839_v18, %v2824_v11  ;;  %v2845_v34 = vadd.f32 %v2841_v7, %v2826_v5  ;;  %v8454_v7 = vld [vmem:[#allocation25_spill] sm:$0xff] }
 0x230   : > { %v2857_v50 = vadd.f32 %v2853_v1, %v2842_v20  ;;  %v2193_v36 = vmul.f32 %v2189_v6, %v8450_v19  ;;  %v2181_v22 = vadd.f32 %v2177_v2, %v2166_v57  ;;  %v2183_v10 = vadd.f32 %v2179_v37, %v2168_v21  ;;  %v2204_v2 = vpop.permute.xlu1 %2203 }
 0x231   : > { %v2859_v9 = vadd.f32 %v2855_v59, %v2844_v60  ;;  %v2195_v46 = vadd.f32 %v2191_v3, %v2180_v35  ;;  %v2854_v42 = vmul.f32 %v2851_v55, %v8399_v30  ;;  %v2856_v40 = vmul.f32 %v2851_v55, %v8401_v51  ;;  %v8455_v30 = vld [vmem:[#allocation26_spill] sm:$0xff]  ;;  %v8457_v35 = vld [vmem:[#allocation23_spill] sm:$0xff]  ;;  %v2881_v3 = vpop.permute.xlu0 %2880 }
 0x232   : > { %v2197_v23 = vadd.f32 %v2193_v36, %v2182_v56  ;;  %v8452_v8 = vrot.slane %v8451_v44, 1  ;;  %v8453_v25 = vrot.slane %v7656_v43, 1  ;;  %v2611_v47 = vadd.f32 %v2610_v52, %v7865_v29  ;;  %v8456_v51 = vld [vmem:[#allocation22_spill] sm:$0xff] }
 0x233   : > { %v2625_v39 = vadd.f32 %v2624_v27, %v7874_v14  ;;  %v2868_v18 = vmul.f32 %v2866_v15, %v7049_v32  ;;  %v2192_v20 = vmul.f32 %v2189_v6, %v8454_v7  ;;  %v2194_v38 = vmul.f32 %v2189_v6, %v8455_v30  ;;  %v5723_v36 = vld [vmem:[%s6603_s26 + $0x600] ss:$8 sps:$4 sm:$0xff]  }
 0x234   : > { %v1919_v53 = vadd.f32 %v8452_v8, %v8451_v44  ;;  %v1933_v61 = vadd.f32 %v8453_v25, %v7656_v43  ;;  %v2870_v60 = vmul.f32 %v2866_v15, %v7087_v17  ;;  %v2635_v11 = vadd.f32 %v8457_v35, %v2611_v47  ;;  %v2219_v25 = vpop.permute.xlu1 %2218 }
 0x235   : > { %v2637_v43 = vadd.f32 %v8457_v35, %v2625_v39  ;;  %v2872_v52 = vadd.f32 %v2868_v18, %v2857_v50  ;;  %v2858_v27 = vadd.f32 %v2854_v42, %v2843_v45  ;;  %v2860_v29 = vadd.f32 %v2856_v40, %v2845_v34  ;;  %v5720_v34 = vld [vmem:[%s6603_s26 + $0x200] ss:$8 sps:$4 sm:$0xff]   ;;  %v5734_v35 = vld [vmem:[%s6603_s26 + $0x224] ss:$8 sps:$4 sm:$0xff]  }
 0x236   : > { %v1943_v55 = vadd.f32 %v8456_v51, %v1919_v53  ;;  %v1945_v37 = vadd.f32 %v8456_v51, %v1933_v61  ;;  %v2874_v14 = vadd.f32 %v2870_v60, %v2859_v9  ;;  %v2639_v5 = vmax.f32 %v2635_v11, 0.0  ;;  %v5731_v53 = vld [vmem:[%s6603_s26 + $0x614] ss:$8 sps:$4 sm:$0xff]   ;;  %v5729_v60 = vld [vmem:[%s6603_s26 + $0x610] ss:$8 sps:$4 sm:$0xff]  }
 0x237   : > { %v2641_v56 = vmax.f32 %v2637_v43, 0.0  ;;  %v2206_v17 = vmul.f32 %v2204_v2, %v7109_v33  ;;  %v2196_v1 = vadd.f32 %v2192_v20, %v2181_v22  ;;  %v2869_v57 = vmul.f32 %v2866_v15, %v7224_v26  ;;  %v5728_v26 = vld [vmem:[%s6603_s26 + $0x214] ss:$8 sps:$4 sm:$0xff]   ;;  %v5737_v11 = vld [vmem:[%s6603_s26 + $0x624] ss:$8 sps:$4 sm:$0xff]  }
 0x238   : > { %v1947_v32 = vmax.f32 %v1943_v55, 0.0  ;;  %v1949_v6 = vmax.f32 %v1945_v37, 0.0  ;;  %v2208_v21 = vmul.f32 %v2204_v2, %v8429_v12  ;;  %v2098_v59 = vrot.slane %v7912_v24, 1  ;;  %v8458_v61 = vld [vmem:[#allocation28_spill] sm:$0xff] }
 0x239   : > { %v3034_v50 = vsel %vm2993_vm13, %v2641_v56, %v2639_v5  ;;  %v2210_v9 = vadd.f32 %v2206_v17, %v2195_v46  ;;  %v2112_v42 = vrot.slane %v7914_v62, 1  ;;  %v2871_v22 = vmul.f32 %v2866_v15, %v7251_v49  ;;  %v2234_v17 = vpop.permute.xlu1 %2233 }
 0x23a   : > { %v3002_v45 = vsel %vm2993_vm13, %v1949_v6, %v1947_v32  ;;  %v3064_v44 = vpack.c.bf16 %v3034_v50, %v3034_v50  ;;  %v2212_v8 = vadd.f32 %v2208_v21, %v2197_v23  ;;  %v2207_v47 = vmul.f32 %v2204_v2, %v8458_v61  ;;  %v8459_v23 = vld [vmem:[#allocation38_spill] sm:$0xff] }
 0x23b   : > { %v3056_v40 = vpack.c.bf16 %v3002_v45, %v3002_v45  ;;  %v2099_v39 = vadd.f32 %v2098_v59, %v7912_v24  ;;  %v2113_v18 = vadd.f32 %v2112_v42, %v7914_v62  ;;  %v2883_v46 = vmul.f32 %v2881_v3, %v8449_v48  ;;  %v5726_v62 = vld [vmem:[%s6603_s26 + $0x210] ss:$8 sps:$4 sm:$0xff]   ;;  %v5732_v59 = vld [vmem:[%s6603_s26 + $0x220] ss:$8 sps:$4 sm:$0xff]  }
 0x23c   : > { %v2198_v20 = vadd.f32 %v2194_v38, %v2183_v10  ;;  %4856 = vmatmul.mubr.bf16.vlgmr.msra.gmra.mrb[0].mxu0 %v3064_v44  ;;  %v2873_v51 = vadd.f32 %v2869_v57, %v2858_v27  ;;  %v2885_v49 = vmul.f32 %v2881_v3, %v8450_v19  ;;  %v2790_v15 = vrot.slane %v7918_v58, 1  ;;  %v2896_v27 = vpop.permute.xlu0 %2895  ;;  %v5735_v45 = vld [vmem:[%s6603_s26 + $0x620] ss:$8 sps:$4 sm:$0xff]  }
 0x23d   : > { %4692 = vmatmul.mubr.bf16.vlgmr.msra.gmra.mrb[0].mxu1 %v3056_v40  ;;  %4865 = vmatpush1.bf16.msra.mxu0 %v5723_v36  ;;  %v2117_v55 = vadd.f32 %v8459_v23, %v2099_v39  ;;  %v2119_v24 = vadd.f32 %v8459_v23, %v2113_v18  ;;  %v2887_v48 = vadd.f32 %v2883_v46, %v2872_v52  ;;  %v2804_v10 = vrot.slane %v7920_v16, 1  ;;  %v8461_v42 = vld [vmem:[#allocation6_spill] sm:$0xff]  ;;  %v5738_v46 = vld [vmem:[%s6603_s26 + $0x230] ss:$8 sps:$4 sm:$0xff]  }
 0x23e   : > { %4701 = vmatpush1.bf16.msra.mxu1 %v5720_v34  ;;  %v2875_v38 = vadd.f32 %v2871_v22, %v2860_v29  ;;  %v2209_v37 = vmul.f32 %v2204_v2, %v8430_v54  ;;  %4866 = vmatprep.subr.bf16.mxu0 %v5731_v53  ;;  %v2889_v19 = vadd.f32 %v2885_v49, %v2874_v14  ;;  %v7993_v43 = vstv %s7964_s9 }
 0x23f   : > { %4702 = vmatprep.subr.bf16.mxu1 %v5728_v26  ;;  %v2211_v32 = vadd.f32 %v2207_v47, %v2196_v1  ;;  %v2121_v6 = vmax.f32 %v2117_v55, 0.0  ;;  %v2123_v5 = vmax.f32 %v2119_v24, 0.0  ;;  %v2221_v52 = vmul.f32 %v2219_v25, %v8431_v4  ;;  %v5746_v24 = vld [vmem:[%s6603_s26 + $0x244] ss:$8 sps:$4 sm:$0xff]  }
 0x240   : > { %v2884_v56 = vmul.f32 %v2881_v3, %v8454_v7  ;;  %v2223_v29 = vmul.f32 %v2219_v25, %v8433_v13  ;;  %v2791_v2 = vadd.f32 %v2790_v15, %v7918_v58  ;;  %v2805_v14 = vadd.f32 %v2804_v10, %v7920_v16  ;;  %v8460_v7 = vld [vmem:[#allocation30_spill] sm:$0xff]  ;;  %v5740_v58 = vld [vmem:[%s6603_s26 + $0x234] ss:$8 sps:$4 sm:$0xff]   ;;  %v2911_v53 = vpop.permute.xlu0 %2910 }
 0x241   : > { %v3011_v57 = vsel %vm2993_vm13, %v2123_v5, %v2121_v6  ;;  %4867 = vmatpush1.bf16.msra.mxu0 %v5729_v60  ;;  %v2886_v1 = vmul.f32 %v2881_v3, %v8455_v30  ;;  %v2225_v21 = vadd.f32 %v2221_v52, %v2210_v9  ;;  %v2222_v50 = vmul.f32 %v2219_v25, %v8460_v7  ;;  %v5743_v3 = vld [vmem:[%s6603_s26 + $0x634] ss:$8 sps:$4 sm:$0xff]   ;;  %v8464_v5 = vld [vmem:[#allocation35_spill] sm:$0xff] }
 0x242   : > { %4703 = vmatpush1.bf16.msra.mxu1 %v5726_v62  ;;  %v3059_v34 = vpack.c.bf16 %v3011_v57, %v3011_v57  ;;  %v2227_v36 = vadd.f32 %v2223_v29, %v2212_v8  ;;  %4868 = vmatprep.subr.bf16.mxu0 %v5737_v11  ;;  %v2224_v16 = vmul.f32 %v2219_v25, %v8461_v42  ;;  %v5747_v29 = vld [vmem:[%s6603_s26 + $0x640] ss:$8 sps:$4 sm:$0xff]  }
 0x243   : > { %4704 = vmatprep.subr.bf16.mxu1 %v5734_v35  ;;  %v2809_v40 = vadd.f32 %v7993_v43, %v2791_v2  ;;  %v2811_v44 = vadd.f32 %v7993_v43, %v2805_v14  ;;  %v2898_v30 = vmul.f32 %v2896_v27, %v7109_v33  ;;  %v2213_v9 = vadd.f32 %v2209_v37, %v2198_v20  ;;  %v5741_v33 = vld [vmem:[%s6603_s26 + $0x630] ss:$8 sps:$4 sm:$0xff]   ;;  %v8463_v35 = vld [vmem:[#allocation31_spill] sm:$0xff] }
 0x244   : > { %4732 = vmatprep.mubr.bf16.mxu1 %v3059_v34  ;;  %v2888_v22 = vadd.f32 %v2884_v56, %v2873_v51  ;;  %v2900_v26 = vmul.f32 %v2896_v27, %v8429_v12  ;;  %v2236_v8 = vmul.f32 %v2234_v17, %v8435_v0  ;;  %v2899_v39 = vmul.f32 %v2896_v27, %v8458_v61  ;;  %v8462_v51 = vld [vmem:[#allocation34_spill] sm:$0xff]  ;;  %v2249_v12 = vpop.permute.xlu1 %2248  ;;  %v8465_v2 = vld [vmem:[#allocation7_spill] sm:$0xff] }
 0x245   : > { %4869 = vmatpush1.bf16.msra.mxu0 %v5735_v45  ;;  %v2813_v25 = vmax.f32 %v2809_v40, 0.0  ;;  %v2815_v47 = vmax.f32 %v2811_v44, 0.0  ;;  %v2902_v18 = vadd.f32 %v2898_v30, %v2887_v48  ;;  %v2890_v49 = vadd.f32 %v2886_v1, %v2875_v38  ;;  %v5749_v48 = vld [vmem:[%s6603_s26 + $0x644] ss:$8 sps:$4 sm:$0xff]   ;;  %v5744_v56 = vld [vmem:[%s6603_s26 + $0x240] ss:$8 sps:$4 sm:$0xff]   ;;  %v2926_v1 = vpop.permute.xlu0 %2925 }
 0x246   : > { %4705 = vmatpush1.bf16.msra.mxu1 %v5732_v59  ;;  %v2226_v20 = vadd.f32 %v2222_v50, %v2211_v32  ;;  %v2904_v15 = vadd.f32 %v2900_v26, %v2889_v19  ;;  %v2238_v55 = vmul.f32 %v2234_v17, %v8462_v51  ;;  %v2228_v62 = vadd.f32 %v2224_v16, %v2213_v9  ;;  %v5755_v59 = vld [vmem:[%s6603_s26 + $0x654] ss:$8 sps:$4 sm:$0xff]   ;;  %v5750_v9 = vld [vmem:[%s6603_s26 + $0x250] ss:$8 sps:$4 sm:$0xff]  }
 0x247   : > { %4706 = vmatprep.subr.bf16.mxu1 %v5740_v58  ;;  %v3043_v60 = vsel %vm2993_vm13, %v2815_v47, %v2813_v25  ;;  %v2240_v10 = vadd.f32 %v2236_v8, %v2225_v21  ;;  %4870 = vmatprep.subr.bf16.mxu0 %v5743_v3  ;;  %v2913_v61 = vmul.f32 %v2911_v53, %v8431_v4  ;;  %v2103_v4 = vrot.slane %v7902_v41, 2  ;;  %v5752_v21 = vld [vmem:[%s6603_s26 + $0x254] ss:$8 sps:$4 sm:$0xff]   ;;  %v5753_v25 = vld [vmem:[%s6603_s26 + $0x650] ss:$8 sps:$4 sm:$0xff]  }
 0x248   : > { %v3067_v37 = vpack.c.bf16 %v3043_v60, %v3043_v60  ;;  %v2901_v38 = vmul.f32 %v2896_v27, %v8430_v54  ;;  %v2237_v19 = vmul.f32 %v2234_v17, %v8463_v35  ;;  %v2242_v11 = vadd.f32 %v2238_v55, %v2227_v36  ;;  %v8466_v27 = vld [vmem:[#allocation37_spill] sm:$0xff]  ;;  %v8467_v58 = vld [vmem:[#allocation32_spill] sm:$0xff]  ;;  %v5758_v47 = vld [vmem:[%s6603_s26 + $0x264] ss:$8 sps:$4 sm:$0xff]  }
 0x249   : > { %v2903_v32 = vadd.f32 %v2899_v39, %v2888_v22  ;;  %4871 = vmatpush1.bf16.msra.mxu0 %v5741_v33  ;;  %v2915_v6 = vmul.f32 %v2911_v53, %v8433_v13  ;;  %v2251_v52 = vmul.f32 %v2249_v12, %v8464_v5  ;;  %v2239_v14 = vmul.f32 %v2234_v17, %v8465_v2  ;;  %v8468_v17 = vld [vmem:[#allocation16_spill] sm:$0xff]  ;;  %v2941_v33 = vpop.permute.xlu1 %2940 }
 0x24a   : > { %4707 = vmatpush1.bf16.msra.mxu1 %v5738_v46  ;;  %4896 = vmatprep.mubr.bf16.mxu0 %v3067_v37  ;;  %v2914_v54 = vmul.f32 %v2911_v53, %v8460_v7  ;;  %v2253_v57 = vmul.f32 %v2249_v12, %v8466_v27  ;;  %v2916_v13 = vmul.f32 %v2911_v53, %v8461_v42 }
 0x24b   : > { %4708 = vmatprep.subr.bf16.mxu1 %v5746_v24  ;;  %v2255_v45 = vadd.f32 %v2251_v52, %v2240_v10  ;;  %4872 = vmatprep.subr.bf16.mxu0 %v5749_v48  ;;  %v2917_v34 = vadd.f32 %v2913_v61, %v2902_v18  ;;  %v2919_v50 = vadd.f32 %v2915_v6, %v2904_v15  ;;  %v2778_v61 = vsel %vm1739_vm12, %v7906_v31, 0.0  ;;  %v5767_v6 = vld [vmem:[%s6603_s26 + $0x674] ss:$8 sps:$4 sm:$0xff]  }
 0x24c   : > { %v2905_v36 = vadd.f32 %v2901_v38, %v2890_v49  ;;  %v2252_v16 = vmul.f32 %v2249_v12, %v8467_v58  ;;  %v2254_v40 = vmul.f32 %v2249_v12, %v8468_v17  ;;  %v2257_v7 = vadd.f32 %v2253_v57, %v2242_v11  ;;  %v5761_v49 = vld [vmem:[%s6603_s26 + $0x664] ss:$8 sps:$4 sm:$0xff]   ;;  %v5759_v38 = vld [vmem:[%s6603_s26 + $0x660] ss:$8 sps:$4 sm:$0xff]   ;;  %v5765_v57 = vld [vmem:[%s6603_s26 + $0x670] ss:$8 sps:$4 sm:$0xff]  }
 0x24d   : > { %v2259_v44 = vsel %vm1739_vm12, %v2255_v45, 0.0  ;;  %4873 = vmatpush1.bf16.msra.mxu0 %v5747_v29  ;;  %v2928_v30 = vmul.f32 %v2926_v1, %v8435_v0  ;;  %v2929_v42 = vmul.f32 %v2926_v1, %v8463_v35  ;;  %v2930_v3 = vmul.f32 %v2926_v1, %v8462_v51  ;;  %v5764_v35 = vld [vmem:[%s6603_s26 + $0x274] ss:$8 sps:$4 sm:$0xff]  }
 0x24e   : > { %4709 = vmatpush1.bf16.msra.mxu1 %v5744_v56  ;;  %v2241_v22 = vadd.f32 %v2237_v19, %v2226_v20  ;;  %v2260_v26 = vrot.slane %v2259_v44, 4  ;;  %v2273_v8 = vsel %vm1739_vm12, %v2257_v7, 0.0  ;;  %v2918_v53 = vadd.f32 %v2914_v54, %v2903_v32  ;;  %4874 = vmatprep.subr.bf16.mxu0 %v5755_v59 }
 0x24f   : > { %4710 = vmatprep.subr.bf16.mxu1 %v5752_v21  ;;  %v2243_v39 = vadd.f32 %v2239_v14, %v2228_v62  ;;  %v2274_v18 = vrot.slane %v2273_v8, 4  ;;  %v2920_v46 = vadd.f32 %v2916_v13, %v2905_v36  ;;  %v2931_v0 = vmul.f32 %v2926_v1, %v8465_v2  ;;  %v5756_v62 = vld [vmem:[%s6603_s26 + $0x260] ss:$8 sps:$4 sm:$0xff]   ;;  %v5770_v13 = vld [vmem:[%s6603_s26 + $0x284] ss:$8 sps:$4 sm:$0xff]  }
 0x250   : > { %v2104_v15 = vadd.f32 %v2103_v4, %v7902_v41  ;;  %v2932_v20 = vadd.f32 %v2928_v30, %v2917_v34  ;;  %v2933_v51 = vadd.f32 %v2929_v42, %v2918_v53  ;;  %v2934_v55 = vadd.f32 %v2930_v3, %v2919_v50  ;;  %v5762_v4 = vld [vmem:[%s6603_s26 + $0x270] ss:$8 sps:$4 sm:$0xff]   ;;  %v5776_v53 = vld [vmem:[%s6603_s26 + $0x294] ss:$8 sps:$4 sm:$0xff]  }
 0x251   : > { %v2256_v12 = vadd.f32 %v2252_v16, %v2241_v22  ;;  %v2258_v24 = vadd.f32 %v2254_v40, %v2243_v39  ;;  %v2261_v60 = vadd.f32 %v2260_v26, %v2259_v44  ;;  %v2935_v10 = vadd.f32 %v2931_v0, %v2920_v46  ;;  %4875 = vmatpush1.bf16.msra.mxu0 %v5753_v25  ;;  %v5779_v0 = vld [vmem:[%s6603_s26 + $0x694] ss:$8 sps:$4 sm:$0xff]  }
 0x252   : > { %4711 = vmatpush1.bf16.msra.mxu1 %v5750_v9  ;;  %v2943_v48 = vmul.f32 %v2941_v33, %v8464_v5  ;;  %v2944_v37 = vmul.f32 %v2941_v33, %v8467_v58  ;;  %v2945_v41 = vmul.f32 %v2941_v33, %v8466_v27  ;;  %v2091_v19 = vrot.slane %v7904_v28, 1  ;;  %4876 = vmatprep.subr.bf16.mxu0 %v5761_v49  ;;  %v5773_v58 = vld [vmem:[%s6603_s26 + $0x684] ss:$8 sps:$4 sm:$0xff]   ;;  %v5768_v9 = vld [vmem:[%s6603_s26 + $0x280] ss:$8 sps:$4 sm:$0xff]  }
 0x253   : > { %4712 = vmatprep.subr.bf16.mxu1 %v5758_v47  ;;  %v2792_v11 = vsel %vm1739_vm12, %v7908_v63, 0.0  ;;  %v2275_v32 = vadd.f32 %v2274_v18, %v2273_v8  ;;  %v2946_v31 = vmul.f32 %v2941_v33, %v8468_v17  ;;  %v2105_v5 = vrot.slane %v2104_v15, 1  ;;  %v5771_v8 = vld [vmem:[%s6603_s26 + $0x680] ss:$8 sps:$4 sm:$0xff]  }
 0x254   : > { %v2947_v52 = vadd.f32 %v2943_v48, %v2932_v20  ;;  %v2948_v56 = vadd.f32 %v2944_v37, %v2933_v51  ;;  %v2949_v29 = vadd.f32 %v2945_v41, %v2934_v55  ;;  %v2779_v2 = vrot.slane %v2778_v61, 4 }
 0x255   : > { %v2262_v14 = vrot.slane %v2261_v60, 2  ;;  %v2266_v54 = vsel %vm1739_vm12, %v2256_v12, 0.0  ;;  %v2950_v27 = vadd.f32 %v2946_v31, %v2935_v10  ;;  %v2793_v63 = vrot.slane %v2792_v11, 4  ;;  %4877 = vmatpush1.bf16.msra.mxu0 %v5759_v38 }
 0x256   : > { %4713 = vmatpush1.bf16.msra.mxu1 %v5756_v62  ;;  %v2280_v1 = vsel %vm1739_vm12, %v2258_v24, 0.0  ;;  %v2951_v21 = vsel %vm1739_vm12, %v2947_v52, 0.0  ;;  %v2965_v59 = vsel %vm1739_vm12, %v2949_v29, 0.0  ;;  %v2276_v45 = vrot.slane %v2275_v32, 2  ;;  %4878 = vmatprep.subr.bf16.mxu0 %v5767_v6  ;;  %v5774_v24 = vld [vmem:[%s6603_s26 + $0x290] ss:$8 sps:$4 sm:$0xff]  }
 0x257   : > { %4714 = vmatprep.subr.bf16.mxu1 %v5764_v35  ;;  %v2952_v34 = vrot.slane %v2951_v21, 4  ;;  %v2958_v50 = vsel %vm1739_vm12, %v2948_v56, 0.0  ;;  %v2966_v36 = vrot.slane %v2965_v59, 4  ;;  %v2267_v16 = vrot.slane %v2266_v54, 4  ;;  %v5777_v62 = vld [vmem:[%s6603_s26 + $0x690] ss:$8 sps:$4 sm:$0xff]  }
 0x258   : > { %v2972_v17 = vsel %vm1739_vm12, %v2950_v27, 0.0  ;;  %v2092_v40 = vadd.f32 %v2091_v19, %v7904_v28  ;;  %v2106_v7 = vadd.f32 %v2105_v5, %v2104_v15  ;;  %v2263_v44 = vadd.f32 %v2262_v14, %v2261_v60  ;;  %v5785_v35 = vld [vmem:[%s6603_s26 + $0x6a4] ss:$8 sps:$4 sm:$0xff]   ;;  %v5780_v56 = vld [vmem:[%s6603_s26 + $0x2a0] ss:$8 sps:$4 sm:$0xff]  }
 0x259   : > { %v2281_v30 = vrot.slane %v2280_v1, 4  ;;  %v2953_v42 = vadd.f32 %v2952_v34, %v2951_v21  ;;  %v2967_v3 = vadd.f32 %v2966_v36, %v2965_v59  ;;  %v2959_v22 = vrot.slane %v2958_v50, 4  ;;  %4879 = vmatpush1.bf16.msra.mxu0 %v5765_v57  ;;  %v5783_v14 = vld [vmem:[%s6603_s26 + $0x6a0] ss:$8 sps:$4 sm:$0xff]   ;;  %v5791_v57 = vld [vmem:[%s6603_s26 + $0x6b4] ss:$8 sps:$4 sm:$0xff]  }
 0x25a   : > { %4715 = vmatpush1.bf16.msra.mxu1 %v5762_v4  ;;  %v2973_v26 = vrot.slane %v2972_v17, 4  ;;  %v2116_v28 = vadd.f32 %v8459_v23, %v2092_v40  ;;  %v2118_v25 = vadd.f32 %v8459_v23, %v2106_v7  ;;  %v2780_v47 = vadd.f32 %v2779_v2, %v2778_v61  ;;  %4880 = vmatprep.subr.bf16.mxu0 %v5773_v58  ;;  %v5782_v61 = vld [vmem:[%s6603_s26 + $0x2a4] ss:$8 sps:$4 sm:$0xff]   ;;  %v5786_v36 = vld [vmem:[%s6603_s26 + $0x2b0] ss:$8 sps:$4 sm:$0xff]  }
 0x25b   : > { %4716 = vmatprep.subr.bf16.mxu1 %v5770_v13  ;;  %v2277_v39 = vadd.f32 %v2276_v45, %v2275_v32  ;;  %v2954_v18 = vrot.slane %v2953_v42, 2  ;;  %v2968_v46 = vrot.slane %v2967_v3, 2  ;;  %v2794_v33 = vadd.f32 %v2793_v63, %v2792_v11 }
 0x25c   : > { %v2268_v49 = vadd.f32 %v2267_v16, %v2266_v54  ;;  %v2120_v15 = vmax.f32 %v2116_v28, 0.0  ;;  %v2122_v20 = vmax.f32 %v2118_v25, 0.0  ;;  %v2282_v51 = vadd.f32 %v2281_v30, %v2280_v1  ;;  %v5788_v54 = vld [vmem:[%s6603_s26 + $0x2b4] ss:$8 sps:$4 sm:$0xff]   ;;  %v5794_v30 = vld [vmem:[%s6603_s26 + $0x2c4] ss:$8 sps:$4 sm:$0xff]  }
 0x25d   : > { %v2955_v55 = vadd.f32 %v2954_v18, %v2953_v42  ;;  %v2969_v12 = vadd.f32 %v2968_v46, %v2967_v3  ;;  %v2264_v60 = vrot.slane %v2263_v44, 1  ;;  %v2960_v23 = vadd.f32 %v2959_v22, %v2958_v50  ;;  %4881 = vmatpush1.bf16.msra.mxu0 %v5771_v8  ;;  %v5797_v3 = vld [vmem:[%s6603_s26 + $0x6c4] ss:$8 sps:$4 sm:$0xff]   ;;  %v5795_v46 = vld [vmem:[%s6603_s26 + $0x6c0] ss:$8 sps:$4 sm:$0xff]  }
 0x25e   : > { %4717 = vmatpush1.bf16.msra.mxu1 %v5768_v9  ;;  %v2974_v10 = vadd.f32 %v2973_v26, %v2972_v17  ;;  %v8085_v48 = vsel %vm2993_vm13, %v2122_v20, %v2120_v15  ;;  %v2278_v37 = vrot.slane %v2277_v39, 1  ;;  %4882 = vmatprep.subr.bf16.mxu0 %v5779_v0  ;;  %v2781_v19 = vrot.slane %v2780_v47, 2  ;;  %v5800_v0 = vld [vmem:[%s6603_s26 + $0x2d4] ss:$8 sps:$4 sm:$0xff]   ;;  %v5798_v20 = vld [vmem:[%s6603_s26 + $0x2d0] ss:$8 sps:$4 sm:$0xff]  }
 0x25f   : > { %4718 = vmatprep.subr.bf16.mxu1 %v5776_v53  ;;  %v2956_v41 = vrot.slane %v2955_v55, 1  ;;  %v2970_v38 = vrot.slane %v2969_v12, 1  ;;  %v2795_v11 = vrot.slane %v2794_v33, 2  ;;  %v2269_v32 = vrot.slane %v2268_v49, 2  ;;  %v5792_v53 = vld [vmem:[%s6603_s26 + $0x2c0] ss:$8 sps:$4 sm:$0xff]  }
 0x260   : > { %v8089_v31 = vstv %s8071_s10  ;;  %v2283_v6 = vrot.slane %v2282_v51, 2  ;;  %v8093_v29 = vstv %s8074_s11  ;;  %v2961_v4 = vrot.slane %v2960_v23, 2 }
 0x261   : > { %v2957_v5 = vadd.f32 %v2956_v41, %v2955_v55  ;;  %v2971_v52 = vadd.f32 %v2970_v38, %v2969_v12  ;;  %v2975_v2 = vrot.slane %v2974_v10, 2  ;;  %4883 = vmatpush1.bf16.msra.mxu0 %v5777_v62  ;;  %v2265_v27 = vadd.f32 %v2264_v60, %v2263_v44  ;;  %v5789_v44 = vld [vmem:[%s6603_s26 + $0x6b0] ss:$8 sps:$4 sm:$0xff]  }
 0x262   : > { %4719 = vmatpush1.bf16.msra.mxu1 %v5774_v24  ;;  %4884 = vmatprep.subr.bf16.mxu0 %v5785_v35  ;;  %v2279_v63 = vadd.f32 %v2278_v37, %v2277_v39  ;;  %v2782_v59 = vadd.f32 %v2781_v19, %v2780_v47  ;;  %v2796_v13 = vadd.f32 %v2795_v11, %v2794_v33  ;;  %v5803_v33 = vld [vmem:[%s6603_s26 + $0x6d4] ss:$8 sps:$4 sm:$0xff]   ;;  %v5801_v12 = vld [vmem:[%s6603_s26 + $0x6d0] ss:$8 sps:$4 sm:$0xff]   ;;  %v5806_v24 = vld [vmem:[%s6603_s26 + $0x2e4] ss:$8 sps:$4 sm:$0xff]  }
 0x263   : > { %4720 = vmatprep.subr.bf16.mxu1 %v5782_v61  ;;  %v2981_v1 = vadd.f32 %v8089_v31, %v2957_v5  ;;  %v2983_v21 = vadd.f32 %v8089_v31, %v2971_v52  ;;  %v2270_v45 = vadd.f32 %v2269_v32, %v2268_v49  ;;  %v2289_v34 = vadd.f32 %v8093_v29, %v2265_v27  ;;  %v5804_v37 = vld [vmem:[%s6603_s26 + $0x2e0] ss:$8 sps:$4 sm:$0xff]   ;;  %v5812_v19 = vld [vmem:[%s6603_s26 + $0x2f4] ss:$8 sps:$4 sm:$0xff]   ;;  %v5810_v52 = vld [vmem:[%s6603_s26 + $0x2f0] ss:$8 sps:$4 sm:$0xff]  }
 0x264   : > { %v2284_v50 = vadd.f32 %v2283_v6, %v2282_v51  ;;  %v2291_v58 = vadd.f32 %v8093_v29, %v2279_v63  ;;  %v2962_v40 = vadd.f32 %v2961_v4, %v2960_v23  ;;  %v2976_v7 = vadd.f32 %v2975_v2, %v2974_v10  ;;  %v5809_v10 = vld [vmem:[%s6603_s26 + $0x6e4] ss:$8 sps:$4 sm:$0xff]   ;;  %v5807_v35 = vld [vmem:[%s6603_s26 + $0x6e0] ss:$8 sps:$4 sm:$0xff]   ;;  %v5813_v4 = vld [vmem:[%s6603_s26 + $0x6f0] ss:$8 sps:$4 sm:$0xff]  }
 0x265   : > { %v2985_v16 = vmax.f32 %v2981_v1, 0.0  ;;  %v2987_v17 = vmax.f32 %v2983_v21, 0.0  ;;  %4885 = vmatpush1.bf16.msra.mxu0 %v5783_v14  ;;  %v2293_v42 = vmax.f32 %v2289_v34, 0.0  ;;  %v2783_v26 = vrot.slane %v2782_v59, 1  ;;  %v5818_v2 = vld [vmem:[%s6603_s26 + $0x304] ss:$8 sps:$4 sm:$0xff]  }
 0x266   : > { %4721 = vmatpush1.bf16.msra.mxu1 %v5780_v56  ;;  %4886 = vmatprep.subr.bf16.mxu0 %v5791_v57  ;;  %v2295_v9 = vmax.f32 %v2291_v58, 0.0  ;;  %v2797_v8 = vrot.slane %v2796_v13, 1  ;;  %v2271_v28 = vrot.slane %v2270_v45, 1  ;;  %v2285_v25 = vrot.slane %v2284_v50, 1  ;;  %v5816_v57 = vld [vmem:[%s6603_s26 + $0x300] ss:$8 sps:$4 sm:$0xff]  }
 0x267   : > { %4722 = vmatprep.subr.bf16.mxu1 %v5788_v54  ;;  %v8107_v22 = vsel %vm2993_vm13, %v2987_v17, %v2985_v16  ;;  %v2963_v39 = vrot.slane %v2962_v40, 1  ;;  %v2977_v18 = vrot.slane %v2976_v7, 1  ;;  %v2784_v49 = vadd.f32 %v2783_v26, %v2782_v59  ;;  %v5819_v21 = vld [vmem:[%s6603_s26 + $0x700] ss:$8 sps:$4 sm:$0xff]   ;;  %v5825_v58 = vld [vmem:[%s6603_s26 + $0x710] ss:$8 sps:$4 sm:$0xff]  }
 0x268   : > { %v8111_v47 = vsel %vm2993_vm13, %v2295_v9, %v2293_v42  ;;  %v2798_v15 = vadd.f32 %v2797_v8, %v2796_v13  ;;  %v2272_v51 = vadd.f32 %v2271_v28, %v2270_v45  ;;  %v2286_v55 = vadd.f32 %v2285_v25, %v2284_v50  ;;  %v5824_v45 = vld [vmem:[%s6603_s26 + $0x314] ss:$8 sps:$4 sm:$0xff]   ;;  %v5830_v16 = vld [vmem:[%s6603_s26 + $0x324] ss:$8 sps:$4 sm:$0xff]   ;;  %v5834_v42 = vld [vmem:[%s6603_s26 + $0x330] ss:$8 sps:$4 sm:$0xff]  }
 0x269   : > { %4887 = vmatpush1.bf16.msra.mxu0 %v5789_v44  ;;  %v2964_v60 = vadd.f32 %v2963_v39, %v2962_v40  ;;  %v2978_v23 = vadd.f32 %v2977_v18, %v2976_v7  ;;  %v2808_v62 = vadd.f32 %v7993_v43, %v2784_v49  ;;  %v3058_v1 = vpack.c.bf16 %v8085_v48, %v8085_v48  ;;  %v5827_v50 = vld [vmem:[%s6603_s26 + $0x714] ss:$8 sps:$4 sm:$0xff]   ;;  %v5822_v48 = vld [vmem:[%s6603_s26 + $0x310] ss:$8 sps:$4 sm:$0xff]   ;;  %v5833_v17 = vld [vmem:[%s6603_s26 + $0x724] ss:$8 sps:$4 sm:$0xff]  }
 0x26a   : > { %4723 = vmatpush1.bf16.msra.mxu1 %v5786_v36  ;;  %4888 = vmatprep.subr.bf16.mxu0 %v5797_v3  ;;  %v2810_v61 = vadd.f32 %v7993_v43, %v2798_v15  ;;  %v2290_v41 = vadd.f32 %v8093_v29, %v2272_v51  ;;  %v2292_v38 = vadd.f32 %v8093_v29, %v2286_v55  ;;  %v5815_v43 = vld [vmem:[%s6603_s26 + $0x6f4] ss:$8 sps:$4 sm:$0xff]   ;;  %v5828_v40 = vld [vmem:[%s6603_s26 + $0x320] ss:$8 sps:$4 sm:$0xff]   ;;  %v5837_v3 = vld [vmem:[%s6603_s26 + $0x730] ss:$8 sps:$4 sm:$0xff]  }
 0x26b   : > { %4724 = vmatprep.subr.bf16.mxu1 %v5794_v30  ;;  %v2982_v11 = vadd.f32 %v8089_v31, %v2964_v60  ;;  %v2984_v32 = vadd.f32 %v8089_v31, %v2978_v23  ;;  %v2812_v6 = vmax.f32 %v2808_v62, 0.0  ;;  %v5821_v31 = vld [vmem:[%s6603_s26 + $0x704] ss:$8 sps:$4 sm:$0xff]   ;;  %v5831_v7 = vld [vmem:[%s6603_s26 + $0x720] ss:$8 sps:$4 sm:$0xff]  }
 0x26c   : > { %v2814_v5 = vmax.f32 %v2810_v61, 0.0  ;;  %v2294_v56 = vmax.f32 %v2290_v41, 0.0  ;;  %v2296_v29 = vmax.f32 %v2292_v38, 0.0  ;;  %v5836_v44 = vld [vmem:[%s6603_s26 + $0x334] ss:$8 sps:$4 sm:$0xff]  }
 0x26d   : > { %4889 = vmatpush1.bf16.msra.mxu0 %v5795_v46  ;;  %v2986_v14 = vmax.f32 %v2982_v11, 0.0  ;;  %v2988_v54 = vmax.f32 %v2984_v32, 0.0  ;;  %v5839_v30 = vld [vmem:[%s6603_s26 + $0x734] ss:$8 sps:$4 sm:$0xff]   ;;  %v5842_v9 = vld [vmem:[%s6603_s26 + $0x344] ss:$8 sps:$4 sm:$0xff]  }
 0x26e   : > { %4725 = vmatpush1.bf16.msra.mxu1 %v5792_v53  ;;  %4890 = vmatprep.subr.bf16.mxu0 %v5803_v33  ;;  %v3042_v27 = vsel %vm2993_vm13, %v2814_v5, %v2812_v6  ;;  %v3019_v63 = vsel %vm2993_vm13, %v2296_v29, %v2294_v56  ;;  %v5845_v26 = vld [vmem:[%s6603_s26 + $0x744] ss:$8 sps:$4 sm:$0xff]   ;;  %v5840_v8 = vld [vmem:[%s6603_s26 + $0x340] ss:$8 sps:$4 sm:$0xff]   ;;  %v5848_v28 = vld [vmem:[%s6603_s26 + $0x354] ss:$8 sps:$4 sm:$0xff]  }
 0x26f   : > { %4726 = vmatprep.subr.bf16.mxu1 %v5800_v0  ;;  %v3051_v59 = vsel %vm2993_vm13, %v2988_v54, %v2986_v14  ;;  %v3066_v13 = vpack.c.bf16 %v3042_v27, %v3042_v27  ;;  %v3061_v34 = vpack.c.bf16 %v3019_v63, %v3019_v63  ;;  %v5843_v53 = vld [vmem:[%s6603_s26 + $0x740] ss:$8 sps:$4 sm:$0xff]   ;;  %v5851_v25 = vld [vmem:[%s6603_s26 + $0x754] ss:$8 sps:$4 sm:$0xff]   ;;  %v5846_v39 = vld [vmem:[%s6603_s26 + $0x350] ss:$8 sps:$4 sm:$0xff]  }
 0x270   : > { %v3069_v36 = vpack.c.bf16 %v3051_v59, %v3051_v59  ;;  %v5849_v18 = vld [vmem:[%s6603_s26 + $0x750] ss:$8 sps:$4 sm:$0xff]   ;;  %v5854_v46 = vld [vmem:[%s6603_s26 + $0x364] ss:$8 sps:$4 sm:$0xff]   ;;  %v5852_v33 = vld [vmem:[%s6603_s26 + $0x360] ss:$8 sps:$4 sm:$0xff]  }
 0x271   : > { %4891 = vmatpush1.bf16.msra.mxu0 %v5801_v12  ;;  %v5857_v0 = vld [vmem:[%s6603_s26 + $0x764] ss:$8 sps:$4 sm:$0xff]   ;;  %v5855_v49 = vld [vmem:[%s6603_s26 + $0x760] ss:$8 sps:$4 sm:$0xff]   ;;  %v5860_v15 = vld [vmem:[%s6603_s26 + $0x374] ss:$8 sps:$4 sm:$0xff]  }
 0x272   : > { %4727 = vmatpush1.bf16.msra.mxu1 %v5798_v20  ;;  %4892 = vmatprep.subr.bf16.mxu0 %v5809_v10  ;;  %v5863_v20 = vld [vmem:[%s6603_s26 + $0x774] ss:$8 sps:$4 sm:$0xff]   ;;  %v5858_v51 = vld [vmem:[%s6603_s26 + $0x370] ss:$8 sps:$4 sm:$0xff]   ;;  %v5866_v12 = vld [vmem:[%s6603_s26 + $0x384] ss:$8 sps:$4 sm:$0xff]  }
 0x273   : > { %4728 = vmatprep.subr.bf16.mxu1 %v5806_v24  ;;  %v5861_v55 = vld [vmem:[%s6603_s26 + $0x770] ss:$8 sps:$4 sm:$0xff]   ;;  %v5869_v24 = vld [vmem:[%s6603_s26 + $0x784] ss:$8 sps:$4 sm:$0xff]   ;;  %v5864_v60 = vld [vmem:[%s6603_s26 + $0x380] ss:$8 sps:$4 sm:$0xff]  }
 0x274   : > { %v5867_v23 = vld [vmem:[%s6603_s26 + $0x780] ss:$8 sps:$4 sm:$0xff]   ;;  %v5872_v10 = vld [vmem:[%s6603_s26 + $0x394] ss:$8 sps:$4 sm:$0xff]   ;;  %v5870_v61 = vld [vmem:[%s6603_s26 + $0x390] ss:$8 sps:$4 sm:$0xff]  }
 0x275   : > { %4893 = vmatpush1.bf16.msra.mxu0 %v5807_v35  ;;  %v5875_v62 = vld [vmem:[%s6603_s26 + $0x794] ss:$8 sps:$4 sm:$0xff]   ;;  %v5878_v41 = vld [vmem:[%s6603_s26 + $0x3a4] ss:$8 sps:$4 sm:$0xff]   ;;  %v5876_v35 = vld [vmem:[%s6603_s26 + $0x3a0] ss:$8 sps:$4 sm:$0xff]  }
 0x276   : > { %4729 = vmatpush1.bf16.msra.mxu1 %v5804_v37  ;;  %4894 = vmatprep.subr.bf16.mxu0 %v5815_v43  ;;  %v5873_v37 = vld [vmem:[%s6603_s26 + $0x790] ss:$8 sps:$4 sm:$0xff]   ;;  %v5881_v38 = vld [vmem:[%s6603_s26 + $0x7a4] ss:$8 sps:$4 sm:$0xff]   ;;  %v5884_v11 = vld [vmem:[%s6603_s26 + $0x3b4] ss:$8 sps:$4 sm:$0xff]  }
 0x277   : > { %4730 = vmatprep.subr.bf16.mxu1 %v5812_v19  ;;  %v5879_v19 = vld [vmem:[%s6603_s26 + $0x7a0] ss:$8 sps:$4 sm:$0xff]   ;;  %v5887_v32 = vld [vmem:[%s6603_s26 + $0x7b4] ss:$8 sps:$4 sm:$0xff]   ;;  %v5882_v43 = vld [vmem:[%s6603_s26 + $0x3b0] ss:$8 sps:$4 sm:$0xff]  }
 0x278   : > { %v5885_v6 = vld [vmem:[%s6603_s26 + $0x7b0] ss:$8 sps:$4 sm:$0xff]   ;;  %v5890_v5 = vld [vmem:[%s6603_s26 + $0x3c4] ss:$8 sps:$4 sm:$0xff]   ;;  %v5888_v56 = vld [vmem:[%s6603_s26 + $0x3c0] ss:$8 sps:$4 sm:$0xff]  }
 0x279   : > { %4895 = vmatpush1.bf16.msra.mxu0 %v5813_v4  ;;  %v5891_v29 = vld [vmem:[%s6603_s26 + $0x7c0] ss:$8 sps:$4 sm:$0xff]   ;;  %v5896_v4 = vld [vmem:[%s6603_s26 + $0x3d4] ss:$8 sps:$4 sm:$0xff]   ;;  %v5894_v14 = vld [vmem:[%s6603_s26 + $0x3d0] ss:$8 sps:$4 sm:$0xff]  }
 0x27a   : > { %4731 = vmatpush1.bf16.msra.mxu1 %v5810_v52  ;;  %4905 = vmatprep.subr.bf16.mxu0 %v5821_v31  ;;  %v5893_v52 = vld [vmem:[%s6603_s26 + $0x7c4] ss:$8 sps:$4 sm:$0xff]   ;;  %v5897_v54 = vld [vmem:[%s6603_s26 + $0x7d0] ss:$8 sps:$4 sm:$0xff]   ;;  %v5903_v63 = vld [vmem:[%s6603_s26 + $0x7e0] ss:$8 sps:$4 sm:$0xff]  }
 0x27b   : > { %4741 = vmatprep.subr.bf16.mxu1 %v5818_v2  ;;  %v5899_v2 = vld [vmem:[%s6603_s26 + $0x7d4] ss:$8 sps:$4 sm:$0xff]   ;;  %v5902_v31 = vld [vmem:[%s6603_s26 + $0x3e4] ss:$8 sps:$4 sm:$0xff]   ;;  %v5906_v59 = vld [vmem:[%s6603_s26 + $0x3f0] ss:$8 sps:$4 sm:$0xff]  }
 0x27c   : > { %4897 = vmatmul.mubr.bf16.vlgmr.msra.gmra.mrb[0].mxu0 %v3066_v13  ;;  %v5905_v27 = vld [vmem:[%s6603_s26 + $0x7e4] ss:$8 sps:$4 sm:$0xff]   ;;  %v5909_v13 = vld [vmem:[%s6603_s26 + $0x7f0] ss:$8 sps:$4 sm:$0xff]  }
 0x27d   : > { %4733 = vmatmul.mubr.bf16.vlgmr.msra.gmra.mrb[0].mxu1 %v3058_v1  ;;  %4906 = vmatpush1.bf16.msra.mxu0 %v5819_v21  ;;  %v5908_v1 = vld [vmem:[%s6603_s26 + $0x3f4] ss:$8 sps:$4 sm:$0xff]  }
 0x27e   : > { %4742 = vmatpush1.bf16.msra.mxu1 %v5816_v57  ;;  %4773 = vmatprep.mubr.bf16.mxu1 %v3061_v34  ;;  %v5900_v57 = vld [vmem:[%s6603_s26 + $0x3e0] ss:$8 sps:$4 sm:$0xff]   ;;  %v5911_v21 = vld [vmem:[%s6603_s26 + $0x7f4] ss:$8 sps:$4 sm:$0xff]   ;;  %v3068_v34 = vpack.c.bf16 %v8107_v22, %v8107_v22  ;;  %s1350_s26 = scalar_lea.vmem %s8232_s4, %s8477_s12 }
 0x27f   : > { %4937 = vmatprep.mubr.bf16.mxu0 %v3069_v36  ;;  %4743 = vmatprep.subr.bf16.mxu1 %v5824_v45  ;;  %v3060_v45 = vpack.c.bf16 %v8111_v47, %v8111_v47 }
 0x280   : > { %4907 = vmatprep.subr.bf16.mxu0 %v5827_v50  ;;  %v8469_v50 = vlaneseq }
 0x281   : > { %4908 = vmatpush1.bf16.msra.mxu0 %v5825_v58  ;;  %v3326_v58 = vld [vmem:[%s1350_s26] sm:$0x3] }
 0x282   : > { %4744 = vmatpush1.bf16.msra.mxu1 %v5822_v48  ;;  %4909 = vmatprep.subr.bf16.mxu0 %v5833_v17  ;;  %v3329_v36 = vshrl.u32 %v8469_v50, 7 }
 0x283   : > { %4745 = vmatprep.subr.bf16.mxu1 %v5830_v16 }
 0x284   : > { %v3330_v48 = vsub.s32 0, %v3329_v36  ;;  %v3334_v16 = vsub.s32 1, %v3329_v36 }
 0x285   : > { %4910 = vmatpush1.bf16.msra.mxu0 %v5831_v7 }
 0x286   : > { %4746 = vmatpush1.bf16.msra.mxu1 %v5828_v40  ;;  %4911 = vmatprep.subr.bf16.mxu0 %v5839_v30  ;;  %v3331_v17 = vrot.slane %v3326_v58, %v3330_v48  ;;  %v3335_v40 = vrot.slane %v3326_v58, %v3334_v16 }
 0x287   : > { %4747 = vmatprep.subr.bf16.mxu1 %v5836_v44 }
 0x289   : > { %4912 = vmatpush1.bf16.msra.mxu0 %v5837_v3 }
 0x28a   : > { %4748 = vmatpush1.bf16.msra.mxu1 %v5834_v42  ;;  %4913 = vmatprep.subr.bf16.mxu0 %v5845_v26 }
 0x28b   : > { %4749 = vmatprep.subr.bf16.mxu1 %v5842_v9 }
 0x28d   : > { %4914 = vmatpush1.bf16.msra.mxu0 %v5843_v53 }
 0x28e   : > { %4750 = vmatpush1.bf16.msra.mxu1 %v5840_v8  ;;  %4915 = vmatprep.subr.bf16.mxu0 %v5851_v25 }
 0x28f   : > { %4751 = vmatprep.subr.bf16.mxu1 %v5848_v28 }
 0x291   : > { %4916 = vmatpush1.bf16.msra.mxu0 %v5849_v18 }
 0x292   : > { %4752 = vmatpush1.bf16.msra.mxu1 %v5846_v39  ;;  %4917 = vmatprep.subr.bf16.mxu0 %v5857_v0 }
 0x293   : > { %4753 = vmatprep.subr.bf16.mxu1 %v5854_v46 }
 0x295   : > { %4918 = vmatpush1.bf16.msra.mxu0 %v5855_v49 }
 0x296   : > { %4754 = vmatpush1.bf16.msra.mxu1 %v5852_v33  ;;  %4919 = vmatprep.subr.bf16.mxu0 %v5863_v20 }
 0x297   : > { %4755 = vmatprep.subr.bf16.mxu1 %v5860_v15 }
 0x299   : > { %4920 = vmatpush1.bf16.msra.mxu0 %v5861_v55 }
 0x29a   : > { %4756 = vmatpush1.bf16.msra.mxu1 %v5858_v51  ;;  %4921 = vmatprep.subr.bf16.mxu0 %v5869_v24 }
 0x29b   : > { %4757 = vmatprep.subr.bf16.mxu1 %v5866_v12 }
 0x29d   : > { %4922 = vmatpush1.bf16.msra.mxu0 %v5867_v23 }
 0x29e   : > { %4758 = vmatpush1.bf16.msra.mxu1 %v5864_v60  ;;  %4923 = vmatprep.subr.bf16.mxu0 %v5875_v62 }
 0x29f   : > { %4759 = vmatprep.subr.bf16.mxu1 %v5872_v10 }
 0x2a1   : > { %4924 = vmatpush1.bf16.msra.mxu0 %v5873_v37 }
 0x2a2   : > { %4760 = vmatpush1.bf16.msra.mxu1 %v5870_v61  ;;  %4925 = vmatprep.subr.bf16.mxu0 %v5881_v38 }
 0x2a3   : > { %4761 = vmatprep.subr.bf16.mxu1 %v5878_v41 }
 0x2a5   : > { %4926 = vmatpush1.bf16.msra.mxu0 %v5879_v19 }
 0x2a6   : > { %4762 = vmatpush1.bf16.msra.mxu1 %v5876_v35  ;;  %4927 = vmatprep.subr.bf16.mxu0 %v5887_v32 }
 0x2a7   : > { %4763 = vmatprep.subr.bf16.mxu1 %v5884_v11 }
 0x2a9   : > { %4928 = vmatpush1.bf16.msra.mxu0 %v5885_v6 }
 0x2aa   : > { %4764 = vmatpush1.bf16.msra.mxu1 %v5882_v43  ;;  %4929 = vmatprep.subr.bf16.mxu0 %v5893_v52 }
 0x2ab   : > { %4765 = vmatprep.subr.bf16.mxu1 %v5890_v5 }
 0x2ad   : > { %4930 = vmatpush1.bf16.msra.mxu0 %v5891_v29 }
 0x2ae   : > { %4766 = vmatpush1.bf16.msra.mxu1 %v5888_v56  ;;  %4931 = vmatprep.subr.bf16.mxu0 %v5899_v2 }
 0x2af   : > { %4767 = vmatprep.subr.bf16.mxu1 %v5896_v4 }
 0x2b1   : > { %4932 = vmatpush1.bf16.msra.mxu0 %v5897_v54 }
 0x2b2   : > { %4768 = vmatpush1.bf16.msra.mxu1 %v5894_v14  ;;  %4933 = vmatprep.subr.bf16.mxu0 %v5905_v27 }
 0x2b3   : > { %4769 = vmatprep.subr.bf16.mxu1 %v5902_v31 }
 0x2b5   : > { %4934 = vmatpush1.bf16.msra.mxu0 %v5903_v63 }
 0x2b6   : > { %4770 = vmatpush1.bf16.msra.mxu1 %v5900_v57  ;;  %4935 = vmatprep.subr.bf16.mxu0 %v5911_v21 }
 0x2b7   : > { %4771 = vmatprep.subr.bf16.mxu1 %v5908_v1 }
 0x2b9   : > { %4936 = vmatpush1.bf16.msra.mxu0 %v5909_v13 }
 0x2ba   : > { %4772 = vmatpush1.bf16.msra.mxu1 %v5906_v59 }
 0x2bc   : > { %4938 = vmatmul.mubr.bf16.vlgmr.msra.gmra.mrb[0].mxu0 %v3068_v34 }
 0x2bd   : > { %4774 = vmatmul.mubr.bf16.vlgmr.msra.gmra.mrb[0].mxu1 %v3060_v45 }
 0x38f   : > { %v4939_v44 = vpop.f32.mrb[0].mxu0 }
 0x390   : > { %v4775_v47 = vpop.f32.mrb[0].mxu1  ;;  %v4941_v42 = vpop.f32.mrb[1].mxu0 }
 0x391   : > { %v5436_v7 = vadd.f32 %v4775_v47, %v3331_v17  ;;  %v4777_v22 = vpop.f32.mrb[1].mxu1  ;;  %v4943_v26 = vpop.f32.mrb[2].mxu0 }
 0x392   : > { %v5438_v30 = vadd.f32 %v4777_v22, %v3335_v40  ;;  %v4779_v3 = vpop.f32.mrb[2].mxu1  ;;  %v4944_v28 = vpop.f32.mrb[3].mxu0 }
 0x393   : > { %v5437_v9 = vadd.f32 %v5436_v7, %v4939_v44  ;;  %v4780_v8 = vpop.f32.mrb[3].mxu1 }
 0x394   : > { %v5439_v53 = vadd.f32 %v5438_v30, %v4941_v42 }
 0x395   : > { %v4946_v25 = vmax.f32 %v5437_v9, 0.0 }
 0x396   : > { %v4947_v39 = vmax.f32 %v5439_v53, 0.0 }
 0x398   : > { %v4950_v18 = vcombine.low %v4946_v25, %v4947_v39 }
 0x39a   : > { %5432 = vst.sshfl [vmem:[%s1360_s17] sm:$0x33 pattern:$0x76325410] %v4950_v18 }
 0x39b PF: > { %s16_s22 = sadd.s32 1, %s5971_s22   ;;  %s8470_s18 = smov %s5959_s19 }
 0x39c   : > { %p13_p7 = scmp.ge.s32.totalorder %s16_s22, 4   ;;  %s8471_s19 = smov %s6063_s30 }
 0x39d   : > { %s8472_s20 = smov %s5967_s21  ;;  %s8473_s21 = smov %s8475_s24 }
 0x39e   :  { %15 = sbr.rel (!%p13_p7) target bundleno = 3 (0x3), region = 195 }
 0x3a5   :  { %4990 = vsyncpa [#allocation3], 1 }
 0x3a6   :  { %4992 = vsyncpa [#allocation3 + $0x1], 1 }

</bundles_post_ra>
